<compile_context>
chip_gen: v7x
topology: tpu7x:2x2x1
jax: 0.10.0
libtpu: 0.0.40
codegen_flags: <defaults>
</compile_context>

<pallas_src>
import functools

import numpy as np
import jax
import jax.numpy as jnp
from jax import lax
from jax.experimental import pallas as pl
from jax.experimental.pallas import tpu as pltpu


# Network config fixed by the PyTorch module.
_CHANNELS = [3, 64, 128, 256, 1]
_STRIDES = [2, 2, 2, 1]
_KSIZE = 4
_PAD = 1


def _leaky_relu(v):
    return jnp.where(v >= 0.0, v, 0.2 * v)


def _sigmoid(v):
    # Numerically stable sigmoid via tanh (EUP), output exactly in [0, 1].
    return 0.5 * (jnp.tanh(0.5 * v) + 1.0)


def _out_hw(hw, stride):
    return (hw + 2 * _PAD - _KSIZE) // stride + 1


def _make_kernel(layer_dims):
    """layer_dims[l] = (stride, Ho, Wo, Cin, Cout, Hp_in, Wp_in)."""
    n_layers = len(layer_dims)

    def kernel(x_ref,
               w1_ref, b1_ref, s1_ref,
               w2_ref, b2_ref, s2_ref,
               w3_ref, b3_ref, s3_ref,
               w4_ref, b4_ref, s4_ref,
               o_ref,
               a1_ref, a2_ref, a3_ref):
        w_refs = (w1_ref, w2_ref, w3_ref, w4_ref)
        b_refs = (b1_ref, b2_ref, b3_ref, b4_ref)
        s_refs = (s1_ref, s2_ref, s3_ref, s4_ref)
        act_refs = (a1_ref, a2_ref, a3_ref)

        # Zero the padded activation scratch; the zero ring IS the conv padding.
        for a_ref in act_refs:
            a_ref[...] = jnp.zeros_like(a_ref)

        def read_input_row(h):
            return x_ref[0, h, :, :]                      # (Wp, Cin) bf16

        def make_read(a_ref):
            return lambda h: a_ref[h, :, :]               # (Wp, Cin) bf16

        def make_write(a_ref, wo):
            def write(ho, val):                           # val: (Wo, Cout) f32
                a_ref[ho + 1, pl.ds(1, wo), :] = val.astype(jnp.bfloat16)
            return write

        def write_output(ho, val):
            o_ref[0, ho, :, :] = val                      # (Wo4, 1) f32

        reads = (read_input_row,) + tuple(make_read(a) for a in act_refs)
        writes = tuple(make_write(a, layer_dims[l][2])
                       for l, a in enumerate(act_refs)) + (write_output,)
        act_fns = (_leaky_relu,) * (n_layers - 1) + (_sigmoid,)

        for l in range(n_layers):
            stride, ho_n, wo_n, _cin, cout = layer_dims[l][:5]
            w_ref, b_ref, s_ref = w_refs[l], b_refs[l], s_refs[l]
            read_row, write_row, act_fn = reads[l], writes[l], act_fns[l]
            bias = b_ref[...]                             # (1, Cout) f32

            def body(r, carry, stride=stride, wo_n=wo_n, cout=cout,
                     w_ref=w_ref, s_ref=s_ref, bias=bias,
                     read_row=read_row, write_row=write_row, act_fn=act_fn):
                rows = [read_row(stride * r + ki) for ki in range(_KSIZE)]
                out = jnp.zeros((wo_n, cout), jnp.float32)
                for kj in range(_KSIZE):
                    acc = None
                    for ki in range(_KSIZE):
                        t = jnp.dot(rows[ki], w_ref[ki, kj, :, :],
                                    preferred_element_type=jnp.float32)
                        acc = t if acc is None else acc + t   # (Wp_in, Cout) f32
                    # 0/1 selection matrix picks padded input cols stride*wo+kj.
                    out = out + jnp.dot(s_ref[kj, :, :], acc,
                                        preferred_element_type=jnp.float32)
                out = act_fn(out + bias)
                write_row(r, out)
                return carry

            lax.fori_loop(0, ho_n, body, 0)

    return kernel


def init_discriminator_params(key):
    """PyTorch-default-style uniform(+-1/sqrt(fan_in)) init, NCHW weight layout."""
    params = []
    for i in range(4):
        cin, cout = _CHANNELS[i], _CHANNELS[i + 1]
        k_w, k_b = jax.random.split(jax.random.fold_in(key, i))
        fan_in = cin * _KSIZE * _KSIZE
        bound = 1.0 / (fan_in ** 0.5)
        w = jax.random.uniform(k_w, (cout, cin, _KSIZE, _KSIZE),
                               jnp.float32, -bound, bound)
        b = jax.random.uniform(k_b, (cout,), jnp.float32, -bound, bound)
        params.append((w, b))
    return params


def prepare_discriminator_params(params):
    """One-time weight re-layout: (Cout,Cin,kh,kw)->(kh,kw,Cin,Cout) bf16; bias->(1,Cout) f32."""
    prepped = []
    for w, b in params:
        wt = jnp.transpose(w, (2, 3, 1, 0)).astype(jnp.bfloat16)
        prepped.append((wt, b.reshape(1, -1).astype(jnp.float32)))
    return prepped


def _replicated_spec(shape):
    nd = len(shape)
    return pl.BlockSpec(shape, lambda i, nd=nd: (0,) * nd)


def discriminator_forward(x_nchw, prepped_params):
    N, C, H, W = x_nchw.shape
    assert C == _CHANNELS[0]
    assert H % 8 == 0 and W % 8 == 0, "spatial dims must be divisible by 8"

    # NCHW -> NHWC, zero-pad once (padding=1), bf16 MXU operand.
    x = jnp.transpose(x_nchw, (0, 2, 3, 1)).astype(jnp.float32)
    x = jnp.pad(x, ((0, 0), (_PAD, _PAD), (_PAD, _PAD), (0, 0)))
    x = x.astype(jnp.bfloat16)

    # Static per-layer geometry + stride-selection matrices (compile-time consts).
    layer_dims = []
    selections = []
    h, w = H, W
    for l, stride in enumerate(_STRIDES):
        cin, cout = _CHANNELS[l], _CHANNELS[l + 1]
        hp, wp = h + 2 * _PAD, w + 2 * _PAD
        ho, wo = _out_hw(h, stride), _out_hw(w, stride)
        layer_dims.append((stride, ho, wo, cin, cout, hp, wp))
        sel = np.zeros((_KSIZE, wo, wp), np.float32)
        for kj in range(_KSIZE):
            sel[kj, np.arange(wo), stride * np.arange(wo) + kj] = 1.0
        selections.append(jnp.asarray(sel))
        h, w = ho, wo
    ho4, wo4 = layer_dims[-1][1], layer_dims[-1][2]

    # pallas_call inputs: x, then (weights, bias, selection) per layer.
    inputs = [x]
    in_specs = [pl.BlockSpec((1,) + x.shape[1:], lambda i: (i, 0, 0, 0))]
    for (wt, b), sel in zip(prepped_params, selections):
        for arr in (wt, b, sel):
            inputs.append(arr)
            in_specs.append(_replicated_spec(arr.shape))

    out_specs = pl.BlockSpec((1, ho4, wo4, 1), lambda i: (i, 0, 0, 0))

    # Padded VMEM scratch for intermediate activations (bf16).
    scratch_shapes = [
        pltpu.VMEM((ld[1] + 2 * _PAD, ld[2] + 2 * _PAD, ld[4]), jnp.bfloat16)
        for ld in layer_dims[:-1]
    ]

    out = pl.pallas_call(
        _make_kernel(layer_dims),
        out_shape=jax.ShapeDtypeStruct((N, ho4, wo4, 1), jnp.float32),
        grid_spec=pltpu.PrefetchScalarGridSpec(
            num_scalar_prefetch=0,
            grid=(N,),
            in_specs=in_specs,
            out_specs=out_specs,
            scratch_shapes=scratch_shapes,
        ),
        compiler_params=pltpu.CompilerParams(
            dimension_semantics=("parallel",)),
    )(*inputs)

    return jnp.transpose(out, (0, 3, 1, 2))   # NCHW: (N, 1, ho4, wo4)


def _reference_forward(x_nchw, params):
    """Pure-XLA reference mirroring the kernel numerics (bf16 operands, f32 accum)."""
    x = jnp.transpose(x_nchw, (0, 2, 3, 1)).astype(jnp.bfloat16)
    y = None
    for l, ((w, b), stride) in enumerate(zip(params, _STRIDES)):
        rhs = jnp.transpose(w, (2, 3, 1, 0)).astype(jnp.bfloat16)   # HWIO
        y = lax.conv_general_dilated(
            x, rhs, window_strides=(stride, stride),
            padding=((_PAD, _PAD), (_PAD, _PAD)),
            dimension_numbers=("NHWC", "HWIO", "NHWC"),
            preferred_element_type=jnp.float32)
        y = y + b[None, None, None, :].astype(jnp.float32)
        if l < len(params) - 1:
            y = jnp.where(y >= 0.0, y, 0.2 * y)
            x = y.astype(jnp.bfloat16)
        else:
            y = jax.nn.sigmoid(y)
    return jnp.transpose(y, (0, 3, 1, 2))


if __name__ == "__main__":
    key = jax.random.PRNGKey(0)
    k_x, k_p = jax.random.split(key)

    # Small shapes consistent with the module: RGB 32x32 input, batch 2.
    x = jax.random.normal(k_x, (2, 3, 32, 32), dtype=jnp.float32)
    params = init_discriminator_params(k_p)
    prepped = prepare_discriminator_params(params)

    fwd = jax.jit(discriminator_forward)
    y = jax.block_until_ready(fwd(x, prepped))

    assert y.shape == (2, 1, 3, 3), y.shape
    assert bool(jnp.all(jnp.isfinite(y)))
    assert bool(jnp.all((y >= 0.0) & (y <= 1.0)))

    # Cross-check against a pure-XLA reference with matching bf16 numerics.
    y_ref = _reference_forward(x, params)
    max_err = float(jnp.max(jnp.abs(y - y_ref)))
    assert max_err < 3e-2, max_err

    print("KERNEL_OK")
</pallas_src>

<mosaic_0001>
module attributes {stable_mosaic.version = 11 : i64} {
  func.func @kernel(%arg0: i32, %arg1: memref<1x34x34x3xbf16, #tpu.memory_space<vmem>>, %arg2: memref<4x4x3x64xbf16, #tpu.memory_space<vmem>>, %arg3: memref<1x64xf32, #tpu.memory_space<vmem>>, %arg4: memref<4x16x34xf32, #tpu.memory_space<vmem>>, %arg5: memref<4x4x64x128xbf16, #tpu.memory_space<vmem>>, %arg6: memref<1x128xf32, #tpu.memory_space<vmem>>, %arg7: memref<4x8x18xf32, #tpu.memory_space<vmem>>, %arg8: memref<4x4x128x256xbf16, #tpu.memory_space<vmem>>, %arg9: memref<1x256xf32, #tpu.memory_space<vmem>>, %arg10: memref<4x4x10xf32, #tpu.memory_space<vmem>>, %arg11: memref<4x4x256x1xbf16, #tpu.memory_space<vmem>>, %arg12: memref<1x1xf32, #tpu.memory_space<vmem>>, %arg13: memref<4x3x6xf32, #tpu.memory_space<vmem>>, %arg14: memref<1x3x3x1xf32, #tpu.memory_space<vmem>>, %arg15: memref<18x18x64xbf16, #tpu.memory_space<vmem>>, %arg16: memref<10x10x128xbf16, #tpu.memory_space<vmem>>, %arg17: memref<6x6x256xbf16, #tpu.memory_space<vmem>>) attributes {dimension_semantics = [#tpu.dimension_semantics<parallel>], iteration_bounds = array<i64: 2>, scalar_prefetch = 0 : i64, scratch_operands = 3 : i64, tpu.core_type = #tpu.core_type<tc>, window_params = [{transform_indices = @transform_0, window_bounds = array<i64: 1, 34, 34, 3>}, {pipeline_mode = #tpu.pipeline_mode<synchronous>, transform_indices = @transform_1, window_bounds = array<i64: 4, 4, 3, 64>}, {pipeline_mode = #tpu.pipeline_mode<synchronous>, transform_indices = @transform_2, window_bounds = array<i64: 1, 64>}, {pipeline_mode = #tpu.pipeline_mode<synchronous>, transform_indices = @transform_3, window_bounds = array<i64: 4, 16, 34>}, {pipeline_mode = #tpu.pipeline_mode<synchronous>, transform_indices = @transform_4, window_bounds = array<i64: 4, 4, 64, 128>}, {pipeline_mode = #tpu.pipeline_mode<synchronous>, transform_indices = @transform_5, window_bounds = array<i64: 1, 128>}, {pipeline_mode = #tpu.pipeline_mode<synchronous>, transform_indices = @transform_6, window_bounds = array<i64: 4, 8, 18>}, {pipeline_mode = #tpu.pipeline_mode<synchronous>, transform_indices = @transform_7, window_bounds = array<i64: 4, 4, 128, 256>}, {pipeline_mode = #tpu.pipeline_mode<synchronous>, transform_indices = @transform_8, window_bounds = array<i64: 1, 256>}, {pipeline_mode = #tpu.pipeline_mode<synchronous>, transform_indices = @transform_9, window_bounds = array<i64: 4, 4, 10>}, {pipeline_mode = #tpu.pipeline_mode<synchronous>, transform_indices = @transform_10, window_bounds = array<i64: 4, 4, 256, 1>}, {pipeline_mode = #tpu.pipeline_mode<synchronous>, transform_indices = @transform_11, window_bounds = array<i64: 1, 1>}, {pipeline_mode = #tpu.pipeline_mode<synchronous>, transform_indices = @transform_12, window_bounds = array<i64: 4, 3, 6>}, {transform_indices = @transform_13, window_bounds = array<i64: 1, 3, 3, 1>}]} {
    %cst = arith.constant 0.000000e+00 : bf16
    %0 = vector.broadcast %cst : bf16 to vector<18x18x64xbf16>
    %c0 = arith.constant 0 : index
    %c0_0 = arith.constant 0 : index
    %c0_1 = arith.constant 0 : index
    %1 = vector.load %arg15[%c0, %c0_0, %c0_1] : memref<18x18x64xbf16, #tpu.memory_space<vmem>>, vector<18x18x64xbf16>
    tpu.vector_store %arg15[%c0, %c0_0, %c0_1], %0 {strides = array<i32>} : memref<18x18x64xbf16, #tpu.memory_space<vmem>>, vector<18x18x64xbf16>,
    %cst_2 = arith.constant 0.000000e+00 : bf16
    %2 = vector.broadcast %cst_2 : bf16 to vector<10x10x128xbf16>
    %c0_3 = arith.constant 0 : index
    %c0_4 = arith.constant 0 : index
    %c0_5 = arith.constant 0 : index
    %3 = vector.load %arg16[%c0_3, %c0_4, %c0_5] : memref<10x10x128xbf16, #tpu.memory_space<vmem>>, vector<10x10x128xbf16>
    tpu.vector_store %arg16[%c0_3, %c0_4, %c0_5], %2 {strides = array<i32>} : memref<10x10x128xbf16, #tpu.memory_space<vmem>>, vector<10x10x128xbf16>,
    %cst_6 = arith.constant 0.000000e+00 : bf16
    %4 = vector.broadcast %cst_6 : bf16 to vector<6x6x256xbf16>
    %c0_7 = arith.constant 0 : index
    %c0_8 = arith.constant 0 : index
    %c0_9 = arith.constant 0 : index
    %5 = vector.load %arg17[%c0_7, %c0_8, %c0_9] : memref<6x6x256xbf16, #tpu.memory_space<vmem>>, vector<6x6x256xbf16>
    tpu.vector_store %arg17[%c0_7, %c0_8, %c0_9], %4 {strides = array<i32>} : memref<6x6x256xbf16, #tpu.memory_space<vmem>>, vector<6x6x256xbf16>,
    %c0_10 = arith.constant 0 : index
    %c0_11 = arith.constant 0 : index
    %6 = vector.load %arg3[%c0_10, %c0_11] : memref<1x64xf32, #tpu.memory_space<vmem>>, vector<1x64xf32>
    %c0_i32 = arith.constant 0 : i32
    %c16_i32 = arith.constant 16 : i32
    %7 = arith.addi %c0_i32, %c16_i32 : i32
    %c1_i32 = arith.constant 1 : i32
    scf.for %arg18 = %c0_i32 to %7 step %c1_i32  : i32 {
      %c2_i32 = arith.constant 2 : i32
      %14 = arith.muli %c2_i32, %arg18 : i32
      %c0_i32_28 = arith.constant 0 : i32
      %15 = arith.addi %14, %c0_i32_28 : i32
      %c0_29 = arith.constant 0 : index
      %16 = arith.index_cast %15 : i32 to index
      %c0_30 = arith.constant 0 : index
      %c0_31 = arith.constant 0 : index
      %17 = vector.load %arg1[%c0_29, %16, %c0_30, %c0_31] : memref<1x34x34x3xbf16, #tpu.memory_space<vmem>>, vector<1x1x34x3xbf16>
      %18 = vector.shape_cast %17 : vector<1x1x34x3xbf16> to vector<34x3xbf16>
      %c2_i32_32 = arith.constant 2 : i32
      %19 = arith.muli %c2_i32_32, %arg18 : i32
      %c1_i32_33 = arith.constant 1 : i32
      %20 = arith.addi %19, %c1_i32_33 : i32
      %c0_34 = arith.constant 0 : index
      %21 = arith.index_cast %20 : i32 to index
      %c0_35 = arith.constant 0 : index
      %c0_36 = arith.constant 0 : index
      %22 = vector.load %arg1[%c0_34, %21, %c0_35, %c0_36] : memref<1x34x34x3xbf16, #tpu.memory_space<vmem>>, vector<1x1x34x3xbf16>
      %23 = vector.shape_cast %22 : vector<1x1x34x3xbf16> to vector<34x3xbf16>
      %c2_i32_37 = arith.constant 2 : i32
      %24 = arith.muli %c2_i32_37, %arg18 : i32
      %c2_i32_38 = arith.constant 2 : i32
      %25 = arith.addi %24, %c2_i32_38 : i32
      %c0_39 = arith.constant 0 : index
      %26 = arith.index_cast %25 : i32 to index
      %c0_40 = arith.constant 0 : index
      %c0_41 = arith.constant 0 : index
      %27 = vector.load %arg1[%c0_39, %26, %c0_40, %c0_41] : memref<1x34x34x3xbf16, #tpu.memory_space<vmem>>, vector<1x1x34x3xbf16>
      %28 = vector.shape_cast %27 : vector<1x1x34x3xbf16> to vector<34x3xbf16>
      %c2_i32_42 = arith.constant 2 : i32
      %29 = arith.muli %c2_i32_42, %arg18 : i32
      %c3_i32_43 = arith.constant 3 : i32
      %30 = arith.addi %29, %c3_i32_43 : i32
      %c0_44 = arith.constant 0 : index
      %31 = arith.index_cast %30 : i32 to index
      %c0_45 = arith.constant 0 : index
      %c0_46 = arith.constant 0 : index
      %32 = vector.load %arg1[%c0_44, %31, %c0_45, %c0_46] : memref<1x34x34x3xbf16, #tpu.memory_space<vmem>>, vector<1x1x34x3xbf16>
      %33 = vector.shape_cast %32 : vector<1x1x34x3xbf16> to vector<34x3xbf16>
      %cst_47 = arith.constant 0.000000e+00 : f32
      %34 = vector.broadcast %cst_47 : f32 to vector<16x64xf32>
      %c0_48 = arith.constant 0 : index
      %c0_49 = arith.constant 0 : index
      %c0_50 = arith.constant 0 : index
      %c0_51 = arith.constant 0 : index
      %35 = vector.load %arg2[%c0_48, %c0_49, %c0_50, %c0_51] : memref<4x4x3x64xbf16, #tpu.memory_space<vmem>>, vector<1x1x3x64xbf16>
      %36 = vector.shape_cast %35 : vector<1x1x3x64xbf16> to vector<3x64xbf16>
      %cst_52 = arith.constant dense<0.000000e+00> : vector<34x64xf32>
      %37 = tpu.matmul %18, %36, %cst_52 {dimension_numbers = #tpu.dot_dimension_numbers<[1], [0], [0], [1], [0, 0, 1, 1], [], []>} : vector<34x3xbf16>, vector<3x64xbf16>, vector<34x64xf32> -> vector<34x64xf32>
      %c1 = arith.constant 1 : index
      %c0_53 = arith.constant 0 : index
      %c0_54 = arith.constant 0 : index
      %c0_55 = arith.constant 0 : index
      %38 = vector.load %arg2[%c1, %c0_53, %c0_54, %c0_55] : memref<4x4x3x64xbf16, #tpu.memory_space<vmem>>, vector<1x1x3x64xbf16>
      %39 = vector.shape_cast %38 : vector<1x1x3x64xbf16> to vector<3x64xbf16>
      %cst_56 = arith.constant dense<0.000000e+00> : vector<34x64xf32>
      %40 = tpu.matmul %23, %39, %cst_56 {dimension_numbers = #tpu.dot_dimension_numbers<[1], [0], [0], [1], [0, 0, 1, 1], [], []>} : vector<34x3xbf16>, vector<3x64xbf16>, vector<34x64xf32> -> vector<34x64xf32>
      %41 = arith.addf %37, %40 : vector<34x64xf32>
      %c2 = arith.constant 2 : index
      %c0_57 = arith.constant 0 : index
      %c0_58 = arith.constant 0 : index
      %c0_59 = arith.constant 0 : index
      %42 = vector.load %arg2[%c2, %c0_57, %c0_58, %c0_59] : memref<4x4x3x64xbf16, #tpu.memory_space<vmem>>, vector<1x1x3x64xbf16>
      %43 = vector.shape_cast %42 : vector<1x1x3x64xbf16> to vector<3x64xbf16>
      %cst_60 = arith.constant dense<0.000000e+00> : vector<34x64xf32>
      %44 = tpu.matmul %28, %43, %cst_60 {dimension_numbers = #tpu.dot_dimension_numbers<[1], [0], [0], [1], [0, 0, 1, 1], [], []>} : vector<34x3xbf16>, vector<3x64xbf16>, vector<34x64xf32> -> vector<34x64xf32>
      %45 = arith.addf %41, %44 : vector<34x64xf32>
      %c3 = arith.constant 3 : index
      %c0_61 = arith.constant 0 : index
      %c0_62 = arith.constant 0 : index
      %c0_63 = arith.constant 0 : index
      %46 = vector.load %arg2[%c3, %c0_61, %c0_62, %c0_63] : memref<4x4x3x64xbf16, #tpu.memory_space<vmem>>, vector<1x1x3x64xbf16>
      %47 = vector.shape_cast %46 : vector<1x1x3x64xbf16> to vector<3x64xbf16>
      %cst_64 = arith.constant dense<0.000000e+00> : vector<34x64xf32>
      %48 = tpu.matmul %33, %47, %cst_64 {dimension_numbers = #tpu.dot_dimension_numbers<[1], [0], [0], [1], [0, 0, 1, 1], [], []>} : vector<34x3xbf16>, vector<3x64xbf16>, vector<34x64xf32> -> vector<34x64xf32>
      %49 = arith.addf %45, %48 : vector<34x64xf32>
      %c0_65 = arith.constant 0 : index
      %c0_66 = arith.constant 0 : index
      %c0_67 = arith.constant 0 : index
      %50 = vector.load %arg4[%c0_65, %c0_66, %c0_67] : memref<4x16x34xf32, #tpu.memory_space<vmem>>, vector<1x16x34xf32>
      %51 = vector.shape_cast %50 : vector<1x16x34xf32> to vector<16x34xf32>
      %cst_68 = arith.constant dense<0.000000e+00> : vector<16x64xf32>
      %52 = tpu.matmul %51, %49, %cst_68 {dimension_numbers = #tpu.dot_dimension_numbers<[1], [0], [0], [1], [0, 0, 1, 1], [], []>} : vector<16x34xf32>, vector<34x64xf32>, vector<16x64xf32> -> vector<16x64xf32>
      %53 = arith.addf %34, %52 : vector<16x64xf32>
      %c0_69 = arith.constant 0 : index
      %c1_70 = arith.constant 1 : index
      %c0_71 = arith.constant 0 : index
      %c0_72 = arith.constant 0 : index
      %54 = vector.load %arg2[%c0_69, %c1_70, %c0_71, %c0_72] : memref<4x4x3x64xbf16, #tpu.memory_space<vmem>>, vector<1x1x3x64xbf16>
      %55 = vector.shape_cast %54 : vector<1x1x3x64xbf16> to vector<3x64xbf16>
      %cst_73 = arith.constant dense<0.000000e+00> : vector<34x64xf32>
      %56 = tpu.matmul %18, %55, %cst_73 {dimension_numbers = #tpu.dot_dimension_numbers<[1], [0], [0], [1], [0, 0, 1, 1], [], []>} : vector<34x3xbf16>, vector<3x64xbf16>, vector<34x64xf32> -> vector<34x64xf32>
      %c1_74 = arith.constant 1 : index
      %c1_75 = arith.constant 1 : index
      %c0_76 = arith.constant 0 : index
      %c0_77 = arith.constant 0 : index
      %57 = vector.load %arg2[%c1_74, %c1_75, %c0_76, %c0_77] : memref<4x4x3x64xbf16, #tpu.memory_space<vmem>>, vector<1x1x3x64xbf16>
      %58 = vector.shape_cast %57 : vector<1x1x3x64xbf16> to vector<3x64xbf16>
      %cst_78 = arith.constant dense<0.000000e+00> : vector<34x64xf32>
      %59 = tpu.matmul %23, %58, %cst_78 {dimension_numbers = #tpu.dot_dimension_numbers<[1], [0], [0], [1], [0, 0, 1, 1], [], []>} : vector<34x3xbf16>, vector<3x64xbf16>, vector<34x64xf32> -> vector<34x64xf32>
      %60 = arith.addf %56, %59 : vector<34x64xf32>
      %c2_79 = arith.constant 2 : index
      %c1_80 = arith.constant 1 : index
      %c0_81 = arith.constant 0 : index
      %c0_82 = arith.constant 0 : index
      %61 = vector.load %arg2[%c2_79, %c1_80, %c0_81, %c0_82] : memref<4x4x3x64xbf16, #tpu.memory_space<vmem>>, vector<1x1x3x64xbf16>
      %62 = vector.shape_cast %61 : vector<1x1x3x64xbf16> to vector<3x64xbf16>
      %cst_83 = arith.constant dense<0.000000e+00> : vector<34x64xf32>
      %63 = tpu.matmul %28, %62, %cst_83 {dimension_numbers = #tpu.dot_dimension_numbers<[1], [0], [0], [1], [0, 0, 1, 1], [], []>} : vector<34x3xbf16>, vector<3x64xbf16>, vector<34x64xf32> -> vector<34x64xf32>
      %64 = arith.addf %60, %63 : vector<34x64xf32>
      %c3_84 = arith.constant 3 : index
      %c1_85 = arith.constant 1 : index
      %c0_86 = arith.constant 0 : index
      %c0_87 = arith.constant 0 : index
      %65 = vector.load %arg2[%c3_84, %c1_85, %c0_86, %c0_87] : memref<4x4x3x64xbf16, #tpu.memory_space<vmem>>, vector<1x1x3x64xbf16>
      %66 = vector.shape_cast %65 : vector<1x1x3x64xbf16> to vector<3x64xbf16>
      %cst_88 = arith.constant dense<0.000000e+00> : vector<34x64xf32>
      %67 = tpu.matmul %33, %66, %cst_88 {dimension_numbers = #tpu.dot_dimension_numbers<[1], [0], [0], [1], [0, 0, 1, 1], [], []>} : vector<34x3xbf16>, vector<3x64xbf16>, vector<34x64xf32> -> vector<34x64xf32>
      %68 = arith.addf %64, %67 : vector<34x64xf32>
      %c1_89 = arith.constant 1 : index
      %c0_90 = arith.constant 0 : index
      %c0_91 = arith.constant 0 : index
      %69 = vector.load %arg4[%c1_89, %c0_90, %c0_91] : memref<4x16x34xf32, #tpu.memory_space<vmem>>, vector<1x16x34xf32>
      %70 = vector.shape_cast %69 : vector<1x16x34xf32> to vector<16x34xf32>
      %cst_92 = arith.constant dense<0.000000e+00> : vector<16x64xf32>
      %71 = tpu.matmul %70, %68, %cst_92 {dimension_numbers = #tpu.dot_dimension_numbers<[1], [0], [0], [1], [0, 0, 1, 1], [], []>} : vector<16x34xf32>, vector<34x64xf32>, vector<16x64xf32> -> vector<16x64xf32>
      %72 = arith.addf %53, %71 : vector<16x64xf32>
      %c0_93 = arith.constant 0 : index
      %c2_94 = arith.constant 2 : index
      %c0_95 = arith.constant 0 : index
      %c0_96 = arith.constant 0 : index
      %73 = vector.load %arg2[%c0_93, %c2_94, %c0_95, %c0_96] : memref<4x4x3x64xbf16, #tpu.memory_space<vmem>>, vector<1x1x3x64xbf16>
      %74 = vector.shape_cast %73 : vector<1x1x3x64xbf16> to vector<3x64xbf16>
      %cst_97 = arith.constant dense<0.000000e+00> : vector<34x64xf32>
      %75 = tpu.matmul %18, %74, %cst_97 {dimension_numbers = #tpu.dot_dimension_numbers<[1], [0], [0], [1], [0, 0, 1, 1], [], []>} : vector<34x3xbf16>, vector<3x64xbf16>, vector<34x64xf32> -> vector<34x64xf32>
      %c1_98 = arith.constant 1 : index
      %c2_99 = arith.constant 2 : index
      %c0_100 = arith.constant 0 : index
      %c0_101 = arith.constant 0 : index
      %76 = vector.load %arg2[%c1_98, %c2_99, %c0_100, %c0_101] : memref<4x4x3x64xbf16, #tpu.memory_space<vmem>>, vector<1x1x3x64xbf16>
      %77 = vector.shape_cast %76 : vector<1x1x3x64xbf16> to vector<3x64xbf16>
      %cst_102 = arith.constant dense<0.000000e+00> : vector<34x64xf32>
      %78 = tpu.matmul %23, %77, %cst_102 {dimension_numbers = #tpu.dot_dimension_numbers<[1], [0], [0], [1], [0, 0, 1, 1], [], []>} : vector<34x3xbf16>, vector<3x64xbf16>, vector<34x64xf32> -> vector<34x64xf32>
      %79 = arith.addf %75, %78 : vector<34x64xf32>
      %c2_103 = arith.constant 2 : index
      %c2_104 = arith.constant 2 : index
      %c0_105 = arith.constant 0 : index
      %c0_106 = arith.constant 0 : index
      %80 = vector.load %arg2[%c2_103, %c2_104, %c0_105, %c0_106] : memref<4x4x3x64xbf16, #tpu.memory_space<vmem>>, vector<1x1x3x64xbf16>
      %81 = vector.shape_cast %80 : vector<1x1x3x64xbf16> to vector<3x64xbf16>
      %cst_107 = arith.constant dense<0.000000e+00> : vector<34x64xf32>
      %82 = tpu.matmul %28, %81, %cst_107 {dimension_numbers = #tpu.dot_dimension_numbers<[1], [0], [0], [1], [0, 0, 1, 1], [], []>} : vector<34x3xbf16>, vector<3x64xbf16>, vector<34x64xf32> -> vector<34x64xf32>
      %83 = arith.addf %79, %82 : vector<34x64xf32>
      %c3_108 = arith.constant 3 : index
      %c2_109 = arith.constant 2 : index
      %c0_110 = arith.constant 0 : index
      %c0_111 = arith.constant 0 : index
      %84 = vector.load %arg2[%c3_108, %c2_109, %c0_110, %c0_111] : memref<4x4x3x64xbf16, #tpu.memory_space<vmem>>, vector<1x1x3x64xbf16>
      %85 = vector.shape_cast %84 : vector<1x1x3x64xbf16> to vector<3x64xbf16>
      %cst_112 = arith.constant dense<0.000000e+00> : vector<34x64xf32>
      %86 = tpu.matmul %33, %85, %cst_112 {dimension_numbers = #tpu.dot_dimension_numbers<[1], [0], [0], [1], [0, 0, 1, 1], [], []>} : vector<34x3xbf16>, vector<3x64xbf16>, vector<34x64xf32> -> vector<34x64xf32>
      %87 = arith.addf %83, %86 : vector<34x64xf32>
      %c2_113 = arith.constant 2 : index
      %c0_114 = arith.constant 0 : index
      %c0_115 = arith.constant 0 : index
      %88 = vector.load %arg4[%c2_113, %c0_114, %c0_115] : memref<4x16x34xf32, #tpu.memory_space<vmem>>, vector<1x16x34xf32>
      %89 = vector.shape_cast %88 : vector<1x16x34xf32> to vector<16x34xf32>
      %cst_116 = arith.constant dense<0.000000e+00> : vector<16x64xf32>
      %90 = tpu.matmul %89, %87, %cst_116 {dimension_numbers = #tpu.dot_dimension_numbers<[1], [0], [0], [1], [0, 0, 1, 1], [], []>} : vector<16x34xf32>, vector<34x64xf32>, vector<16x64xf32> -> vector<16x64xf32>
      %91 = arith.addf %72, %90 : vector<16x64xf32>
      %c0_117 = arith.constant 0 : index
      %c3_118 = arith.constant 3 : index
      %c0_119 = arith.constant 0 : index
      %c0_120 = arith.constant 0 : index
      %92 = vector.load %arg2[%c0_117, %c3_118, %c0_119, %c0_120] : memref<4x4x3x64xbf16, #tpu.memory_space<vmem>>, vector<1x1x3x64xbf16>
      %93 = vector.shape_cast %92 : vector<1x1x3x64xbf16> to vector<3x64xbf16>
      %cst_121 = arith.constant dense<0.000000e+00> : vector<34x64xf32>
      %94 = tpu.matmul %18, %93, %cst_121 {dimension_numbers = #tpu.dot_dimension_numbers<[1], [0], [0], [1], [0, 0, 1, 1], [], []>} : vector<34x3xbf16>, vector<3x64xbf16>, vector<34x64xf32> -> vector<34x64xf32>
      %c1_122 = arith.constant 1 : index
      %c3_123 = arith.constant 3 : index
      %c0_124 = arith.constant 0 : index
      %c0_125 = arith.constant 0 : index
      %95 = vector.load %arg2[%c1_122, %c3_123, %c0_124, %c0_125] : memref<4x4x3x64xbf16, #tpu.memory_space<vmem>>, vector<1x1x3x64xbf16>
      %96 = vector.shape_cast %95 : vector<1x1x3x64xbf16> to vector<3x64xbf16>
      %cst_126 = arith.constant dense<0.000000e+00> : vector<34x64xf32>
      %97 = tpu.matmul %23, %96, %cst_126 {dimension_numbers = #tpu.dot_dimension_numbers<[1], [0], [0], [1], [0, 0, 1, 1], [], []>} : vector<34x3xbf16>, vector<3x64xbf16>, vector<34x64xf32> -> vector<34x64xf32>
      %98 = arith.addf %94, %97 : vector<34x64xf32>
      %c2_127 = arith.constant 2 : index
      %c3_128 = arith.constant 3 : index
      %c0_129 = arith.constant 0 : index
      %c0_130 = arith.constant 0 : index
      %99 = vector.load %arg2[%c2_127, %c3_128, %c0_129, %c0_130] : memref<4x4x3x64xbf16, #tpu.memory_space<vmem>>, vector<1x1x3x64xbf16>
      %100 = vector.shape_cast %99 : vector<1x1x3x64xbf16> to vector<3x64xbf16>
      %cst_131 = arith.constant dense<0.000000e+00> : vector<34x64xf32>
      %101 = tpu.matmul %28, %100, %cst_131 {dimension_numbers = #tpu.dot_dimension_numbers<[1], [0], [0], [1], [0, 0, 1, 1], [], []>} : vector<34x3xbf16>, vector<3x64xbf16>, vector<34x64xf32> -> vector<34x64xf32>
      %102 = arith.addf %98, %101 : vector<34x64xf32>
      %c3_132 = arith.constant 3 : index
      %c3_133 = arith.constant 3 : index
      %c0_134 = arith.constant 0 : index
      %c0_135 = arith.constant 0 : index
      %103 = vector.load %arg2[%c3_132, %c3_133, %c0_134, %c0_135] : memref<4x4x3x64xbf16, #tpu.memory_space<vmem>>, vector<1x1x3x64xbf16>
      %104 = vector.shape_cast %103 : vector<1x1x3x64xbf16> to vector<3x64xbf16>
      %cst_136 = arith.constant dense<0.000000e+00> : vector<34x64xf32>
      %105 = tpu.matmul %33, %104, %cst_136 {dimension_numbers = #tpu.dot_dimension_numbers<[1], [0], [0], [1], [0, 0, 1, 1], [], []>} : vector<34x3xbf16>, vector<3x64xbf16>, vector<34x64xf32> -> vector<34x64xf32>
      %106 = arith.addf %102, %105 : vector<34x64xf32>
      %c3_137 = arith.constant 3 : index
      %c0_138 = arith.constant 0 : index
      %c0_139 = arith.constant 0 : index
      %107 = vector.load %arg4[%c3_137, %c0_138, %c0_139] : memref<4x16x34xf32, #tpu.memory_space<vmem>>, vector<1x16x34xf32>
      %108 = vector.shape_cast %107 : vector<1x16x34xf32> to vector<16x34xf32>
      %cst_140 = arith.constant dense<0.000000e+00> : vector<16x64xf32>
      %109 = tpu.matmul %108, %106, %cst_140 {dimension_numbers = #tpu.dot_dimension_numbers<[1], [0], [0], [1], [0, 0, 1, 1], [], []>} : vector<16x34xf32>, vector<34x64xf32>, vector<16x64xf32> -> vector<16x64xf32>
      %110 = arith.addf %91, %109 : vector<16x64xf32>
      %111 = vector.broadcast %6 : vector<1x64xf32> to vector<16x64xf32>
      %112 = arith.addf %110, %111 : vector<16x64xf32>
      %cst_141 = arith.constant 0.000000e+00 : f32
      %113 = vector.broadcast %cst_141 : f32 to vector<16x64xf32>
      %114 = arith.cmpf oge, %112, %113 : vector<16x64xf32>
      %cst_142 = arith.constant 2.000000e-01 : f32
      %115 = vector.broadcast %cst_142 : f32 to vector<16x64xf32>
      %116 = arith.mulf %115, %112 : vector<16x64xf32>
      %117 = arith.select %114, %112, %116 : vector<16x64xi1>, vector<16x64xf32>
      %118 = arith.truncf %117 : vector<16x64xf32> to vector<16x64xbf16>
      %c1_i32_143 = arith.constant 1 : i32
      %119 = arith.addi %arg18, %c1_i32_143 : i32
      %120 = arith.index_cast %119 : i32 to index
      %c1_144 = arith.constant 1 : index
      %c0_145 = arith.constant 0 : index
      %121 = vector.load %arg15[%120, %c1_144, %c0_145] : memref<18x18x64xbf16, #tpu.memory_space<vmem>>, vector<1x16x64xbf16>
      %122 = vector.shape_cast %121 : vector<1x16x64xbf16> to vector<16x64xbf16>
      %123 = vector.shape_cast %118 : vector<16x64xbf16> to vector<1x16x64xbf16>
      tpu.vector_store %arg15[%120, %c1_144, %c0_145], %123 {strides = array<i32>} : memref<18x18x64xbf16, #tpu.memory_space<vmem>>, vector<1x16x64xbf16>,
    }
    %c16_i32_12 = arith.constant 16 : i32
    %c0_13 = arith.constant 0 : index
    %c0_14 = arith.constant 0 : index
    %8 = vector.load %arg6[%c0_13, %c0_14] : memref<1x128xf32, #tpu.memory_space<vmem>>, vector<1x128xf32>
    %c0_i32_15 = arith.constant 0 : i32
    %c8_i32 = arith.constant 8 : i32
    %9 = arith.addi %c0_i32_15, %c8_i32 : i32
    %c1_i32_16 = arith.constant 1 : i32
    scf.for %arg18 = %c0_i32_15 to %9 step %c1_i32_16  : i32 {
      %c2_i32 = arith.constant 2 : i32
      %14 = arith.muli %c2_i32, %arg18 : i32
      %c0_i32_28 = arith.constant 0 : i32
      %15 = arith.addi %14, %c0_i32_28 : i32
      %16 = arith.index_cast %15 : i32 to index
      %c0_29 = arith.constant 0 : index
      %c0_30 = arith.constant 0 : index
      %17 = vector.load %arg15[%16, %c0_29, %c0_30] : memref<18x18x64xbf16, #tpu.memory_space<vmem>>, vector<1x18x64xbf16>
      %18 = vector.shape_cast %17 : vector<1x18x64xbf16> to vector<18x64xbf16>
      %c2_i32_31 = arith.constant 2 : i32
      %19 = arith.muli %c2_i32_31, %arg18 : i32
      %c1_i32_32 = arith.constant 1 : i32
      %20 = arith.addi %19, %c1_i32_32 : i32
      %21 = arith.index_cast %20 : i32 to index
      %c0_33 = arith.constant 0 : index
      %c0_34 = arith.constant 0 : index
      %22 = vector.load %arg15[%21, %c0_33, %c0_34] : memref<18x18x64xbf16, #tpu.memory_space<vmem>>, vector<1x18x64xbf16>
      %23 = vector.shape_cast %22 : vector<1x18x64xbf16> to vector<18x64xbf16>
      %c2_i32_35 = arith.constant 2 : i32
      %24 = arith.muli %c2_i32_35, %arg18 : i32
      %c2_i32_36 = arith.constant 2 : i32
      %25 = arith.addi %24, %c2_i32_36 : i32
      %26 = arith.index_cast %25 : i32 to index
      %c0_37 = arith.constant 0 : index
      %c0_38 = arith.constant 0 : index
      %27 = vector.load %arg15[%26, %c0_37, %c0_38] : memref<18x18x64xbf16, #tpu.memory_space<vmem>>, vector<1x18x64xbf16>
      %28 = vector.shape_cast %27 : vector<1x18x64xbf16> to vector<18x64xbf16>
      %c2_i32_39 = arith.constant 2 : i32
      %29 = arith.muli %c2_i32_39, %arg18 : i32
      %c3_i32_40 = arith.constant 3 : i32
      %30 = arith.addi %29, %c3_i32_40 : i32
      %31 = arith.index_cast %30 : i32 to index
      %c0_41 = arith.constant 0 : index
      %c0_42 = arith.constant 0 : index
      %32 = vector.load %arg15[%31, %c0_41, %c0_42] : memref<18x18x64xbf16, #tpu.memory_space<vmem>>, vector<1x18x64xbf16>
      %33 = vector.shape_cast %32 : vector<1x18x64xbf16> to vector<18x64xbf16>
      %cst_43 = arith.constant 0.000000e+00 : f32
      %34 = vector.broadcast %cst_43 : f32 to vector<8x128xf32>
      %c0_44 = arith.constant 0 : index
      %c0_45 = arith.constant 0 : index
      %c0_46 = arith.constant 0 : index
      %c0_47 = arith.constant 0 : index
      %35 = vector.load %arg5[%c0_44, %c0_45, %c0_46, %c0_47] : memref<4x4x64x128xbf16, #tpu.memory_space<vmem>>, vector<1x1x64x128xbf16>
      %36 = vector.shape_cast %35 : vector<1x1x64x128xbf16> to vector<64x128xbf16>
      %cst_48 = arith.constant dense<0.000000e+00> : vector<18x128xf32>
      %37 = tpu.matmul %18, %36, %cst_48 {dimension_numbers = #tpu.dot_dimension_numbers<[1], [0], [0], [1], [0, 0, 1, 1], [], []>} : vector<18x64xbf16>, vector<64x128xbf16>, vector<18x128xf32> -> vector<18x128xf32>
      %c1 = arith.constant 1 : index
      %c0_49 = arith.constant 0 : index
      %c0_50 = arith.constant 0 : index
      %c0_51 = arith.constant 0 : index
      %38 = vector.load %arg5[%c1, %c0_49, %c0_50, %c0_51] : memref<4x4x64x128xbf16, #tpu.memory_space<vmem>>, vector<1x1x64x128xbf16>
      %39 = vector.shape_cast %38 : vector<1x1x64x128xbf16> to vector<64x128xbf16>
      %cst_52 = arith.constant dense<0.000000e+00> : vector<18x128xf32>
      %40 = tpu.matmul %23, %39, %cst_52 {dimension_numbers = #tpu.dot_dimension_numbers<[1], [0], [0], [1], [0, 0, 1, 1], [], []>} : vector<18x64xbf16>, vector<64x128xbf16>, vector<18x128xf32> -> vector<18x128xf32>
      %41 = arith.addf %37, %40 : vector<18x128xf32>
      %c2 = arith.constant 2 : index
      %c0_53 = arith.constant 0 : index
      %c0_54 = arith.constant 0 : index
      %c0_55 = arith.constant 0 : index
      %42 = vector.load %arg5[%c2, %c0_53, %c0_54, %c0_55] : memref<4x4x64x128xbf16, #tpu.memory_space<vmem>>, vector<1x1x64x128xbf16>
      %43 = vector.shape_cast %42 : vector<1x1x64x128xbf16> to vector<64x128xbf16>
      %cst_56 = arith.constant dense<0.000000e+00> : vector<18x128xf32>
      %44 = tpu.matmul %28, %43, %cst_56 {dimension_numbers = #tpu.dot_dimension_numbers<[1], [0], [0], [1], [0, 0, 1, 1], [], []>} : vector<18x64xbf16>, vector<64x128xbf16>, vector<18x128xf32> -> vector<18x128xf32>
      %45 = arith.addf %41, %44 : vector<18x128xf32>
      %c3 = arith.constant 3 : index
      %c0_57 = arith.constant 0 : index
      %c0_58 = arith.constant 0 : index
      %c0_59 = arith.constant 0 : index
      %46 = vector.load %arg5[%c3, %c0_57, %c0_58, %c0_59] : memref<4x4x64x128xbf16, #tpu.memory_space<vmem>>, vector<1x1x64x128xbf16>
      %47 = vector.shape_cast %46 : vector<1x1x64x128xbf16> to vector<64x128xbf16>
      %cst_60 = arith.constant dense<0.000000e+00> : vector<18x128xf32>
      %48 = tpu.matmul %33, %47, %cst_60 {dimension_numbers = #tpu.dot_dimension_numbers<[1], [0], [0], [1], [0, 0, 1, 1], [], []>} : vector<18x64xbf16>, vector<64x128xbf16>, vector<18x128xf32> -> vector<18x128xf32>
      %49 = arith.addf %45, %48 : vector<18x128xf32>
      %c0_61 = arith.constant 0 : index
      %c0_62 = arith.constant 0 : index
      %c0_63 = arith.constant 0 : index
      %50 = vector.load %arg7[%c0_61, %c0_62, %c0_63] : memref<4x8x18xf32, #tpu.memory_space<vmem>>, vector<1x8x18xf32>
      %51 = vector.shape_cast %50 : vector<1x8x18xf32> to vector<8x18xf32>
      %cst_64 = arith.constant dense<0.000000e+00> : vector<8x128xf32>
      %52 = tpu.matmul %51, %49, %cst_64 {dimension_numbers = #tpu.dot_dimension_numbers<[1], [0], [0], [1], [0, 0, 1, 1], [], []>} : vector<8x18xf32>, vector<18x128xf32>, vector<8x128xf32> -> vector<8x128xf32>
      %53 = arith.addf %34, %52 : vector<8x128xf32>
      %c0_65 = arith.constant 0 : index
      %c1_66 = arith.constant 1 : index
      %c0_67 = arith.constant 0 : index
      %c0_68 = arith.constant 0 : index
      %54 = vector.load %arg5[%c0_65, %c1_66, %c0_67, %c0_68] : memref<4x4x64x128xbf16, #tpu.memory_space<vmem>>, vector<1x1x64x128xbf16>
      %55 = vector.shape_cast %54 : vector<1x1x64x128xbf16> to vector<64x128xbf16>
      %cst_69 = arith.constant dense<0.000000e+00> : vector<18x128xf32>
      %56 = tpu.matmul %18, %55, %cst_69 {dimension_numbers = #tpu.dot_dimension_numbers<[1], [0], [0], [1], [0, 0, 1, 1], [], []>} : vector<18x64xbf16>, vector<64x128xbf16>, vector<18x128xf32> -> vector<18x128xf32>
      %c1_70 = arith.constant 1 : index
      %c1_71 = arith.constant 1 : index
      %c0_72 = arith.constant 0 : index
      %c0_73 = arith.constant 0 : index
      %57 = vector.load %arg5[%c1_70, %c1_71, %c0_72, %c0_73] : memref<4x4x64x128xbf16, #tpu.memory_space<vmem>>, vector<1x1x64x128xbf16>
      %58 = vector.shape_cast %57 : vector<1x1x64x128xbf16> to vector<64x128xbf16>
      %cst_74 = arith.constant dense<0.000000e+00> : vector<18x128xf32>
      %59 = tpu.matmul %23, %58, %cst_74 {dimension_numbers = #tpu.dot_dimension_numbers<[1], [0], [0], [1], [0, 0, 1, 1], [], []>} : vector<18x64xbf16>, vector<64x128xbf16>, vector<18x128xf32> -> vector<18x128xf32>
      %60 = arith.addf %56, %59 : vector<18x128xf32>
      %c2_75 = arith.constant 2 : index
      %c1_76 = arith.constant 1 : index
      %c0_77 = arith.constant 0 : index
      %c0_78 = arith.constant 0 : index
      %61 = vector.load %arg5[%c2_75, %c1_76, %c0_77, %c0_78] : memref<4x4x64x128xbf16, #tpu.memory_space<vmem>>, vector<1x1x64x128xbf16>
      %62 = vector.shape_cast %61 : vector<1x1x64x128xbf16> to vector<64x128xbf16>
      %cst_79 = arith.constant dense<0.000000e+00> : vector<18x128xf32>
      %63 = tpu.matmul %28, %62, %cst_79 {dimension_numbers = #tpu.dot_dimension_numbers<[1], [0], [0], [1], [0, 0, 1, 1], [], []>} : vector<18x64xbf16>, vector<64x128xbf16>, vector<18x128xf32> -> vector<18x128xf32>
      %64 = arith.addf %60, %63 : vector<18x128xf32>
      %c3_80 = arith.constant 3 : index
      %c1_81 = arith.constant 1 : index
      %c0_82 = arith.constant 0 : index
      %c0_83 = arith.constant 0 : index
      %65 = vector.load %arg5[%c3_80, %c1_81, %c0_82, %c0_83] : memref<4x4x64x128xbf16, #tpu.memory_space<vmem>>, vector<1x1x64x128xbf16>
      %66 = vector.shape_cast %65 : vector<1x1x64x128xbf16> to vector<64x128xbf16>
      %cst_84 = arith.constant dense<0.000000e+00> : vector<18x128xf32>
      %67 = tpu.matmul %33, %66, %cst_84 {dimension_numbers = #tpu.dot_dimension_numbers<[1], [0], [0], [1], [0, 0, 1, 1], [], []>} : vector<18x64xbf16>, vector<64x128xbf16>, vector<18x128xf32> -> vector<18x128xf32>
      %68 = arith.addf %64, %67 : vector<18x128xf32>
      %c1_85 = arith.constant 1 : index
      %c0_86 = arith.constant 0 : index
      %c0_87 = arith.constant 0 : index
      %69 = vector.load %arg7[%c1_85, %c0_86, %c0_87] : memref<4x8x18xf32, #tpu.memory_space<vmem>>, vector<1x8x18xf32>
      %70 = vector.shape_cast %69 : vector<1x8x18xf32> to vector<8x18xf32>
      %cst_88 = arith.constant dense<0.000000e+00> : vector<8x128xf32>
      %71 = tpu.matmul %70, %68, %cst_88 {dimension_numbers = #tpu.dot_dimension_numbers<[1], [0], [0], [1], [0, 0, 1, 1], [], []>} : vector<8x18xf32>, vector<18x128xf32>, vector<8x128xf32> -> vector<8x128xf32>
      %72 = arith.addf %53, %71 : vector<8x128xf32>
      %c0_89 = arith.constant 0 : index
      %c2_90 = arith.constant 2 : index
      %c0_91 = arith.constant 0 : index
      %c0_92 = arith.constant 0 : index
      %73 = vector.load %arg5[%c0_89, %c2_90, %c0_91, %c0_92] : memref<4x4x64x128xbf16, #tpu.memory_space<vmem>>, vector<1x1x64x128xbf16>
      %74 = vector.shape_cast %73 : vector<1x1x64x128xbf16> to vector<64x128xbf16>
      %cst_93 = arith.constant dense<0.000000e+00> : vector<18x128xf32>
      %75 = tpu.matmul %18, %74, %cst_93 {dimension_numbers = #tpu.dot_dimension_numbers<[1], [0], [0], [1], [0, 0, 1, 1], [], []>} : vector<18x64xbf16>, vector<64x128xbf16>, vector<18x128xf32> -> vector<18x128xf32>
      %c1_94 = arith.constant 1 : index
      %c2_95 = arith.constant 2 : index
      %c0_96 = arith.constant 0 : index
      %c0_97 = arith.constant 0 : index
      %76 = vector.load %arg5[%c1_94, %c2_95, %c0_96, %c0_97] : memref<4x4x64x128xbf16, #tpu.memory_space<vmem>>, vector<1x1x64x128xbf16>
      %77 = vector.shape_cast %76 : vector<1x1x64x128xbf16> to vector<64x128xbf16>
      %cst_98 = arith.constant dense<0.000000e+00> : vector<18x128xf32>
      %78 = tpu.matmul %23, %77, %cst_98 {dimension_numbers = #tpu.dot_dimension_numbers<[1], [0], [0], [1], [0, 0, 1, 1], [], []>} : vector<18x64xbf16>, vector<64x128xbf16>, vector<18x128xf32> -> vector<18x128xf32>
      %79 = arith.addf %75, %78 : vector<18x128xf32>
      %c2_99 = arith.constant 2 : index
      %c2_100 = arith.constant 2 : index
      %c0_101 = arith.constant 0 : index
      %c0_102 = arith.constant 0 : index
      %80 = vector.load %arg5[%c2_99, %c2_100, %c0_101, %c0_102] : memref<4x4x64x128xbf16, #tpu.memory_space<vmem>>, vector<1x1x64x128xbf16>
      %81 = vector.shape_cast %80 : vector<1x1x64x128xbf16> to vector<64x128xbf16>
      %cst_103 = arith.constant dense<0.000000e+00> : vector<18x128xf32>
      %82 = tpu.matmul %28, %81, %cst_103 {dimension_numbers = #tpu.dot_dimension_numbers<[1], [0], [0], [1], [0, 0, 1, 1], [], []>} : vector<18x64xbf16>, vector<64x128xbf16>, vector<18x128xf32> -> vector<18x128xf32>
      %83 = arith.addf %79, %82 : vector<18x128xf32>
      %c3_104 = arith.constant 3 : index
      %c2_105 = arith.constant 2 : index
      %c0_106 = arith.constant 0 : index
      %c0_107 = arith.constant 0 : index
      %84 = vector.load %arg5[%c3_104, %c2_105, %c0_106, %c0_107] : memref<4x4x64x128xbf16, #tpu.memory_space<vmem>>, vector<1x1x64x128xbf16>
      %85 = vector.shape_cast %84 : vector<1x1x64x128xbf16> to vector<64x128xbf16>
      %cst_108 = arith.constant dense<0.000000e+00> : vector<18x128xf32>
      %86 = tpu.matmul %33, %85, %cst_108 {dimension_numbers = #tpu.dot_dimension_numbers<[1], [0], [0], [1], [0, 0, 1, 1], [], []>} : vector<18x64xbf16>, vector<64x128xbf16>, vector<18x128xf32> -> vector<18x128xf32>
      %87 = arith.addf %83, %86 : vector<18x128xf32>
      %c2_109 = arith.constant 2 : index
      %c0_110 = arith.constant 0 : index
      %c0_111 = arith.constant 0 : index
      %88 = vector.load %arg7[%c2_109, %c0_110, %c0_111] : memref<4x8x18xf32, #tpu.memory_space<vmem>>, vector<1x8x18xf32>
      %89 = vector.shape_cast %88 : vector<1x8x18xf32> to vector<8x18xf32>
      %cst_112 = arith.constant dense<0.000000e+00> : vector<8x128xf32>
      %90 = tpu.matmul %89, %87, %cst_112 {dimension_numbers = #tpu.dot_dimension_numbers<[1], [0], [0], [1], [0, 0, 1, 1], [], []>} : vector<8x18xf32>, vector<18x128xf32>, vector<8x128xf32> -> vector<8x128xf32>
      %91 = arith.addf %72, %90 : vector<8x128xf32>
      %c0_113 = arith.constant 0 : index
      %c3_114 = arith.constant 3 : index
      %c0_115 = arith.constant 0 : index
      %c0_116 = arith.constant 0 : index
      %92 = vector.load %arg5[%c0_113, %c3_114, %c0_115, %c0_116] : memref<4x4x64x128xbf16, #tpu.memory_space<vmem>>, vector<1x1x64x128xbf16>
      %93 = vector.shape_cast %92 : vector<1x1x64x128xbf16> to vector<64x128xbf16>
      %cst_117 = arith.constant dense<0.000000e+00> : vector<18x128xf32>
      %94 = tpu.matmul %18, %93, %cst_117 {dimension_numbers = #tpu.dot_dimension_numbers<[1], [0], [0], [1], [0, 0, 1, 1], [], []>} : vector<18x64xbf16>, vector<64x128xbf16>, vector<18x128xf32> -> vector<18x128xf32>
      %c1_118 = arith.constant 1 : index
      %c3_119 = arith.constant 3 : index
      %c0_120 = arith.constant 0 : index
      %c0_121 = arith.constant 0 : index
      %95 = vector.load %arg5[%c1_118, %c3_119, %c0_120, %c0_121] : memref<4x4x64x128xbf16, #tpu.memory_space<vmem>>, vector<1x1x64x128xbf16>
      %96 = vector.shape_cast %95 : vector<1x1x64x128xbf16> to vector<64x128xbf16>
      %cst_122 = arith.constant dense<0.000000e+00> : vector<18x128xf32>
      %97 = tpu.matmul %23, %96, %cst_122 {dimension_numbers = #tpu.dot_dimension_numbers<[1], [0], [0], [1], [0, 0, 1, 1], [], []>} : vector<18x64xbf16>, vector<64x128xbf16>, vector<18x128xf32> -> vector<18x128xf32>
      %98 = arith.addf %94, %97 : vector<18x128xf32>
      %c2_123 = arith.constant 2 : index
      %c3_124 = arith.constant 3 : index
      %c0_125 = arith.constant 0 : index
      %c0_126 = arith.constant 0 : index
      %99 = vector.load %arg5[%c2_123, %c3_124, %c0_125, %c0_126] : memref<4x4x64x128xbf16, #tpu.memory_space<vmem>>, vector<1x1x64x128xbf16>
      %100 = vector.shape_cast %99 : vector<1x1x64x128xbf16> to vector<64x128xbf16>
      %cst_127 = arith.constant dense<0.000000e+00> : vector<18x128xf32>
      %101 = tpu.matmul %28, %100, %cst_127 {dimension_numbers = #tpu.dot_dimension_numbers<[1], [0], [0], [1], [0, 0, 1, 1], [], []>} : vector<18x64xbf16>, vector<64x128xbf16>, vector<18x128xf32> -> vector<18x128xf32>
      %102 = arith.addf %98, %101 : vector<18x128xf32>
      %c3_128 = arith.constant 3 : index
      %c3_129 = arith.constant 3 : index
      %c0_130 = arith.constant 0 : index
      %c0_131 = arith.constant 0 : index
      %103 = vector.load %arg5[%c3_128, %c3_129, %c0_130, %c0_131] : memref<4x4x64x128xbf16, #tpu.memory_space<vmem>>, vector<1x1x64x128xbf16>
      %104 = vector.shape_cast %103 : vector<1x1x64x128xbf16> to vector<64x128xbf16>
      %cst_132 = arith.constant dense<0.000000e+00> : vector<18x128xf32>
      %105 = tpu.matmul %33, %104, %cst_132 {dimension_numbers = #tpu.dot_dimension_numbers<[1], [0], [0], [1], [0, 0, 1, 1], [], []>} : vector<18x64xbf16>, vector<64x128xbf16>, vector<18x128xf32> -> vector<18x128xf32>
      %106 = arith.addf %102, %105 : vector<18x128xf32>
      %c3_133 = arith.constant 3 : index
      %c0_134 = arith.constant 0 : index
      %c0_135 = arith.constant 0 : index
      %107 = vector.load %arg7[%c3_133, %c0_134, %c0_135] : memref<4x8x18xf32, #tpu.memory_space<vmem>>, vector<1x8x18xf32>
      %108 = vector.shape_cast %107 : vector<1x8x18xf32> to vector<8x18xf32>
      %cst_136 = arith.constant dense<0.000000e+00> : vector<8x128xf32>
      %109 = tpu.matmul %108, %106, %cst_136 {dimension_numbers = #tpu.dot_dimension_numbers<[1], [0], [0], [1], [0, 0, 1, 1], [], []>} : vector<8x18xf32>, vector<18x128xf32>, vector<8x128xf32> -> vector<8x128xf32>
      %110 = arith.addf %91, %109 : vector<8x128xf32>
      %111 = vector.broadcast %8 : vector<1x128xf32> to vector<8x128xf32>
      %112 = arith.addf %110, %111 : vector<8x128xf32>
      %cst_137 = arith.constant 0.000000e+00 : f32
      %113 = vector.broadcast %cst_137 : f32 to vector<8x128xf32>
      %114 = arith.cmpf oge, %112, %113 : vector<8x128xf32>
      %cst_138 = arith.constant 2.000000e-01 : f32
      %115 = vector.broadcast %cst_138 : f32 to vector<8x128xf32>
      %116 = arith.mulf %115, %112 : vector<8x128xf32>
      %117 = arith.select %114, %112, %116 : vector<8x128xi1>, vector<8x128xf32>
      %118 = arith.truncf %117 : vector<8x128xf32> to vector<8x128xbf16>
      %c1_i32_139 = arith.constant 1 : i32
      %119 = arith.addi %arg18, %c1_i32_139 : i32
      %120 = arith.index_cast %119 : i32 to index
      %c1_140 = arith.constant 1 : index
      %c0_141 = arith.constant 0 : index
      %121 = vector.load %arg16[%120, %c1_140, %c0_141] : memref<10x10x128xbf16, #tpu.memory_space<vmem>>, vector<1x8x128xbf16>
      %122 = vector.shape_cast %121 : vector<1x8x128xbf16> to vector<8x128xbf16>
      %123 = vector.shape_cast %118 : vector<8x128xbf16> to vector<1x8x128xbf16>
      tpu.vector_store %arg16[%120, %c1_140, %c0_141], %123 {strides = array<i32>} : memref<10x10x128xbf16, #tpu.memory_space<vmem>>, vector<1x8x128xbf16>,
    }
    %c8_i32_17 = arith.constant 8 : i32
    %c0_18 = arith.constant 0 : index
    %c0_19 = arith.constant 0 : index
    %10 = vector.load %arg9[%c0_18, %c0_19] : memref<1x256xf32, #tpu.memory_space<vmem>>, vector<1x256xf32>
    %c0_i32_20 = arith.constant 0 : i32
    %c4_i32 = arith.constant 4 : i32
    %11 = arith.addi %c0_i32_20, %c4_i32 : i32
    %c1_i32_21 = arith.constant 1 : i32
    scf.for %arg18 = %c0_i32_20 to %11 step %c1_i32_21  : i32 {
      %c2_i32 = arith.constant 2 : i32
      %14 = arith.muli %c2_i32, %arg18 : i32
      %c0_i32_28 = arith.constant 0 : i32
      %15 = arith.addi %14, %c0_i32_28 : i32
      %16 = arith.index_cast %15 : i32 to index
      %c0_29 = arith.constant 0 : index
      %c0_30 = arith.constant 0 : index
      %17 = vector.load %arg16[%16, %c0_29, %c0_30] : memref<10x10x128xbf16, #tpu.memory_space<vmem>>, vector<1x10x128xbf16>
      %18 = vector.shape_cast %17 : vector<1x10x128xbf16> to vector<10x128xbf16>
      %c2_i32_31 = arith.constant 2 : i32
      %19 = arith.muli %c2_i32_31, %arg18 : i32
      %c1_i32_32 = arith.constant 1 : i32
      %20 = arith.addi %19, %c1_i32_32 : i32
      %21 = arith.index_cast %20 : i32 to index
      %c0_33 = arith.constant 0 : index
      %c0_34 = arith.constant 0 : index
      %22 = vector.load %arg16[%21, %c0_33, %c0_34] : memref<10x10x128xbf16, #tpu.memory_space<vmem>>, vector<1x10x128xbf16>
      %23 = vector.shape_cast %22 : vector<1x10x128xbf16> to vector<10x128xbf16>
      %c2_i32_35 = arith.constant 2 : i32
      %24 = arith.muli %c2_i32_35, %arg18 : i32
      %c2_i32_36 = arith.constant 2 : i32
      %25 = arith.addi %24, %c2_i32_36 : i32
      %26 = arith.index_cast %25 : i32 to index
      %c0_37 = arith.constant 0 : index
      %c0_38 = arith.constant 0 : index
      %27 = vector.load %arg16[%26, %c0_37, %c0_38] : memref<10x10x128xbf16, #tpu.memory_space<vmem>>, vector<1x10x128xbf16>
      %28 = vector.shape_cast %27 : vector<1x10x128xbf16> to vector<10x128xbf16>
      %c2_i32_39 = arith.constant 2 : i32
      %29 = arith.muli %c2_i32_39, %arg18 : i32
      %c3_i32_40 = arith.constant 3 : i32
      %30 = arith.addi %29, %c3_i32_40 : i32
      %31 = arith.index_cast %30 : i32 to index
      %c0_41 = arith.constant 0 : index
      %c0_42 = arith.constant 0 : index
      %32 = vector.load %arg16[%31, %c0_41, %c0_42] : memref<10x10x128xbf16, #tpu.memory_space<vmem>>, vector<1x10x128xbf16>
      %33 = vector.shape_cast %32 : vector<1x10x128xbf16> to vector<10x128xbf16>
      %cst_43 = arith.constant 0.000000e+00 : f32
      %34 = vector.broadcast %cst_43 : f32 to vector<4x256xf32>
      %c0_44 = arith.constant 0 : index
      %c0_45 = arith.constant 0 : index
      %c0_46 = arith.constant 0 : index
      %c0_47 = arith.constant 0 : index
      %35 = vector.load %arg8[%c0_44, %c0_45, %c0_46, %c0_47] : memref<4x4x128x256xbf16, #tpu.memory_space<vmem>>, vector<1x1x128x256xbf16>
      %36 = vector.shape_cast %35 : vector<1x1x128x256xbf16> to vector<128x256xbf16>
      %cst_48 = arith.constant dense<0.000000e+00> : vector<10x256xf32>
      %37 = tpu.matmul %18, %36, %cst_48 {dimension_numbers = #tpu.dot_dimension_numbers<[1], [0], [0], [1], [0, 0, 1, 1], [], []>} : vector<10x128xbf16>, vector<128x256xbf16>, vector<10x256xf32> -> vector<10x256xf32>
      %c1 = arith.constant 1 : index
      %c0_49 = arith.constant 0 : index
      %c0_50 = arith.constant 0 : index
      %c0_51 = arith.constant 0 : index
      %38 = vector.load %arg8[%c1, %c0_49, %c0_50, %c0_51] : memref<4x4x128x256xbf16, #tpu.memory_space<vmem>>, vector<1x1x128x256xbf16>
      %39 = vector.shape_cast %38 : vector<1x1x128x256xbf16> to vector<128x256xbf16>
      %cst_52 = arith.constant dense<0.000000e+00> : vector<10x256xf32>
      %40 = tpu.matmul %23, %39, %cst_52 {dimension_numbers = #tpu.dot_dimension_numbers<[1], [0], [0], [1], [0, 0, 1, 1], [], []>} : vector<10x128xbf16>, vector<128x256xbf16>, vector<10x256xf32> -> vector<10x256xf32>
      %41 = arith.addf %37, %40 : vector<10x256xf32>
      %c2 = arith.constant 2 : index
      %c0_53 = arith.constant 0 : index
      %c0_54 = arith.constant 0 : index
      %c0_55 = arith.constant 0 : index
      %42 = vector.load %arg8[%c2, %c0_53, %c0_54, %c0_55] : memref<4x4x128x256xbf16, #tpu.memory_space<vmem>>, vector<1x1x128x256xbf16>
      %43 = vector.shape_cast %42 : vector<1x1x128x256xbf16> to vector<128x256xbf16>
      %cst_56 = arith.constant dense<0.000000e+00> : vector<10x256xf32>
      %44 = tpu.matmul %28, %43, %cst_56 {dimension_numbers = #tpu.dot_dimension_numbers<[1], [0], [0], [1], [0, 0, 1, 1], [], []>} : vector<10x128xbf16>, vector<128x256xbf16>, vector<10x256xf32> -> vector<10x256xf32>
      %45 = arith.addf %41, %44 : vector<10x256xf32>
      %c3 = arith.constant 3 : index
      %c0_57 = arith.constant 0 : index
      %c0_58 = arith.constant 0 : index
      %c0_59 = arith.constant 0 : index
      %46 = vector.load %arg8[%c3, %c0_57, %c0_58, %c0_59] : memref<4x4x128x256xbf16, #tpu.memory_space<vmem>>, vector<1x1x128x256xbf16>
      %47 = vector.shape_cast %46 : vector<1x1x128x256xbf16> to vector<128x256xbf16>
      %cst_60 = arith.constant dense<0.000000e+00> : vector<10x256xf32>
      %48 = tpu.matmul %33, %47, %cst_60 {dimension_numbers = #tpu.dot_dimension_numbers<[1], [0], [0], [1], [0, 0, 1, 1], [], []>} : vector<10x128xbf16>, vector<128x256xbf16>, vector<10x256xf32> -> vector<10x256xf32>
      %49 = arith.addf %45, %48 : vector<10x256xf32>
      %c0_61 = arith.constant 0 : index
      %c0_62 = arith.constant 0 : index
      %c0_63 = arith.constant 0 : index
      %50 = vector.load %arg10[%c0_61, %c0_62, %c0_63] : memref<4x4x10xf32, #tpu.memory_space<vmem>>, vector<1x4x10xf32>
      %51 = vector.shape_cast %50 : vector<1x4x10xf32> to vector<4x10xf32>
      %cst_64 = arith.constant dense<0.000000e+00> : vector<4x256xf32>
      %52 = tpu.matmul %51, %49, %cst_64 {dimension_numbers = #tpu.dot_dimension_numbers<[1], [0], [0], [1], [0, 0, 1, 1], [], []>} : vector<4x10xf32>, vector<10x256xf32>, vector<4x256xf32> -> vector<4x256xf32>
      %53 = arith.addf %34, %52 : vector<4x256xf32>
      %c0_65 = arith.constant 0 : index
      %c1_66 = arith.constant 1 : index
      %c0_67 = arith.constant 0 : index
      %c0_68 = arith.constant 0 : index
      %54 = vector.load %arg8[%c0_65, %c1_66, %c0_67, %c0_68] : memref<4x4x128x256xbf16, #tpu.memory_space<vmem>>, vector<1x1x128x256xbf16>
      %55 = vector.shape_cast %54 : vector<1x1x128x256xbf16> to vector<128x256xbf16>
      %cst_69 = arith.constant dense<0.000000e+00> : vector<10x256xf32>
      %56 = tpu.matmul %18, %55, %cst_69 {dimension_numbers = #tpu.dot_dimension_numbers<[1], [0], [0], [1], [0, 0, 1, 1], [], []>} : vector<10x128xbf16>, vector<128x256xbf16>, vector<10x256xf32> -> vector<10x256xf32>
      %c1_70 = arith.constant 1 : index
      %c1_71 = arith.constant 1 : index
      %c0_72 = arith.constant 0 : index
      %c0_73 = arith.constant 0 : index
      %57 = vector.load %arg8[%c1_70, %c1_71, %c0_72, %c0_73] : memref<4x4x128x256xbf16, #tpu.memory_space<vmem>>, vector<1x1x128x256xbf16>
      %58 = vector.shape_cast %57 : vector<1x1x128x256xbf16> to vector<128x256xbf16>
      %cst_74 = arith.constant dense<0.000000e+00> : vector<10x256xf32>
      %59 = tpu.matmul %23, %58, %cst_74 {dimension_numbers = #tpu.dot_dimension_numbers<[1], [0], [0], [1], [0, 0, 1, 1], [], []>} : vector<10x128xbf16>, vector<128x256xbf16>, vector<10x256xf32> -> vector<10x256xf32>
      %60 = arith.addf %56, %59 : vector<10x256xf32>
      %c2_75 = arith.constant 2 : index
      %c1_76 = arith.constant 1 : index
      %c0_77 = arith.constant 0 : index
      %c0_78 = arith.constant 0 : index
      %61 = vector.load %arg8[%c2_75, %c1_76, %c0_77, %c0_78] : memref<4x4x128x256xbf16, #tpu.memory_space<vmem>>, vector<1x1x128x256xbf16>
      %62 = vector.shape_cast %61 : vector<1x1x128x256xbf16> to vector<128x256xbf16>
      %cst_79 = arith.constant dense<0.000000e+00> : vector<10x256xf32>
      %63 = tpu.matmul %28, %62, %cst_79 {dimension_numbers = #tpu.dot_dimension_numbers<[1], [0], [0], [1], [0, 0, 1, 1], [], []>} : vector<10x128xbf16>, vector<128x256xbf16>, vector<10x256xf32> -> vector<10x256xf32>
      %64 = arith.addf %60, %63 : vector<10x256xf32>
      %c3_80 = arith.constant 3 : index
      %c1_81 = arith.constant 1 : index
      %c0_82 = arith.constant 0 : index
      %c0_83 = arith.constant 0 : index
      %65 = vector.load %arg8[%c3_80, %c1_81, %c0_82, %c0_83] : memref<4x4x128x256xbf16, #tpu.memory_space<vmem>>, vector<1x1x128x256xbf16>
      %66 = vector.shape_cast %65 : vector<1x1x128x256xbf16> to vector<128x256xbf16>
      %cst_84 = arith.constant dense<0.000000e+00> : vector<10x256xf32>
      %67 = tpu.matmul %33, %66, %cst_84 {dimension_numbers = #tpu.dot_dimension_numbers<[1], [0], [0], [1], [0, 0, 1, 1], [], []>} : vector<10x128xbf16>, vector<128x256xbf16>, vector<10x256xf32> -> vector<10x256xf32>
      %68 = arith.addf %64, %67 : vector<10x256xf32>
      %c1_85 = arith.constant 1 : index
      %c0_86 = arith.constant 0 : index
      %c0_87 = arith.constant 0 : index
      %69 = vector.load %arg10[%c1_85, %c0_86, %c0_87] : memref<4x4x10xf32, #tpu.memory_space<vmem>>, vector<1x4x10xf32>
      %70 = vector.shape_cast %69 : vector<1x4x10xf32> to vector<4x10xf32>
      %cst_88 = arith.constant dense<0.000000e+00> : vector<4x256xf32>
      %71 = tpu.matmul %70, %68, %cst_88 {dimension_numbers = #tpu.dot_dimension_numbers<[1], [0], [0], [1], [0, 0, 1, 1], [], []>} : vector<4x10xf32>, vector<10x256xf32>, vector<4x256xf32> -> vector<4x256xf32>
      %72 = arith.addf %53, %71 : vector<4x256xf32>
      %c0_89 = arith.constant 0 : index
      %c2_90 = arith.constant 2 : index
      %c0_91 = arith.constant 0 : index
      %c0_92 = arith.constant 0 : index
      %73 = vector.load %arg8[%c0_89, %c2_90, %c0_91, %c0_92] : memref<4x4x128x256xbf16, #tpu.memory_space<vmem>>, vector<1x1x128x256xbf16>
      %74 = vector.shape_cast %73 : vector<1x1x128x256xbf16> to vector<128x256xbf16>
      %cst_93 = arith.constant dense<0.000000e+00> : vector<10x256xf32>
      %75 = tpu.matmul %18, %74, %cst_93 {dimension_numbers = #tpu.dot_dimension_numbers<[1], [0], [0], [1], [0, 0, 1, 1], [], []>} : vector<10x128xbf16>, vector<128x256xbf16>, vector<10x256xf32> -> vector<10x256xf32>
      %c1_94 = arith.constant 1 : index
      %c2_95 = arith.constant 2 : index
      %c0_96 = arith.constant 0 : index
      %c0_97 = arith.constant 0 : index
      %76 = vector.load %arg8[%c1_94, %c2_95, %c0_96, %c0_97] : memref<4x4x128x256xbf16, #tpu.memory_space<vmem>>, vector<1x1x128x256xbf16>
      %77 = vector.shape_cast %76 : vector<1x1x128x256xbf16> to vector<128x256xbf16>
      %cst_98 = arith.constant dense<0.000000e+00> : vector<10x256xf32>
      %78 = tpu.matmul %23, %77, %cst_98 {dimension_numbers = #tpu.dot_dimension_numbers<[1], [0], [0], [1], [0, 0, 1, 1], [], []>} : vector<10x128xbf16>, vector<128x256xbf16>, vector<10x256xf32> -> vector<10x256xf32>
      %79 = arith.addf %75, %78 : vector<10x256xf32>
      %c2_99 = arith.constant 2 : index
      %c2_100 = arith.constant 2 : index
      %c0_101 = arith.constant 0 : index
      %c0_102 = arith.constant 0 : index
      %80 = vector.load %arg8[%c2_99, %c2_100, %c0_101, %c0_102] : memref<4x4x128x256xbf16, #tpu.memory_space<vmem>>, vector<1x1x128x256xbf16>
      %81 = vector.shape_cast %80 : vector<1x1x128x256xbf16> to vector<128x256xbf16>
      %cst_103 = arith.constant dense<0.000000e+00> : vector<10x256xf32>
      %82 = tpu.matmul %28, %81, %cst_103 {dimension_numbers = #tpu.dot_dimension_numbers<[1], [0], [0], [1], [0, 0, 1, 1], [], []>} : vector<10x128xbf16>, vector<128x256xbf16>, vector<10x256xf32> -> vector<10x256xf32>
      %83 = arith.addf %79, %82 : vector<10x256xf32>
      %c3_104 = arith.constant 3 : index
      %c2_105 = arith.constant 2 : index
      %c0_106 = arith.constant 0 : index
      %c0_107 = arith.constant 0 : index
      %84 = vector.load %arg8[%c3_104, %c2_105, %c0_106, %c0_107] : memref<4x4x128x256xbf16, #tpu.memory_space<vmem>>, vector<1x1x128x256xbf16>
      %85 = vector.shape_cast %84 : vector<1x1x128x256xbf16> to vector<128x256xbf16>
      %cst_108 = arith.constant dense<0.000000e+00> : vector<10x256xf32>
      %86 = tpu.matmul %33, %85, %cst_108 {dimension_numbers = #tpu.dot_dimension_numbers<[1], [0], [0], [1], [0, 0, 1, 1], [], []>} : vector<10x128xbf16>, vector<128x256xbf16>, vector<10x256xf32> -> vector<10x256xf32>
      %87 = arith.addf %83, %86 : vector<10x256xf32>
      %c2_109 = arith.constant 2 : index
      %c0_110 = arith.constant 0 : index
      %c0_111 = arith.constant 0 : index
      %88 = vector.load %arg10[%c2_109, %c0_110, %c0_111] : memref<4x4x10xf32, #tpu.memory_space<vmem>>, vector<1x4x10xf32>
      %89 = vector.shape_cast %88 : vector<1x4x10xf32> to vector<4x10xf32>
      %cst_112 = arith.constant dense<0.000000e+00> : vector<4x256xf32>
      %90 = tpu.matmul %89, %87, %cst_112 {dimension_numbers = #tpu.dot_dimension_numbers<[1], [0], [0], [1], [0, 0, 1, 1], [], []>} : vector<4x10xf32>, vector<10x256xf32>, vector<4x256xf32> -> vector<4x256xf32>
      %91 = arith.addf %72, %90 : vector<4x256xf32>
      %c0_113 = arith.constant 0 : index
      %c3_114 = arith.constant 3 : index
      %c0_115 = arith.constant 0 : index
      %c0_116 = arith.constant 0 : index
      %92 = vector.load %arg8[%c0_113, %c3_114, %c0_115, %c0_116] : memref<4x4x128x256xbf16, #tpu.memory_space<vmem>>, vector<1x1x128x256xbf16>
      %93 = vector.shape_cast %92 : vector<1x1x128x256xbf16> to vector<128x256xbf16>
      %cst_117 = arith.constant dense<0.000000e+00> : vector<10x256xf32>
      %94 = tpu.matmul %18, %93, %cst_117 {dimension_numbers = #tpu.dot_dimension_numbers<[1], [0], [0], [1], [0, 0, 1, 1], [], []>} : vector<10x128xbf16>, vector<128x256xbf16>, vector<10x256xf32> -> vector<10x256xf32>
      %c1_118 = arith.constant 1 : index
      %c3_119 = arith.constant 3 : index
      %c0_120 = arith.constant 0 : index
      %c0_121 = arith.constant 0 : index
      %95 = vector.load %arg8[%c1_118, %c3_119, %c0_120, %c0_121] : memref<4x4x128x256xbf16, #tpu.memory_space<vmem>>, vector<1x1x128x256xbf16>
      %96 = vector.shape_cast %95 : vector<1x1x128x256xbf16> to vector<128x256xbf16>
      %cst_122 = arith.constant dense<0.000000e+00> : vector<10x256xf32>
      %97 = tpu.matmul %23, %96, %cst_122 {dimension_numbers = #tpu.dot_dimension_numbers<[1], [0], [0], [1], [0, 0, 1, 1], [], []>} : vector<10x128xbf16>, vector<128x256xbf16>, vector<10x256xf32> -> vector<10x256xf32>
      %98 = arith.addf %94, %97 : vector<10x256xf32>
      %c2_123 = arith.constant 2 : index
      %c3_124 = arith.constant 3 : index
      %c0_125 = arith.constant 0 : index
      %c0_126 = arith.constant 0 : index
      %99 = vector.load %arg8[%c2_123, %c3_124, %c0_125, %c0_126] : memref<4x4x128x256xbf16, #tpu.memory_space<vmem>>, vector<1x1x128x256xbf16>
      %100 = vector.shape_cast %99 : vector<1x1x128x256xbf16> to vector<128x256xbf16>
      %cst_127 = arith.constant dense<0.000000e+00> : vector<10x256xf32>
      %101 = tpu.matmul %28, %100, %cst_127 {dimension_numbers = #tpu.dot_dimension_numbers<[1], [0], [0], [1], [0, 0, 1, 1], [], []>} : vector<10x128xbf16>, vector<128x256xbf16>, vector<10x256xf32> -> vector<10x256xf32>
      %102 = arith.addf %98, %101 : vector<10x256xf32>
      %c3_128 = arith.constant 3 : index
      %c3_129 = arith.constant 3 : index
      %c0_130 = arith.constant 0 : index
      %c0_131 = arith.constant 0 : index
      %103 = vector.load %arg8[%c3_128, %c3_129, %c0_130, %c0_131] : memref<4x4x128x256xbf16, #tpu.memory_space<vmem>>, vector<1x1x128x256xbf16>
      %104 = vector.shape_cast %103 : vector<1x1x128x256xbf16> to vector<128x256xbf16>
      %cst_132 = arith.constant dense<0.000000e+00> : vector<10x256xf32>
      %105 = tpu.matmul %33, %104, %cst_132 {dimension_numbers = #tpu.dot_dimension_numbers<[1], [0], [0], [1], [0, 0, 1, 1], [], []>} : vector<10x128xbf16>, vector<128x256xbf16>, vector<10x256xf32> -> vector<10x256xf32>
      %106 = arith.addf %102, %105 : vector<10x256xf32>
      %c3_133 = arith.constant 3 : index
      %c0_134 = arith.constant 0 : index
      %c0_135 = arith.constant 0 : index
      %107 = vector.load %arg10[%c3_133, %c0_134, %c0_135] : memref<4x4x10xf32, #tpu.memory_space<vmem>>, vector<1x4x10xf32>
      %108 = vector.shape_cast %107 : vector<1x4x10xf32> to vector<4x10xf32>
      %cst_136 = arith.constant dense<0.000000e+00> : vector<4x256xf32>
      %109 = tpu.matmul %108, %106, %cst_136 {dimension_numbers = #tpu.dot_dimension_numbers<[1], [0], [0], [1], [0, 0, 1, 1], [], []>} : vector<4x10xf32>, vector<10x256xf32>, vector<4x256xf32> -> vector<4x256xf32>
      %110 = arith.addf %91, %109 : vector<4x256xf32>
      %111 = vector.broadcast %10 : vector<1x256xf32> to vector<4x256xf32>
      %112 = arith.addf %110, %111 : vector<4x256xf32>
      %cst_137 = arith.constant 0.000000e+00 : f32
      %113 = vector.broadcast %cst_137 : f32 to vector<4x256xf32>
      %114 = arith.cmpf oge, %112, %113 : vector<4x256xf32>
      %cst_138 = arith.constant 2.000000e-01 : f32
      %115 = vector.broadcast %cst_138 : f32 to vector<4x256xf32>
      %116 = arith.mulf %115, %112 : vector<4x256xf32>
      %117 = arith.select %114, %112, %116 : vector<4x256xi1>, vector<4x256xf32>
      %118 = arith.truncf %117 : vector<4x256xf32> to vector<4x256xbf16>
      %c1_i32_139 = arith.constant 1 : i32
      %119 = arith.addi %arg18, %c1_i32_139 : i32
      %120 = arith.index_cast %119 : i32 to index
      %c1_140 = arith.constant 1 : index
      %c0_141 = arith.constant 0 : index
      %121 = vector.load %arg17[%120, %c1_140, %c0_141] : memref<6x6x256xbf16, #tpu.memory_space<vmem>>, vector<1x4x256xbf16>
      %122 = vector.shape_cast %121 : vector<1x4x256xbf16> to vector<4x256xbf16>
      %123 = vector.shape_cast %118 : vector<4x256xbf16> to vector<1x4x256xbf16>
      tpu.vector_store %arg17[%120, %c1_140, %c0_141], %123 {strides = array<i32>} : memref<6x6x256xbf16, #tpu.memory_space<vmem>>, vector<1x4x256xbf16>,
    }
    %c4_i32_22 = arith.constant 4 : i32
    %c0_23 = arith.constant 0 : index
    %c0_24 = arith.constant 0 : index
    %12 = vector.load %arg12[%c0_23, %c0_24] : memref<1x1xf32, #tpu.memory_space<vmem>>, vector<1x1xf32>
    %c0_i32_25 = arith.constant 0 : i32
    %c3_i32 = arith.constant 3 : i32
    %13 = arith.addi %c0_i32_25, %c3_i32 : i32
    %c1_i32_26 = arith.constant 1 : i32
    scf.for %arg18 = %c0_i32_25 to %13 step %c1_i32_26  : i32 {
      %c1_i32_28 = arith.constant 1 : i32
      %14 = arith.muli %c1_i32_28, %arg18 : i32
      %c0_i32_29 = arith.constant 0 : i32
      %15 = arith.addi %14, %c0_i32_29 : i32
      %16 = arith.index_cast %15 : i32 to index
      %c0_30 = arith.constant 0 : index
      %c0_31 = arith.constant 0 : index
      %17 = vector.load %arg17[%16, %c0_30, %c0_31] : memref<6x6x256xbf16, #tpu.memory_space<vmem>>, vector<1x6x256xbf16>
      %18 = vector.shape_cast %17 : vector<1x6x256xbf16> to vector<6x256xbf16>
      %c1_i32_32 = arith.constant 1 : i32
      %19 = arith.muli %c1_i32_32, %arg18 : i32
      %c1_i32_33 = arith.constant 1 : i32
      %20 = arith.addi %19, %c1_i32_33 : i32
      %21 = arith.index_cast %20 : i32 to index
      %c0_34 = arith.constant 0 : index
      %c0_35 = arith.constant 0 : index
      %22 = vector.load %arg17[%21, %c0_34, %c0_35] : memref<6x6x256xbf16, #tpu.memory_space<vmem>>, vector<1x6x256xbf16>
      %23 = vector.shape_cast %22 : vector<1x6x256xbf16> to vector<6x256xbf16>
      %c1_i32_36 = arith.constant 1 : i32
      %24 = arith.muli %c1_i32_36, %arg18 : i32
      %c2_i32 = arith.constant 2 : i32
      %25 = arith.addi %24, %c2_i32 : i32
      %26 = arith.index_cast %25 : i32 to index
      %c0_37 = arith.constant 0 : index
      %c0_38 = arith.constant 0 : index
      %27 = vector.load %arg17[%26, %c0_37, %c0_38] : memref<6x6x256xbf16, #tpu.memory_space<vmem>>, vector<1x6x256xbf16>
      %28 = vector.shape_cast %27 : vector<1x6x256xbf16> to vector<6x256xbf16>
      %c1_i32_39 = arith.constant 1 : i32
      %29 = arith.muli %c1_i32_39, %arg18 : i32
      %c3_i32_40 = arith.constant 3 : i32
      %30 = arith.addi %29, %c3_i32_40 : i32
      %31 = arith.index_cast %30 : i32 to index
      %c0_41 = arith.constant 0 : index
      %c0_42 = arith.constant 0 : index
      %32 = vector.load %arg17[%31, %c0_41, %c0_42] : memref<6x6x256xbf16, #tpu.memory_space<vmem>>, vector<1x6x256xbf16>
      %33 = vector.shape_cast %32 : vector<1x6x256xbf16> to vector<6x256xbf16>
      %cst_43 = arith.constant 0.000000e+00 : f32
      %34 = vector.broadcast %cst_43 : f32 to vector<3x1xf32>
      %c0_44 = arith.constant 0 : index
      %c0_45 = arith.constant 0 : index
      %c0_46 = arith.constant 0 : index
      %c0_47 = arith.constant 0 : index
      %35 = vector.load %arg11[%c0_44, %c0_45, %c0_46, %c0_47] : memref<4x4x256x1xbf16, #tpu.memory_space<vmem>>, vector<1x1x256x1xbf16>
      %36 = vector.shape_cast %35 : vector<1x1x256x1xbf16> to vector<256x1xbf16>
      %cst_48 = arith.constant dense<0.000000e+00> : vector<6x1xf32>
      %37 = tpu.matmul %18, %36, %cst_48 {dimension_numbers = #tpu.dot_dimension_numbers<[1], [0], [0], [1], [0, 0, 1, 1], [], []>} : vector<6x256xbf16>, vector<256x1xbf16>, vector<6x1xf32> -> vector<6x1xf32>
      %c1 = arith.constant 1 : index
      %c0_49 = arith.constant 0 : index
      %c0_50 = arith.constant 0 : index
      %c0_51 = arith.constant 0 : index
      %38 = vector.load %arg11[%c1, %c0_49, %c0_50, %c0_51] : memref<4x4x256x1xbf16, #tpu.memory_space<vmem>>, vector<1x1x256x1xbf16>
      %39 = vector.shape_cast %38 : vector<1x1x256x1xbf16> to vector<256x1xbf16>
      %cst_52 = arith.constant dense<0.000000e+00> : vector<6x1xf32>
      %40 = tpu.matmul %23, %39, %cst_52 {dimension_numbers = #tpu.dot_dimension_numbers<[1], [0], [0], [1], [0, 0, 1, 1], [], []>} : vector<6x256xbf16>, vector<256x1xbf16>, vector<6x1xf32> -> vector<6x1xf32>
      %41 = arith.addf %37, %40 : vector<6x1xf32>
      %c2 = arith.constant 2 : index
      %c0_53 = arith.constant 0 : index
      %c0_54 = arith.constant 0 : index
      %c0_55 = arith.constant 0 : index
      %42 = vector.load %arg11[%c2, %c0_53, %c0_54, %c0_55] : memref<4x4x256x1xbf16, #tpu.memory_space<vmem>>, vector<1x1x256x1xbf16>
      %43 = vector.shape_cast %42 : vector<1x1x256x1xbf16> to vector<256x1xbf16>
      %cst_56 = arith.constant dense<0.000000e+00> : vector<6x1xf32>
      %44 = tpu.matmul %28, %43, %cst_56 {dimension_numbers = #tpu.dot_dimension_numbers<[1], [0], [0], [1], [0, 0, 1, 1], [], []>} : vector<6x256xbf16>, vector<256x1xbf16>, vector<6x1xf32> -> vector<6x1xf32>
      %45 = arith.addf %41, %44 : vector<6x1xf32>
      %c3 = arith.constant 3 : index
      %c0_57 = arith.constant 0 : index
      %c0_58 = arith.constant 0 : index
      %c0_59 = arith.constant 0 : index
      %46 = vector.load %arg11[%c3, %c0_57, %c0_58, %c0_59] : memref<4x4x256x1xbf16, #tpu.memory_space<vmem>>, vector<1x1x256x1xbf16>
      %47 = vector.shape_cast %46 : vector<1x1x256x1xbf16> to vector<256x1xbf16>
      %cst_60 = arith.constant dense<0.000000e+00> : vector<6x1xf32>
      %48 = tpu.matmul %33, %47, %cst_60 {dimension_numbers = #tpu.dot_dimension_numbers<[1], [0], [0], [1], [0, 0, 1, 1], [], []>} : vector<6x256xbf16>, vector<256x1xbf16>, vector<6x1xf32> -> vector<6x1xf32>
      %49 = arith.addf %45, %48 : vector<6x1xf32>
      %c0_61 = arith.constant 0 : index
      %c0_62 = arith.constant 0 : index
      %c0_63 = arith.constant 0 : index
      %50 = vector.load %arg13[%c0_61, %c0_62, %c0_63] : memref<4x3x6xf32, #tpu.memory_space<vmem>>, vector<1x3x6xf32>
      %51 = vector.shape_cast %50 : vector<1x3x6xf32> to vector<3x6xf32>
      %cst_64 = arith.constant dense<0.000000e+00> : vector<3x1xf32>
      %52 = tpu.matmul %51, %49, %cst_64 {dimension_numbers = #tpu.dot_dimension_numbers<[1], [0], [0], [1], [0, 0, 1, 1], [], []>} : vector<3x6xf32>, vector<6x1xf32>, vector<3x1xf32> -> vector<3x1xf32>
      %53 = arith.addf %34, %52 : vector<3x1xf32>
      %c0_65 = arith.constant 0 : index
      %c1_66 = arith.constant 1 : index
      %c0_67 = arith.constant 0 : index
      %c0_68 = arith.constant 0 : index
      %54 = vector.load %arg11[%c0_65, %c1_66, %c0_67, %c0_68] : memref<4x4x256x1xbf16, #tpu.memory_space<vmem>>, vector<1x1x256x1xbf16>
      %55 = vector.shape_cast %54 : vector<1x1x256x1xbf16> to vector<256x1xbf16>
      %cst_69 = arith.constant dense<0.000000e+00> : vector<6x1xf32>
      %56 = tpu.matmul %18, %55, %cst_69 {dimension_numbers = #tpu.dot_dimension_numbers<[1], [0], [0], [1], [0, 0, 1, 1], [], []>} : vector<6x256xbf16>, vector<256x1xbf16>, vector<6x1xf32> -> vector<6x1xf32>
      %c1_70 = arith.constant 1 : index
      %c1_71 = arith.constant 1 : index
      %c0_72 = arith.constant 0 : index
      %c0_73 = arith.constant 0 : index
      %57 = vector.load %arg11[%c1_70, %c1_71, %c0_72, %c0_73] : memref<4x4x256x1xbf16, #tpu.memory_space<vmem>>, vector<1x1x256x1xbf16>
      %58 = vector.shape_cast %57 : vector<1x1x256x1xbf16> to vector<256x1xbf16>
      %cst_74 = arith.constant dense<0.000000e+00> : vector<6x1xf32>
      %59 = tpu.matmul %23, %58, %cst_74 {dimension_numbers = #tpu.dot_dimension_numbers<[1], [0], [0], [1], [0, 0, 1, 1], [], []>} : vector<6x256xbf16>, vector<256x1xbf16>, vector<6x1xf32> -> vector<6x1xf32>
      %60 = arith.addf %56, %59 : vector<6x1xf32>
      %c2_75 = arith.constant 2 : index
      %c1_76 = arith.constant 1 : index
      %c0_77 = arith.constant 0 : index
      %c0_78 = arith.constant 0 : index
      %61 = vector.load %arg11[%c2_75, %c1_76, %c0_77, %c0_78] : memref<4x4x256x1xbf16, #tpu.memory_space<vmem>>, vector<1x1x256x1xbf16>
      %62 = vector.shape_cast %61 : vector<1x1x256x1xbf16> to vector<256x1xbf16>
      %cst_79 = arith.constant dense<0.000000e+00> : vector<6x1xf32>
      %63 = tpu.matmul %28, %62, %cst_79 {dimension_numbers = #tpu.dot_dimension_numbers<[1], [0], [0], [1], [0, 0, 1, 1], [], []>} : vector<6x256xbf16>, vector<256x1xbf16>, vector<6x1xf32> -> vector<6x1xf32>
      %64 = arith.addf %60, %63 : vector<6x1xf32>
      %c3_80 = arith.constant 3 : index
      %c1_81 = arith.constant 1 : index
      %c0_82 = arith.constant 0 : index
      %c0_83 = arith.constant 0 : index
      %65 = vector.load %arg11[%c3_80, %c1_81, %c0_82, %c0_83] : memref<4x4x256x1xbf16, #tpu.memory_space<vmem>>, vector<1x1x256x1xbf16>
      %66 = vector.shape_cast %65 : vector<1x1x256x1xbf16> to vector<256x1xbf16>
      %cst_84 = arith.constant dense<0.000000e+00> : vector<6x1xf32>
      %67 = tpu.matmul %33, %66, %cst_84 {dimension_numbers = #tpu.dot_dimension_numbers<[1], [0], [0], [1], [0, 0, 1, 1], [], []>} : vector<6x256xbf16>, vector<256x1xbf16>, vector<6x1xf32> -> vector<6x1xf32>
      %68 = arith.addf %64, %67 : vector<6x1xf32>
      %c1_85 = arith.constant 1 : index
      %c0_86 = arith.constant 0 : index
      %c0_87 = arith.constant 0 : index
      %69 = vector.load %arg13[%c1_85, %c0_86, %c0_87] : memref<4x3x6xf32, #tpu.memory_space<vmem>>, vector<1x3x6xf32>
      %70 = vector.shape_cast %69 : vector<1x3x6xf32> to vector<3x6xf32>
      %cst_88 = arith.constant dense<0.000000e+00> : vector<3x1xf32>
      %71 = tpu.matmul %70, %68, %cst_88 {dimension_numbers = #tpu.dot_dimension_numbers<[1], [0], [0], [1], [0, 0, 1, 1], [], []>} : vector<3x6xf32>, vector<6x1xf32>, vector<3x1xf32> -> vector<3x1xf32>
      %72 = arith.addf %53, %71 : vector<3x1xf32>
      %c0_89 = arith.constant 0 : index
      %c2_90 = arith.constant 2 : index
      %c0_91 = arith.constant 0 : index
      %c0_92 = arith.constant 0 : index
      %73 = vector.load %arg11[%c0_89, %c2_90, %c0_91, %c0_92] : memref<4x4x256x1xbf16, #tpu.memory_space<vmem>>, vector<1x1x256x1xbf16>
      %74 = vector.shape_cast %73 : vector<1x1x256x1xbf16> to vector<256x1xbf16>
      %cst_93 = arith.constant dense<0.000000e+00> : vector<6x1xf32>
      %75 = tpu.matmul %18, %74, %cst_93 {dimension_numbers = #tpu.dot_dimension_numbers<[1], [0], [0], [1], [0, 0, 1, 1], [], []>} : vector<6x256xbf16>, vector<256x1xbf16>, vector<6x1xf32> -> vector<6x1xf32>
      %c1_94 = arith.constant 1 : index
      %c2_95 = arith.constant 2 : index
      %c0_96 = arith.constant 0 : index
      %c0_97 = arith.constant 0 : index
      %76 = vector.load %arg11[%c1_94, %c2_95, %c0_96, %c0_97] : memref<4x4x256x1xbf16, #tpu.memory_space<vmem>>, vector<1x1x256x1xbf16>
      %77 = vector.shape_cast %76 : vector<1x1x256x1xbf16> to vector<256x1xbf16>
      %cst_98 = arith.constant dense<0.000000e+00> : vector<6x1xf32>
      %78 = tpu.matmul %23, %77, %cst_98 {dimension_numbers = #tpu.dot_dimension_numbers<[1], [0], [0], [1], [0, 0, 1, 1], [], []>} : vector<6x256xbf16>, vector<256x1xbf16>, vector<6x1xf32> -> vector<6x1xf32>
      %79 = arith.addf %75, %78 : vector<6x1xf32>
      %c2_99 = arith.constant 2 : index
      %c2_100 = arith.constant 2 : index
      %c0_101 = arith.constant 0 : index
      %c0_102 = arith.constant 0 : index
      %80 = vector.load %arg11[%c2_99, %c2_100, %c0_101, %c0_102] : memref<4x4x256x1xbf16, #tpu.memory_space<vmem>>, vector<1x1x256x1xbf16>
      %81 = vector.shape_cast %80 : vector<1x1x256x1xbf16> to vector<256x1xbf16>
      %cst_103 = arith.constant dense<0.000000e+00> : vector<6x1xf32>
      %82 = tpu.matmul %28, %81, %cst_103 {dimension_numbers = #tpu.dot_dimension_numbers<[1], [0], [0], [1], [0, 0, 1, 1], [], []>} : vector<6x256xbf16>, vector<256x1xbf16>, vector<6x1xf32> -> vector<6x1xf32>
      %83 = arith.addf %79, %82 : vector<6x1xf32>
      %c3_104 = arith.constant 3 : index
      %c2_105 = arith.constant 2 : index
      %c0_106 = arith.constant 0 : index
      %c0_107 = arith.constant 0 : index
      %84 = vector.load %arg11[%c3_104, %c2_105, %c0_106, %c0_107] : memref<4x4x256x1xbf16, #tpu.memory_space<vmem>>, vector<1x1x256x1xbf16>
      %85 = vector.shape_cast %84 : vector<1x1x256x1xbf16> to vector<256x1xbf16>
      %cst_108 = arith.constant dense<0.000000e+00> : vector<6x1xf32>
      %86 = tpu.matmul %33, %85, %cst_108 {dimension_numbers = #tpu.dot_dimension_numbers<[1], [0], [0], [1], [0, 0, 1, 1], [], []>} : vector<6x256xbf16>, vector<256x1xbf16>, vector<6x1xf32> -> vector<6x1xf32>
      %87 = arith.addf %83, %86 : vector<6x1xf32>
      %c2_109 = arith.constant 2 : index
      %c0_110 = arith.constant 0 : index
      %c0_111 = arith.constant 0 : index
      %88 = vector.load %arg13[%c2_109, %c0_110, %c0_111] : memref<4x3x6xf32, #tpu.memory_space<vmem>>, vector<1x3x6xf32>
      %89 = vector.shape_cast %88 : vector<1x3x6xf32> to vector<3x6xf32>
      %cst_112 = arith.constant dense<0.000000e+00> : vector<3x1xf32>
      %90 = tpu.matmul %89, %87, %cst_112 {dimension_numbers = #tpu.dot_dimension_numbers<[1], [0], [0], [1], [0, 0, 1, 1], [], []>} : vector<3x6xf32>, vector<6x1xf32>, vector<3x1xf32> -> vector<3x1xf32>
      %91 = arith.addf %72, %90 : vector<3x1xf32>
      %c0_113 = arith.constant 0 : index
      %c3_114 = arith.constant 3 : index
      %c0_115 = arith.constant 0 : index
      %c0_116 = arith.constant 0 : index
      %92 = vector.load %arg11[%c0_113, %c3_114, %c0_115, %c0_116] : memref<4x4x256x1xbf16, #tpu.memory_space<vmem>>, vector<1x1x256x1xbf16>
      %93 = vector.shape_cast %92 : vector<1x1x256x1xbf16> to vector<256x1xbf16>
      %cst_117 = arith.constant dense<0.000000e+00> : vector<6x1xf32>
      %94 = tpu.matmul %18, %93, %cst_117 {dimension_numbers = #tpu.dot_dimension_numbers<[1], [0], [0], [1], [0, 0, 1, 1], [], []>} : vector<6x256xbf16>, vector<256x1xbf16>, vector<6x1xf32> -> vector<6x1xf32>
      %c1_118 = arith.constant 1 : index
      %c3_119 = arith.constant 3 : index
      %c0_120 = arith.constant 0 : index
      %c0_121 = arith.constant 0 : index
      %95 = vector.load %arg11[%c1_118, %c3_119, %c0_120, %c0_121] : memref<4x4x256x1xbf16, #tpu.memory_space<vmem>>, vector<1x1x256x1xbf16>
      %96 = vector.shape_cast %95 : vector<1x1x256x1xbf16> to vector<256x1xbf16>
      %cst_122 = arith.constant dense<0.000000e+00> : vector<6x1xf32>
      %97 = tpu.matmul %23, %96, %cst_122 {dimension_numbers = #tpu.dot_dimension_numbers<[1], [0], [0], [1], [0, 0, 1, 1], [], []>} : vector<6x256xbf16>, vector<256x1xbf16>, vector<6x1xf32> -> vector<6x1xf32>
      %98 = arith.addf %94, %97 : vector<6x1xf32>
      %c2_123 = arith.constant 2 : index
      %c3_124 = arith.constant 3 : index
      %c0_125 = arith.constant 0 : index
      %c0_126 = arith.constant 0 : index
      %99 = vector.load %arg11[%c2_123, %c3_124, %c0_125, %c0_126] : memref<4x4x256x1xbf16, #tpu.memory_space<vmem>>, vector<1x1x256x1xbf16>
      %100 = vector.shape_cast %99 : vector<1x1x256x1xbf16> to vector<256x1xbf16>
      %cst_127 = arith.constant dense<0.000000e+00> : vector<6x1xf32>
      %101 = tpu.matmul %28, %100, %cst_127 {dimension_numbers = #tpu.dot_dimension_numbers<[1], [0], [0], [1], [0, 0, 1, 1], [], []>} : vector<6x256xbf16>, vector<256x1xbf16>, vector<6x1xf32> -> vector<6x1xf32>
      %102 = arith.addf %98, %101 : vector<6x1xf32>
      %c3_128 = arith.constant 3 : index
      %c3_129 = arith.constant 3 : index
      %c0_130 = arith.constant 0 : index
      %c0_131 = arith.constant 0 : index
      %103 = vector.load %arg11[%c3_128, %c3_129, %c0_130, %c0_131] : memref<4x4x256x1xbf16, #tpu.memory_space<vmem>>, vector<1x1x256x1xbf16>
      %104 = vector.shape_cast %103 : vector<1x1x256x1xbf16> to vector<256x1xbf16>
      %cst_132 = arith.constant dense<0.000000e+00> : vector<6x1xf32>
      %105 = tpu.matmul %33, %104, %cst_132 {dimension_numbers = #tpu.dot_dimension_numbers<[1], [0], [0], [1], [0, 0, 1, 1], [], []>} : vector<6x256xbf16>, vector<256x1xbf16>, vector<6x1xf32> -> vector<6x1xf32>
      %106 = arith.addf %102, %105 : vector<6x1xf32>
      %c3_133 = arith.constant 3 : index
      %c0_134 = arith.constant 0 : index
      %c0_135 = arith.constant 0 : index
      %107 = vector.load %arg13[%c3_133, %c0_134, %c0_135] : memref<4x3x6xf32, #tpu.memory_space<vmem>>, vector<1x3x6xf32>
      %108 = vector.shape_cast %107 : vector<1x3x6xf32> to vector<3x6xf32>
      %cst_136 = arith.constant dense<0.000000e+00> : vector<3x1xf32>
      %109 = tpu.matmul %108, %106, %cst_136 {dimension_numbers = #tpu.dot_dimension_numbers<[1], [0], [0], [1], [0, 0, 1, 1], [], []>} : vector<3x6xf32>, vector<6x1xf32>, vector<3x1xf32> -> vector<3x1xf32>
      %110 = arith.addf %91, %109 : vector<3x1xf32>
      %111 = vector.broadcast %12 : vector<1x1xf32> to vector<3x1xf32>
      %112 = arith.addf %110, %111 : vector<3x1xf32>
      %cst_137 = arith.constant 5.000000e-01 : f32
      %113 = vector.broadcast %cst_137 : f32 to vector<3x1xf32>
      %114 = arith.mulf %113, %112 : vector<3x1xf32>
      %115 = math.tanh %114 : vector<3x1xf32>
      %cst_138 = arith.constant 1.000000e+00 : f32
      %116 = vector.broadcast %cst_138 : f32 to vector<3x1xf32>
      %117 = arith.addf %115, %116 : vector<3x1xf32>
      %cst_139 = arith.constant 5.000000e-01 : f32
      %118 = vector.broadcast %cst_139 : f32 to vector<3x1xf32>
      %119 = arith.mulf %118, %117 : vector<3x1xf32>
      %c0_140 = arith.constant 0 : index
      %120 = arith.index_cast %arg18 : i32 to index
      %c0_141 = arith.constant 0 : index
      %c0_142 = arith.constant 0 : index
      %121 = vector.load %arg14[%c0_140, %120, %c0_141, %c0_142] : memref<1x3x3x1xf32, #tpu.memory_space<vmem>>, vector<1x1x3x1xf32>
      %122 = vector.shape_cast %121 : vector<1x1x3x1xf32> to vector<3x1xf32>
      %123 = vector.shape_cast %119 : vector<3x1xf32> to vector<1x1x3x1xf32>
      tpu.vector_store %arg14[%c0_140, %120, %c0_141, %c0_142], %123 {strides = array<i32>} : memref<1x3x3x1xf32, #tpu.memory_space<vmem>>, vector<1x1x3x1xf32>,
    }
    %c3_i32_27 = arith.constant 3 : i32
    return
  }
  func.func @transform_0(%arg0: i32) -> (i32, i32, i32, i32) {
    %c0_i32 = arith.constant 0 : i32
    %c0_i32_0 = arith.constant 0 : i32
    %c0_i32_1 = arith.constant 0 : i32
    %c0_i32_2 = arith.constant 0 : i32
    return %arg0, %c0_i32, %c0_i32_0, %c0_i32_1 : i32, i32, i32, i32
  }
  func.func @transform_1(%arg0: i32) -> (i32, i32, i32, i32) {
    %c0_i32 = arith.constant 0 : i32
    %c0_i32_0 = arith.constant 0 : i32
    %c0_i32_1 = arith.constant 0 : i32
    %c0_i32_2 = arith.constant 0 : i32
    %c0_i32_3 = arith.constant 0 : i32
    return %c0_i32, %c0_i32_0, %c0_i32_1, %c0_i32_2 : i32, i32, i32, i32
  }
  func.func @transform_2(%arg0: i32) -> (i32, i32) {
    %c0_i32 = arith.constant 0 : i32
    %c0_i32_0 = arith.constant 0 : i32
    %c0_i32_1 = arith.constant 0 : i32
    return %c0_i32, %c0_i32_0 : i32, i32
  }
  func.func @transform_3(%arg0: i32) -> (i32, i32, i32) {
    %c0_i32 = arith.constant 0 : i32
    %c0_i32_0 = arith.constant 0 : i32
    %c0_i32_1 = arith.constant 0 : i32
    %c0_i32_2 = arith.constant 0 : i32
    return %c0_i32, %c0_i32_0, %c0_i32_1 : i32, i32, i32
  }
  func.func @transform_4(%arg0: i32) -> (i32, i32, i32, i32) {
    %c0_i32 = arith.constant 0 : i32
    %c0_i32_0 = arith.constant 0 : i32
    %c0_i32_1 = arith.constant 0 : i32
    %c0_i32_2 = arith.constant 0 : i32
    %c0_i32_3 = arith.constant 0 : i32
    return %c0_i32, %c0_i32_0, %c0_i32_1, %c0_i32_2 : i32, i32, i32, i32
  }
  func.func @transform_5(%arg0: i32) -> (i32, i32) {
    %c0_i32 = arith.constant 0 : i32
    %c0_i32_0 = arith.constant 0 : i32
    %c0_i32_1 = arith.constant 0 : i32
    return %c0_i32, %c0_i32_0 : i32, i32
  }
  func.func @transform_6(%arg0: i32) -> (i32, i32, i32) {
    %c0_i32 = arith.constant 0 : i32
    %c0_i32_0 = arith.constant 0 : i32
    %c0_i32_1 = arith.constant 0 : i32
    %c0_i32_2 = arith.constant 0 : i32
    return %c0_i32, %c0_i32_0, %c0_i32_1 : i32, i32, i32
  }
  func.func @transform_7(%arg0: i32) -> (i32, i32, i32, i32) {
    %c0_i32 = arith.constant 0 : i32
    %c0_i32_0 = arith.constant 0 : i32
    %c0_i32_1 = arith.constant 0 : i32
    %c0_i32_2 = arith.constant 0 : i32
    %c0_i32_3 = arith.constant 0 : i32
    return %c0_i32, %c0_i32_0, %c0_i32_1, %c0_i32_2 : i32, i32, i32, i32
  }
  func.func @transform_8(%arg0: i32) -> (i32, i32) {
    %c0_i32 = arith.constant 0 : i32
    %c0_i32_0 = arith.constant 0 : i32
    %c0_i32_1 = arith.constant 0 : i32
    return %c0_i32, %c0_i32_0 : i32, i32
  }
  func.func @transform_9(%arg0: i32) -> (i32, i32, i32) {
    %c0_i32 = arith.constant 0 : i32
    %c0_i32_0 = arith.constant 0 : i32
    %c0_i32_1 = arith.constant 0 : i32
    %c0_i32_2 = arith.constant 0 : i32
    return %c0_i32, %c0_i32_0, %c0_i32_1 : i32, i32, i32
  }
  func.func @transform_10(%arg0: i32) -> (i32, i32, i32, i32) {
    %c0_i32 = arith.constant 0 : i32
    %c0_i32_0 = arith.constant 0 : i32
    %c0_i32_1 = arith.constant 0 : i32
    %c0_i32_2 = arith.constant 0 : i32
    %c0_i32_3 = arith.constant 0 : i32
    return %c0_i32, %c0_i32_0, %c0_i32_1, %c0_i32_2 : i32, i32, i32, i32
  }
  func.func @transform_11(%arg0: i32) -> (i32, i32) {
    %c0_i32 = arith.constant 0 : i32
    %c0_i32_0 = arith.constant 0 : i32
    %c0_i32_1 = arith.constant 0 : i32
    return %c0_i32, %c0_i32_0 : i32, i32
  }
  func.func @transform_12(%arg0: i32) -> (i32, i32, i32) {
    %c0_i32 = arith.constant 0 : i32
    %c0_i32_0 = arith.constant 0 : i32
    %c0_i32_1 = arith.constant 0 : i32
    %c0_i32_2 = arith.constant 0 : i32
    return %c0_i32, %c0_i32_0, %c0_i32_1 : i32, i32, i32
  }
  func.func @transform_13(%arg0: i32) -> (i32, i32, i32, i32) {
    %c0_i32 = arith.constant 0 : i32
    %c0_i32_0 = arith.constant 0 : i32
    %c0_i32_1 = arith.constant 0 : i32
    %c0_i32_2 = arith.constant 0 : i32
    return %arg0, %c0_i32, %c0_i32_0, %c0_i32_1 : i32, i32, i32, i32
  }
}

</mosaic_0001>

<bundles_post_ra>
// kernel: discriminator_forward.1
= control target key start
LH: loop header
LB: loop body
LE: loop exit
PB: predicated region body
PF: predicated region fallthrough
CT: control target
= control target key end

     0   :  { %s13824_s27 = smov 0   ;;  %s16457_s0 = inlined_call_operand.vmem [shape: bf16[2,34,34,3], index: 0, kind: input, shape index: {}]   ;;  %s16458_s1 = inlined_call_operand.vmem [shape: bf16[4,4,3,64], index: 1, kind: input, shape index: {}]   ;;  %s16459_s2 = inlined_call_operand.vmem [shape: f32[1,64], index: 2, kind: input, shape index: {}]   ;;  %s16460_s3 = inlined_call_operand.vmem [shape: f32[4,16,34], index: 3, kind: input, shape index: {}]   ;;  %s16461_s4 = inlined_call_operand.vmem [shape: bf16[4,4,64,128], index: 4, kind: input, shape index: {}]   ;;  %s16462_s5 = inlined_call_operand.vmem [shape: f32[1,128], index: 5, kind: input, shape index: {}]   ;;  %s16463_s6 = inlined_call_operand.vmem [shape: f32[4,8,18], index: 6, kind: input, shape index: {}]   ;;  %s16464_s7 = inlined_call_operand.vmem [shape: bf16[4,4,128,256], index: 7, kind: input, shape index: {}]   ;;  %s16465_s8 = inlined_call_operand.vmem [shape: f32[1,256], index: 8, kind: input, shape index: {}]   ;;  %s16466_s9 = inlined_call_operand.vmem [shape: f32[4,4,10], index: 9, kind: input, shape index: {}]   ;;  %s16467_s10 = inlined_call_operand.vmem [shape: bf16[4,4,256,1], index: 10, kind: input, shape index: {}]   ;;  %s16468_s11 = inlined_call_operand.<no memory space> [shape: f32[1,1], index: 11, kind: input, shape index: {}]   ;;  %s16469_s12 = inlined_call_operand.vmem [shape: f32[4,3,6], index: 12, kind: input, shape index: {}]   ;;  %s16470_s13 = inlined_call_operand.vmem [shape: f32[2,3,3,1], index: 13, kind: output, shape index: {}]  }
   0x1   :  { %v18_v0 = vstv %s16468_s11 }
   0x2   :  { %19 = vst [vmem:[#allocation5] sm:$0x1] %v18_v0 }
   0x3 LB: > { %s9795_s28 = sadd.s32 4294967295, %s13721_s27   ;;  %p9799_p0 = scmp.ge.s32.totalorder %s13721_s27, 1  ;;  %s13721_s27 = sphi %s13824_s27, %s25_s27  }
   0x4   : > { %p389_p1 = scmp.lt.s32.totalorder %s13721_s27, 3 }
   0x6   : > { %p390_p2 = pnand %p9799_p0, %p389_p1 }
   0x7   : > { %p13834_p3 = scmp.lt.s32.totalorder (!%p390_p2), %s9795_s28, 1  ;;  %vm444_vm0 = vcmask (!%p390_p2), 519168   ;;  %v13841_v1 = vld [vmem:[%s16459_s2] ss:$0 sm:$0xff] (!%p390_p2)  ;;  %vm447_vm1 = vcmask (!%p390_p2), 516096   ;;  %v13739_v2 = vmov (!%p390_p2), 0  }
   0x8   : > { %393 = sbr.rel (%p390_p2) target bundleno = 4530 (0x11b2), region = 72  ;;  %445 = vst.msk [vmem:[#allocation2] sm:$0xf] (!%p390_p2), %vm444_vm0, %v13739_v2  ;;  %446 = vst.msk [vmem:[#allocation2 + $0x4] sm:$0xf] (!%p390_p2), %vm444_vm0, %v13739_v2  ;;  %s13991_s22 = smov (!%p390_p2), 0  }
   0x9   : > { %449 = vst.msk [vmem:[#allocation2 + $0xc] sm:$0xf] (!%p390_p2), %vm444_vm0, %v13739_v2  ;;  %450 = vst.msk [vmem:[#allocation2 + $0x10] sm:$0xf] (!%p390_p2), %vm444_vm0, %v13739_v2 }
   0xa   : > { %452 = vst.msk [vmem:[#allocation2 + $0x18] sm:$0xf] (!%p390_p2), %vm444_vm0, %v13739_v2  ;;  %453 = vst.msk [vmem:[#allocation2 + $0x1c] sm:$0xf] (!%p390_p2), %vm444_vm0, %v13739_v2 }
   0xb   : > { %455 = vst.msk [vmem:[#allocation2 + $0x24] sm:$0xf] (!%p390_p2), %vm444_vm0, %v13739_v2  ;;  %456 = vst.msk [vmem:[#allocation2 + $0x28] sm:$0xf] (!%p390_p2), %vm444_vm0, %v13739_v2 }
   0xc   : > { %458 = vst.msk [vmem:[#allocation2 + $0x30] sm:$0xf] (!%p390_p2), %vm444_vm0, %v13739_v2  ;;  %459 = vst.msk [vmem:[#allocation2 + $0x34] sm:$0xf] (!%p390_p2), %vm444_vm0, %v13739_v2 }
   0xd   : > { %461 = vst.msk [vmem:[#allocation2 + $0x3c] sm:$0xf] (!%p390_p2), %vm444_vm0, %v13739_v2  ;;  %462 = vst.msk [vmem:[#allocation2 + $0x40] sm:$0xf] (!%p390_p2), %vm444_vm0, %v13739_v2 }
   0xe   : > { %464 = vst.msk [vmem:[#allocation2 + $0x48] sm:$0xf] (!%p390_p2), %vm444_vm0, %v13739_v2  ;;  %465 = vst.msk [vmem:[#allocation2 + $0x4c] sm:$0xf] (!%p390_p2), %vm444_vm0, %v13739_v2 }
   0xf   : > { %467 = vst.msk [vmem:[#allocation2 + $0x54] sm:$0xf] %vm444_vm0, %v13739_v2  ;;  %468 = vst.msk [vmem:[#allocation2 + $0x58] sm:$0xf] %vm444_vm0, %v13739_v2  ;;  %s16475_s28 = smov (!%p13834_p3, %s9795_s28), 1 }
  0x10   : > { %470 = vst.msk [vmem:[#allocation2 + $0x60] sm:$0xf] %vm444_vm0, %v13739_v2  ;;  %471 = vst.msk [vmem:[#allocation2 + $0x64] sm:$0xf] %vm444_vm0, %v13739_v2  ;;  %s12905_s14 = smul.u32 680, %s16475_s28 }
  0x11   : > { %473 = vst.msk [vmem:[#allocation2 + $0x6c] sm:$0xf] %vm444_vm0, %v13739_v2  ;;  %474 = vst.msk [vmem:[#allocation2 + $0x70] sm:$0xf] %vm444_vm0, %v13739_v2  ;;  %s12906_s15 = smul.u32 12, %s16475_s28 }
  0x12   : > { %476 = vst.msk [vmem:[#allocation2 + $0x78] sm:$0xf] %vm444_vm0, %v13739_v2  ;;  %477 = vst.msk [vmem:[#allocation2 + $0x7c] sm:$0xf] %vm444_vm0, %v13739_v2  ;;  %s13984_s18 = scalar_lea.vmem %s16457_s0, %s12905_s14 }
  0x13   : > { %479 = vst.msk [vmem:[#allocation2 + $0x84] sm:$0xf] %vm444_vm0, %v13739_v2  ;;  %480 = vst.msk [vmem:[#allocation2 + $0x88] sm:$0xf] %vm444_vm0, %v13739_v2  ;;  %s13989_s21 = scalar_lea.vmem %s16470_s13, %s12906_s15 }
  0x14   : > { %482 = vst.msk [vmem:[#allocation2 + $0x90] sm:$0xf] %vm444_vm0, %v13739_v2  ;;  %483 = vst.msk [vmem:[#allocation2 + $0x94] sm:$0xf] %vm444_vm0, %v13739_v2 }
  0x15   : > { %485 = vst.msk [vmem:[#allocation2 + $0x9c] sm:$0xf] %vm444_vm0, %v13739_v2  ;;  %486 = vst.msk [vmem:[#allocation2 + $0xa0] sm:$0xf] %vm444_vm0, %v13739_v2 }
  0x16   : > { %488 = vst.msk [vmem:[#allocation2 + $0xa8] sm:$0xf] %vm444_vm0, %v13739_v2  ;;  %489 = vst.msk [vmem:[#allocation2 + $0xac] sm:$0xf] %vm444_vm0, %v13739_v2 }
  0x17   : > { %491 = vst.msk [vmem:[#allocation2 + $0xb4] sm:$0xf] %vm444_vm0, %v13739_v2  ;;  %492 = vst.msk [vmem:[#allocation2 + $0xb8] sm:$0xf] %vm444_vm0, %v13739_v2 }
  0x18   : > { %494 = vst.msk [vmem:[#allocation2 + $0xc0] sm:$0xf] %vm444_vm0, %v13739_v2  ;;  %495 = vst.msk [vmem:[#allocation2 + $0xc4] sm:$0xf] %vm444_vm0, %v13739_v2 }
  0x19   : > { %497 = vst.msk [vmem:[#allocation2 + $0xcc] sm:$0xf] %vm444_vm0, %v13739_v2  ;;  %498 = vst.msk [vmem:[#allocation2 + $0xd0] sm:$0xf] %vm444_vm0, %v13739_v2 }
  0x1a   : > { %500 = vst [vmem:[#allocation3] sm:$0xf] %v13739_v2  ;;  %501 = vst [vmem:[#allocation3 + $0x4] sm:$0x1] %v13739_v2 }
  0x1b   : > { %502 = vst [vmem:[#allocation3 + $0x8] sm:$0xf] %v13739_v2  ;;  %503 = vst [vmem:[#allocation3 + $0xc] sm:$0x1] %v13739_v2 }
  0x1c   : > { %504 = vst [vmem:[#allocation3 + $0x10] sm:$0xf] %v13739_v2  ;;  %505 = vst [vmem:[#allocation3 + $0x14] sm:$0x1] %v13739_v2 }
  0x1d   : > { %506 = vst [vmem:[#allocation3 + $0x18] sm:$0xf] %v13739_v2  ;;  %507 = vst [vmem:[#allocation3 + $0x1c] sm:$0x1] %v13739_v2 }
  0x1e   : > { %508 = vst [vmem:[#allocation3 + $0x20] sm:$0xf] %v13739_v2  ;;  %509 = vst [vmem:[#allocation3 + $0x24] sm:$0x1] %v13739_v2 }
  0x1f   : > { %510 = vst [vmem:[#allocation3 + $0x28] sm:$0xf] %v13739_v2  ;;  %511 = vst [vmem:[#allocation3 + $0x2c] sm:$0x1] %v13739_v2 }
  0x20   : > { %512 = vst [vmem:[#allocation3 + $0x30] sm:$0xf] %v13739_v2  ;;  %513 = vst [vmem:[#allocation3 + $0x34] sm:$0x1] %v13739_v2 }
  0x21   : > { %514 = vst [vmem:[#allocation3 + $0x38] sm:$0xf] %v13739_v2  ;;  %515 = vst [vmem:[#allocation3 + $0x3c] sm:$0x1] %v13739_v2 }
  0x22   : > { %516 = vst [vmem:[#allocation3 + $0x40] sm:$0xf] %v13739_v2  ;;  %517 = vst [vmem:[#allocation3 + $0x44] sm:$0x1] %v13739_v2 }
  0x23   : > { %518 = vst [vmem:[#allocation3 + $0x48] sm:$0xf] %v13739_v2  ;;  %519 = vst [vmem:[#allocation3 + $0x4c] sm:$0x1] %v13739_v2 }
  0x24   : > { %520 = vst [vmem:[#allocation4] sm:$0x77] %v13739_v2  ;;  %521 = vst [vmem:[#allocation4 + $0x8] sm:$0x77] %v13739_v2 }
  0x25   : > { %522 = vst [vmem:[#allocation4 + $0x10] sm:$0x77] %v13739_v2  ;;  %523 = vst [vmem:[#allocation4 + $0x18] sm:$0x77] %v13739_v2 }
  0x26   : > { %524 = vst [vmem:[#allocation4 + $0x20] sm:$0x77] %v13739_v2  ;;  %525 = vst [vmem:[#allocation4 + $0x28] sm:$0x77] %v13739_v2 }
  0x27   : > { %448 = vst.msk [vmem:[#allocation2 + $0x8] sm:$0x1] %vm447_vm1, %v13739_v2  ;;  %451 = vst.msk [vmem:[#allocation2 + $0x14] sm:$0x1] %vm447_vm1, %v13739_v2 }
  0x28   : > { %454 = vst.msk [vmem:[#allocation2 + $0x20] sm:$0x1] %vm447_vm1, %v13739_v2  ;;  %457 = vst.msk [vmem:[#allocation2 + $0x2c] sm:$0x1] %vm447_vm1, %v13739_v2 }
  0x29   : > { %460 = vst.msk [vmem:[#allocation2 + $0x38] sm:$0x1] %vm447_vm1, %v13739_v2  ;;  %463 = vst.msk [vmem:[#allocation2 + $0x44] sm:$0x1] %vm447_vm1, %v13739_v2 }
  0x2a   : > { %466 = vst.msk [vmem:[#allocation2 + $0x50] sm:$0x1] %vm447_vm1, %v13739_v2  ;;  %469 = vst.msk [vmem:[#allocation2 + $0x5c] sm:$0x1] %vm447_vm1, %v13739_v2 }
  0x2b   : > { %472 = vst.msk [vmem:[#allocation2 + $0x68] sm:$0x1] %vm447_vm1, %v13739_v2  ;;  %475 = vst.msk [vmem:[#allocation2 + $0x74] sm:$0x1] %vm447_vm1, %v13739_v2 }
  0x2c   : > { %478 = vst.msk [vmem:[#allocation2 + $0x80] sm:$0x1] %vm447_vm1, %v13739_v2  ;;  %481 = vst.msk [vmem:[#allocation2 + $0x8c] sm:$0x1] %vm447_vm1, %v13739_v2 }
  0x2d   : > { %484 = vst.msk [vmem:[#allocation2 + $0x98] sm:$0x1] %vm447_vm1, %v13739_v2  ;;  %487 = vst.msk [vmem:[#allocation2 + $0xa4] sm:$0x1] %vm447_vm1, %v13739_v2 }
  0x2e   : > { %490 = vst.msk [vmem:[#allocation2 + $0xb0] sm:$0x1] %vm447_vm1, %v13739_v2  ;;  %493 = vst.msk [vmem:[#allocation2 + $0xbc] sm:$0x1] %vm447_vm1, %v13739_v2 }
  0x2f   : > { %496 = vst.msk [vmem:[#allocation2 + $0xc8] sm:$0x1] %vm447_vm1, %v13739_v2  ;;  %499 = vst.msk [vmem:[#allocation2 + $0xd4] sm:$0x1] %vm447_vm1, %v13739_v2 }
  0x30 LB: >> { %v9826_v3 = vld [vmem:[%s16458_s1 + $0x8] sm:$0x3]  ;;  %vm595_vm2 = vcmask 1040384   ;;  %vm596_vm3 = vcmask 1041408   ;;  %v13740_v4 = vmov 0.0   ;;  %v13741_v5 = vmov 65535   ;;  %s13725_s22 = sphi %s13991_s22, %s532_s22  }
  0x31   : >> { %12064 = vmatprep.subr.bf16.mxu0 %v13740_v4  ;;  %12656 = vmatprep.subr.bf16.mxu1 %v13740_v4  ;;  %v597_v6 = vsel %vm595_vm2, 4294967295, %v13741_v5  ;;  %vm13742_vm4 = vmmov 0   ;;  %s11488_s25 = smul.u32 40, %s13725_s22  ;;  %v569_v8 = vld [vmem:[%s16458_s1] sm:$0x3]  ;;  %vm585_vm5 = vcmask 23552  }
  0x32   : >> { %v14003_v7 = vsel %vm596_vm3, %v597_v6, 0  ;;  %12066 = vmatprep.mubr.msk.bf16.mxu0 %vm13742_vm4, %v13740_v4  ;;  %12070 = vmatprep.mubr.msk.bf16.mxu1 %vm13742_vm4, %v13740_v4  ;;  %v9854_v10 = vld [vmem:[%s16458_s1 + $0xa] sm:$0x3]  ;;  %v9839_v16 = vld [vmem:[%s16458_s1 + $0x10] sm:$0x3]  ;;  %vm1174_vm6 = vcmask 277504  }
  0x33   : >> { %v600_v9 = vand.u32 %v9826_v3, %v14003_v7  ;;  %s14018_s30 = scalar_lea.vmem %s13984_s18, %s11488_s25  ;;  %v681_v12 = vand.u32 %v14003_v7, %v569_v8  ;;  %v922_v14 = vand.u32 %v9854_v10, %v14003_v7  ;;  %v764_v18 = vand.u32 %v9839_v16, %v14003_v7  ;;  %v9853_v19 = vld [vmem:[%s16458_s1 + $0x2] sm:$0x3]  ;;  %v9846_v23 = vld [vmem:[%s16458_s1 + $0x18] sm:$0x3]  ;;  %v9861_v26 = vld [vmem:[%s16458_s1 + $0x12] sm:$0x3] }
  0x34   : >> { %v14021_v11 = vld [vmem:[%s14018_s30 + $0x14] sm:$0xff]   ;;  %v14025_v13 = vld [vmem:[%s14018_s30 + $0x1c] sm:$0xff]   ;;  %v14041_v15 = vld [vmem:[%s14018_s30 + $0x24] ss:$0 sps:$4 sm:$0x11]   ;;  %v981_v20 = vand.u32 %v9853_v19, %v14003_v7  ;;  %v852_v25 = vand.u32 %v9846_v23, %v14003_v7  ;;  %v1042_v27 = vand.u32 %v9861_v26, %v14003_v7  ;;  %s9701_s14 = smul.u32 12, %s13725_s22 }
  0x35   : >> { %12065 = vmatpush3.bf16.msra.mxu0 %v600_v9  ;;  %12657 = vmatpush3.bf16.msra.mxu1 %v600_v9  ;;  %v14049_v17 = vld [vmem:[%s14018_s30] sm:$0xff]   ;;  %v14066_v21 = vld [vmem:[%s14018_s30 + $0x8] sm:$0xff]   ;;  %v14078_v22 = vld [vmem:[%s14018_s30 + $0x10] ss:$0 sps:$4 sm:$0x11]   ;;  %s532_s22 = sadd.s32 1, %s13725_s22  }
  0x36   : >> { %12078 = vmatprep.subr.bf16.mxu0 %v13740_v4  ;;  %12120 = vmatprep.subr.bf16.mxu1 %v13740_v4  ;;  %v14092_v24 = vld [vmem:[%s14018_s30 + $0x28] sm:$0xff]   ;;  %v14108_v28 = vld [vmem:[%s14018_s30 + $0x30] sm:$0xff]   ;;  %v14120_v29 = vld [vmem:[%s14018_s30 + $0x38] ss:$0 sps:$4 sm:$0x11]   ;;  %s9702_s15 = scalar_lea.vmem [#allocation2], %s9701_s14 }
  0x37   : >> { %v14131_v30 = vld [vmem:[%s14018_s30 + $0x3c] sm:$0xff]   ;;  %v9865_v31 = vld [vmem:[%s16458_s1 + $0x1a] sm:$0x3]  ;;  %v14146_v33 = vld [vmem:[%s14018_s30 + $0x44] sm:$0xff]   ;;  %vm2050_vm9 = vsmask.f32 256 }
  0x38   : >> { %12067 = vmatmul.mubr.msk.bf16.vlgmr.msra.gmra.mrb[0].mxu0 %vm585_vm5, %v14021_v11  ;;  %12071 = vmatmul.mubr.msk.bf16.vlgmr.msra.gmra.mrb[0].mxu1 %vm585_vm5, %v14025_v13  ;;  %v1108_v32 = vand.u32 %v9865_v31, %v14003_v7  ;;  %v14158_v34 = vld [vmem:[%s14018_s30 + $0x4c] ss:$0 sps:$4 sm:$0x11]   ;;  %v9877_v37 = vld [vmem:[%s16458_s1 + $0x4] sm:$0x3]  ;;  %v9869_v43 = vld [vmem:[%s16460_s3 + $0x10] sm:$0xff] }
  0x39   : >> { %12074 = vmatprep.mubr.msk.bf16.mxu1 %vm13742_vm4, %v13740_v4  ;;  %12079 = vmatpush3.bf16.msra.mxu0 %v681_v12  ;;  %v9878_v35 = vld [vmem:[%s16458_s1 + $0xc] sm:$0x3]  ;;  %v1407_v38 = vand.u32 %v9877_v37, %v14003_v7  ;;  %v9885_v39 = vld [vmem:[%s16458_s1 + $0x14] sm:$0x3]  ;;  %v9889_v41 = vld [vmem:[%s16458_s1 + $0x1c] sm:$0x3] }
  0x3a   : >> { %12080 = vmatprep.mubr.msk.bf16.mxu0 %vm13742_vm4, %v13740_v4  ;;  %12121 = vmatpush3.bf16.msra.mxu1 %v922_v14  ;;  %v1348_v36 = vand.u32 %v9878_v35, %v14003_v7  ;;  %v1468_v40 = vand.u32 %v9885_v39, %v14003_v7  ;;  %v1534_v42 = vand.u32 %v9889_v41, %v14003_v7  ;;  %v9870_v26 = vld [vmem:[%s16460_s3 + $0x18] sm:$0xff]  ;;  %v915_v31 = vld [vmem:[%s16460_s3] sm:$0xff]  ;;  %vm2051_vm10 = vsmask.f32 4368  ;;  %vm2084_vm12 = vmand %vm447_vm1, %vm2050_vm9  ;;  %p529_p4 = scmp.ge.s32.totalorder %s532_s22, 16  }
  0x3b   : >> { %12134 = vmatprep.subr.bf16.mxu1 %v13740_v4  ;;  %12092 = vmatprep.subr.bf16.mxu0 %v13740_v4  ;;  %v9893_v37 = vld [vmem:[%s16460_s3 + $0x20] sm:$0xff]  ;;  %vm2077_vm11 = vsmask.f32 7938  ;;  %vm2052_vm13 = vmor %vm2050_vm9, %vm2051_vm10  ;;  %s14370_s19 = smov (%p529_p4), 0  }
  0x3c   : >> { %vm2078_vm14 = vmand %vm444_vm0, %vm2077_vm11 }
  0x40   : >> { %12075 = vmatmul.mubr.msk.bf16.gmra.mrb[4].mxu1 %vm585_vm5, %v14041_v15 }
  0x41   : >> { %12122 = vmatprep.mubr.msk.bf16.mxu1 %vm13742_vm4, %v13740_v4 }
  0x44   : >> { %12081 = vmatmul.mubr.msk.bf16.vlgmr.msra.gmra.mrb[0].mxu0 %vm585_vm5, %v14049_v17 }
  0x45   : >> { %12084 = vmatprep.mubr.msk.bf16.mxu0 %vm13742_vm4, %v13740_v4  ;;  %12093 = vmatpush3.bf16.msra.mxu0 %v764_v18 }
  0x46   : >> { %12106 = vmatprep.subr.bf16.mxu0 %v13740_v4 }
  0x48   : >> { %12123 = vmatmul.mubr.msk.bf16.vlgmr.msra.gmra.mrb[8].mxu1 %vm585_vm5, %v14021_v11 }
  0x49   : >> { %12126 = vmatprep.mubr.msk.bf16.mxu1 %vm13742_vm4, %v13740_v4  ;;  %12135 = vmatpush3.bf16.msra.mxu1 %v981_v20 }
  0x4a   : >> { %12148 = vmatprep.subr.bf16.mxu1 %v13740_v4 }
  0x4c   : >> { %12085 = vmatmul.mubr.msk.bf16.gmra.mrb[4].mxu0 %vm585_vm5, %v14066_v21 }
  0x4d   : >> { %12088 = vmatprep.mubr.msk.bf16.mxu0 %vm13742_vm4, %v13740_v4 }
  0x50   : >> { %12127 = vmatmul.mubr.msk.bf16.gmra.mrb[12].mxu1 %vm585_vm5, %v14025_v13 }
  0x51   : >> { %12130 = vmatprep.mubr.msk.bf16.mxu1 %vm13742_vm4, %v13740_v4 }
  0x54   : >> { %12089 = vmatmul.mubr.msk.bf16.gmra.mrb[8].mxu0 %vm585_vm5, %v14078_v22 }
  0x55   : >> { %12094 = vmatprep.mubr.msk.bf16.mxu0 %vm13742_vm4, %v13740_v4 }
  0x58   : >> { %12131 = vmatmul.mubr.msk.bf16.gmra.mrb[16].mxu1 %vm585_vm5, %v14041_v15 }
  0x59   : >> { %12136 = vmatprep.mubr.msk.bf16.mxu1 %vm13742_vm4, %v13740_v4 }
  0x5c   : >> { %12095 = vmatmul.mubr.msk.bf16.vlgmr.msra.gmra.mrb[0].mxu0 %vm585_vm5, %v14092_v24 }
  0x5d   : >> { %12098 = vmatprep.mubr.msk.bf16.mxu0 %vm13742_vm4, %v13740_v4  ;;  %12107 = vmatpush3.bf16.msra.mxu0 %v852_v25 }
  0x60   : >> { %12137 = vmatmul.mubr.msk.bf16.vlgmr.msra.gmra.mrb[8].mxu1 %vm585_vm5, %v14049_v17 }
  0x61   : >> { %12140 = vmatprep.mubr.msk.bf16.mxu1 %vm13742_vm4, %v13740_v4  ;;  %12149 = vmatpush3.bf16.msra.mxu1 %v1042_v27 }
  0x62   : >> { %12162 = vmatprep.subr.bf16.mxu1 %v13740_v4 }
  0x64   : >> { %12099 = vmatmul.mubr.msk.bf16.gmra.mrb[4].mxu0 %vm585_vm5, %v14108_v28 }
  0x65   : >> { %12102 = vmatprep.mubr.msk.bf16.mxu0 %vm13742_vm4, %v13740_v4 }
  0x68   : >> { %12141 = vmatmul.mubr.msk.bf16.gmra.mrb[12].mxu1 %vm585_vm5, %v14066_v21 }
  0x69   : >> { %12144 = vmatprep.mubr.msk.bf16.mxu1 %vm13742_vm4, %v13740_v4 }
  0x6c   : >> { %12103 = vmatmul.mubr.msk.bf16.gmra.mrb[8].mxu0 %vm585_vm5, %v14120_v29 }
  0x6d   : >> { %12108 = vmatprep.mubr.msk.bf16.mxu0 %vm13742_vm4, %v13740_v4 }
  0x70   : >> { %12145 = vmatmul.mubr.msk.bf16.gmra.mrb[16].mxu1 %vm585_vm5, %v14078_v22 }
  0x71   : >> { %12150 = vmatprep.mubr.msk.bf16.mxu1 %vm13742_vm4, %v13740_v4 }
  0x74   : >> { %12109 = vmatmul.mubr.msk.bf16.vlgmr.msra.gmra.mrb[0].mxu0 %vm585_vm5, %v14131_v30 }
  0x75   : >> { %12112 = vmatprep.mubr.msk.bf16.mxu0 %vm13742_vm4, %v13740_v4 }
  0x78   : >> { %12151 = vmatmul.mubr.msk.bf16.vlgmr.msra.gmra.mrb[8].mxu1 %vm585_vm5, %v14092_v24 }
  0x79   : >> { %12154 = vmatprep.mubr.msk.bf16.mxu1 %vm13742_vm4, %v13740_v4  ;;  %12163 = vmatpush3.bf16.msra.mxu1 %v1108_v32 }
  0x7a   : >> { %12202 = vmatprep.subr.bf16.mxu1 %v13740_v4 }
  0x7c   : >> { %12113 = vmatmul.mubr.msk.bf16.gmra.mrb[4].mxu0 %vm585_vm5, %v14146_v33 }
  0x7d   : >> { %12116 = vmatprep.mubr.msk.bf16.mxu0 %vm13742_vm4, %v13740_v4 }
  0x80   : >> { %12155 = vmatmul.mubr.msk.bf16.gmra.mrb[12].mxu1 %vm585_vm5, %v14108_v28 }
  0x81   : >> { %12158 = vmatprep.mubr.msk.bf16.mxu1 %vm13742_vm4, %v13740_v4 }
  0x84   : >> { %12117 = vmatmul.mubr.msk.bf16.gmra.mrb[8].mxu0 %vm585_vm5, %v14158_v34 }
  0x85   : >> { %12186 = vmatprep.mubr.msk.f32.mxu0 %vm1174_vm6, %v9869_v43 }
  0x88   : >> { %12159 = vmatmul.mubr.msk.bf16.gmra.mrb[16].mxu1 %vm585_vm5, %v14120_v29 }
  0x89   : >> { %12164 = vmatprep.mubr.msk.bf16.mxu1 %vm13742_vm4, %v13740_v4 }
  0x90   : >> { %12165 = vmatmul.mubr.msk.bf16.vlgmr.msra.gmra.mrb[8].mxu1 %vm585_vm5, %v14131_v30 }
  0x91   : >> { %12168 = vmatprep.mubr.msk.bf16.mxu1 %vm13742_vm4, %v13740_v4  ;;  %12203 = vmatpush3.bf16.msra.mxu1 %v1348_v36  ;;  %v916_v36 = vld [vmem:[%s16460_s3 + $0x8] sm:$0xff] }
  0x92   : >> { %12216 = vmatprep.subr.bf16.mxu1 %v13740_v4 }
  0x98   : >> { %12169 = vmatmul.mubr.msk.bf16.gmra.mrb[12].mxu1 %vm585_vm5, %v14146_v33 }
  0x99   : >> { %12172 = vmatprep.mubr.msk.bf16.mxu1 %vm13742_vm4, %v13740_v4 }
  0xa0   : >> { %12173 = vmatmul.mubr.msk.bf16.gmra.mrb[16].mxu1 %vm585_vm5, %v14158_v34 }
  0xa1   : >> { %12204 = vmatprep.mubr.msk.bf16.mxu1 %vm13742_vm4, %v13740_v4 }
  0xa8   : >> { %12205 = vmatmul.mubr.msk.bf16.vlgmr.msra.gmra.mrb[20].mxu1 %vm585_vm5, %v14021_v11 }
  0xa9   : >> { %12208 = vmatprep.mubr.msk.bf16.mxu1 %vm13742_vm4, %v13740_v4  ;;  %12217 = vmatpush3.bf16.msra.mxu1 %v1407_v38 }
  0xaa   : >> { %12230 = vmatprep.subr.bf16.mxu1 %v13740_v4 }
  0xb0   : >> { %12209 = vmatmul.mubr.msk.bf16.gmra.mrb[24].mxu1 %vm585_vm5, %v14025_v13 }
  0xb1   : >> { %12212 = vmatprep.mubr.msk.bf16.mxu1 %vm13742_vm4, %v13740_v4 }
  0xb8   : >> { %12213 = vmatmul.mubr.msk.bf16.gmra.mrb[28].mxu1 %vm585_vm5, %v14041_v15 }
  0xb9   : >> { %12218 = vmatprep.mubr.msk.bf16.mxu1 %vm13742_vm4, %v13740_v4 }
  0xc0   : >> { %12219 = vmatmul.mubr.msk.bf16.vlgmr.msra.gmra.mrb[20].mxu1 %vm585_vm5, %v14049_v17 }
  0xc1   : >> { %12222 = vmatprep.mubr.msk.bf16.mxu1 %vm13742_vm4, %v13740_v4  ;;  %12231 = vmatpush3.bf16.msra.mxu1 %v1468_v40 }
  0xc2   : >> { %12244 = vmatprep.subr.bf16.mxu1 %v13740_v4 }
  0xc8   : >> { %12223 = vmatmul.mubr.msk.bf16.gmra.mrb[24].mxu1 %vm585_vm5, %v14066_v21 }
  0xc9   : >> { %12226 = vmatprep.mubr.msk.bf16.mxu1 %vm13742_vm4, %v13740_v4 }
  0xd0   : >> { %12227 = vmatmul.mubr.msk.bf16.gmra.mrb[28].mxu1 %vm585_vm5, %v14078_v22 }
  0xd1   : >> { %12232 = vmatprep.mubr.msk.bf16.mxu1 %vm13742_vm4, %v13740_v4 }
  0xd8   : >> { %12233 = vmatmul.mubr.msk.bf16.vlgmr.msra.gmra.mrb[20].mxu1 %vm585_vm5, %v14092_v24 }
  0xd9   : >> { %12236 = vmatprep.mubr.msk.bf16.mxu1 %vm13742_vm4, %v13740_v4  ;;  %12245 = vmatpush3.bf16.msra.mxu1 %v1534_v42 }
  0xe0   : >> { %12237 = vmatmul.mubr.msk.bf16.gmra.mrb[24].mxu1 %vm585_vm5, %v14108_v28 }
  0xe1   : >> { %12240 = vmatprep.mubr.msk.bf16.mxu1 %vm13742_vm4, %v13740_v4 }
  0xe8   : >> { %12241 = vmatmul.mubr.msk.bf16.gmra.mrb[28].mxu1 %vm585_vm5, %v14120_v29 }
  0xe9   : >> { %12246 = vmatprep.mubr.msk.bf16.mxu1 %vm13742_vm4, %v13740_v4 }
  0xf0   : >> { %12247 = vmatmul.mubr.msk.bf16.vlgmr.msra.gmra.mrb[20].mxu1 %vm585_vm5, %v14131_v30 }
  0xf1   : >> { %12250 = vmatprep.mubr.msk.bf16.mxu1 %vm13742_vm4, %v13740_v4 }
  0xf8   : >> { %12251 = vmatmul.mubr.msk.bf16.gmra.mrb[24].mxu1 %vm585_vm5, %v14146_v33 }
  0xf9   : >> { %12254 = vmatprep.mubr.msk.bf16.mxu1 %vm13742_vm4, %v13740_v4 }
 0x100   : >> { %12255 = vmatmul.mubr.msk.bf16.gmra.mrb[28].mxu1 %vm585_vm5, %v14158_v34 }
 0x10b   : >> { %v644_v44 = vpop.f32.mrb[0].mxu1 }
 0x10c   : >> { %v12072_v45 = vpop.f32.mrb[1].mxu1 }
 0x10d   : >> { %v647_v46 = vpop.f32.mrb[2].mxu1 }
 0x10e   : >> { %v12073_v47 = vpop.f32.mrb[3].mxu1 }
 0x113   : >> { %v652_v48 = vpop.f32.mrb[4].mxu1 }
 0x114   : >> { %v12076_v49 = vpop.f32.mrb[5].mxu1 }
 0x115   : >> { %v655_v50 = vpop.f32.mrb[6].mxu1 }
 0x116   : >> { %v12077_v51 = vpop.f32.mrb[7].mxu1  ;;  %v9894_v50 = vld [vmem:[%s16460_s3 + $0x28] sm:$0xff] }
 0x147   : >> { %v888_v52 = vpop.f32.mrb[0].mxu0 }
 0x148   : >> { %v12110_v53 = vpop.f32.mrb[1].mxu0 }
 0x149   : >> { %v891_v54 = vpop.f32.mrb[2].mxu0  ;;  %v9898_v53 = vld [vmem:[%s16458_s1 + $0x6] sm:$0x3] }
 0x14a   : >> { %v12596_v55 = vpack.c.bf16 %v891_v54, %v888_v52  ;;  %v12111_v56 = vpop.f32.mrb[3].mxu0 }
 0x14b   : >> { %v1750_v56 = vand.u32 %v9898_v53, %v14003_v7 }
 0x14f   : >> { %v896_v57 = vpop.f32.mrb[4].mxu0 }
 0x150   : >> { %v12658_v58 = vadd.f32 %v896_v57, %v644_v44  ;;  %v12114_v59 = vpop.f32.mrb[5].mxu0 }
 0x151   : >> { %v899_v60 = vpop.f32.mrb[6].mxu0  ;;  %v9915_v59 = vld [vmem:[%s16460_s3 + $0x38] sm:$0xff] }
 0x152   : >> { %v12659_v61 = vadd.f32 %v899_v60, %v647_v46  ;;  %v12115_v62 = vpop.f32.mrb[7].mxu0 }
 0x154   : >> { %v12600_v63 = vpack.c.bf16 %v12659_v61, %v12658_v58 }
 0x157   : >> { %v904_v0 = vpop.f32.mrb[8].mxu0 }
 0x158   : >> { %v12660_v2 = vadd.f32 %v904_v0, %v652_v48  ;;  %v12118_v3 = vpop.f32.mrb[9].mxu0  ;;  %v9899_v48 = vld [vmem:[%s16458_s1 + $0xe] sm:$0x3] }
 0x159   : >> { %v907_v5 = vpop.f32.mrb[10].mxu0  ;;  %v1691_v51 = vand.u32 %v9899_v48, %v14003_v7 }
 0x15a   : >> { %v12119_v6 = vpop.f32.mrb[11].mxu0 }
 0x163   : >> { %v1144_v8 = vpop.f32.mrb[8].mxu1 }
 0x164   : >> { %v12166_v9 = vpop.f32.mrb[9].mxu1 }
 0x165   : >> { %v1147_v10 = vpop.f32.mrb[10].mxu1 }
 0x166   : >> { %v12588_v12 = vpack.c.bf16 %v1147_v10, %v1144_v8  ;;  %v12167_v14 = vpop.f32.mrb[11].mxu1 }
 0x168   : >> { %12589 = vmatprep.subr.bf16.mxu0 %v12588_v12 }
 0x169   : >> { %12591 = vmatpush3.bf16.msra.mxu0 %v12588_v12 }
 0x16b   : >> { %v1152_v16 = vpop.f32.mrb[12].mxu1 }
 0x16c   : >> { %v12170_v18 = vpop.f32.mrb[13].mxu1 }
 0x16d   : >> { %v1155_v19 = vpop.f32.mrb[14].mxu1 }
 0x16e   : >> { %v12592_v20 = vpack.c.bf16 %v1155_v19, %v1152_v16  ;;  %v12171_v23 = vpop.f32.mrb[15].mxu1 }
 0x170   : >> { %12593 = vmatprep.subr.bf16.mxu0 %v12592_v20 }
 0x171   : >> { %12595 = vmatpush3.bf16.msra.mxu0 %v12592_v20  ;;  %v9925_v20 = vld [vmem:[%s9702_s15 + $0x14] sm:$0x1] }
 0x173   : >> { %v1160_v25 = vpop.f32.mrb[16].mxu1 }
 0x174   : >> { %v12174_v27 = vpop.f32.mrb[17].mxu1  ;;  %12184 = vmatprep.subr.msk.mxu0 %vm596_vm3, %v1160_v25 }
 0x175   : >> { %v1163_v32 = vpop.f32.mrb[18].mxu1  ;;  %12185 = vmatpush3.msk.msra.mxu0 %vm596_vm3, %v1160_v25 }
 0x176   : >> { %v12175_v35 = vpop.f32.mrb[19].mxu1  ;;  %12597 = vmatprep.subr.bf16.mxu0 %v12596_v55  ;;  %12187 = vmatmul.mubr.msk.f32.vlgmr.msra.gmra.mrb[12].mxu0 %vm1174_vm6, %v9870_v26 }
 0x177   : >> { %12599 = vmatpush3.bf16.msra.mxu0 %v12596_v55  ;;  %12199 = vmatprep.mubr.msk.f32.mxu0 %vm1174_vm6, %v915_v31  ;;  %v9922_v31 = vld [vmem:[%s9702_s15 + $0xc] sm:$0xf] }
 0x178   : >> { %12601 = vmatprep.subr.bf16.mxu0 %v12600_v63 }
 0x17b   : >> { %12603 = vmatpush3.bf16.msra.mxu0 %v12600_v63 }
 0x17c   : >> { %12197 = vmatprep.subr.msk.mxu0 %vm596_vm3, %v12660_v2 }
 0x17f   : >> { %12198 = vmatpush3.msk.msra.mxu0 %vm596_vm3, %v12660_v2 }
 0x180   : >> { %12200 = vmatmul.mubr.msk.f32.vlgmr.msra.gmra.mrb[12].mxu0 %vm1174_vm6, %v916_v36 }
 0x181   : >> { %12268 = vmatprep.mubr.msk.f32.mxu0 %vm1174_vm6, %v9893_v37 }
 0x1c3   : >> { %v1570_v38 = vpop.f32.mrb[20].mxu1 }
 0x1c4   : >> { %v12248_v39 = vpop.f32.mrb[21].mxu1 }
 0x1c5   : >> { %v1573_v40 = vpop.f32.mrb[22].mxu1  ;;  %v14368_v39 = vld [vmem:[%s16462_s5] ss:$0 sm:$0xff] (%p529_p4) }
 0x1c6   : >> { %v12604_v41 = vpack.c.bf16 %v1573_v40, %v1570_v38  ;;  %v12249_v42 = vpop.f32.mrb[23].mxu1 }
 0x1c8   : >> { %12605 = vmatprep.subr.bf16.mxu0 %v12604_v41 }
 0x1c9   : >> { %12607 = vmatpush3.bf16.msra.mxu0 %v12604_v41 }
 0x1cb   : >> { %v1578_v43 = vpop.f32.mrb[24].mxu1 }
 0x1cc   : >> { %v12252_v44 = vpop.f32.mrb[25].mxu1 }
 0x1cd   : >> { %v1581_v45 = vpop.f32.mrb[26].mxu1 }
 0x1ce   : >> { %v12608_v46 = vpack.c.bf16 %v1581_v45, %v1578_v43  ;;  %v12253_v47 = vpop.f32.mrb[27].mxu1 }
 0x1d0   : >> { %12609 = vmatprep.subr.bf16.mxu0 %v12608_v46 }
 0x1d1   : >> { %12611 = vmatpush3.bf16.msra.mxu0 %v12608_v46 }
 0x1d3   : >> { %v1586_v49 = vpop.f32.mrb[28].mxu1 }
 0x1d4   : >> { %v12256_v52 = vpop.f32.mrb[29].mxu1  ;;  %12266 = vmatprep.subr.msk.mxu0 %vm596_vm3, %v1586_v49 }
 0x1d5   : >> { %v1589_v54 = vpop.f32.mrb[30].mxu1  ;;  %12267 = vmatpush3.msk.msra.mxu0 %vm596_vm3, %v1586_v49 }
 0x1d6   : >> { %v12257_v55 = vpop.f32.mrb[31].mxu1  ;;  %12269 = vmatmul.mubr.msk.f32.vlgmr.msra.gmra.mrb[12].mxu0 %vm1174_vm6, %v9894_v50  ;;  %12271 = vmatprep.subr.bf16.mxu0 %v13740_v4 }
 0x1d7   : >> { %12272 = vmatpush3.bf16.msra.mxu0 %v1691_v51  ;;  %12273 = vmatprep.mubr.msk.bf16.mxu0 %vm13742_vm4, %v13740_v4 }
 0x1d8   : >> { %12285 = vmatprep.subr.bf16.mxu0 %v13740_v4 }
 0x1da   : >> { %12274 = vmatmul.mubr.msk.bf16.vlgmr.msra.gmra.mrb[16].mxu0 %vm585_vm5, %v14021_v11  ;;  %v9906_v11 = vld [vmem:[%s16458_s1 + $0x16] sm:$0x3] }
 0x1db   : >> { %12277 = vmatprep.mubr.msk.bf16.mxu0 %vm13742_vm4, %v13740_v4  ;;  %12286 = vmatpush3.bf16.msra.mxu0 %v1750_v56  ;;  %v1811_v57 = vand.u32 %v9906_v11, %v14003_v7 }
 0x1dc   : >> { %12299 = vmatprep.subr.bf16.mxu0 %v13740_v4 }
 0x1e2   : >> { %12278 = vmatmul.mubr.msk.bf16.gmra.mrb[20].mxu0 %vm585_vm5, %v14025_v13  ;;  %v9910_v13 = vld [vmem:[%s16458_s1 + $0x1e] sm:$0x3] }
 0x1e3   : >> { %12281 = vmatprep.mubr.msk.bf16.mxu0 %vm13742_vm4, %v13740_v4 }
 0x1ea   : >> { %12282 = vmatmul.mubr.msk.bf16.gmra.mrb[24].mxu0 %vm585_vm5, %v14041_v15  ;;  %v1877_v15 = vand.u32 %v9910_v13, %v14003_v7  ;;  %v9914_v7 = vld [vmem:[%s16460_s3 + $0x30] sm:$0xff] }
 0x1eb   : >> { %12287 = vmatprep.mubr.msk.bf16.mxu0 %vm13742_vm4, %v13740_v4 }
 0x1f2   : >> { %12288 = vmatmul.mubr.msk.bf16.vlgmr.msra.gmra.mrb[16].mxu0 %vm585_vm5, %v14049_v17 }
 0x1f3   : >> { %12291 = vmatprep.mubr.msk.bf16.mxu0 %vm13742_vm4, %v13740_v4  ;;  %12300 = vmatpush3.bf16.msra.mxu0 %v1811_v57 }
 0x1f4   : >> { %12313 = vmatprep.subr.bf16.mxu0 %v13740_v4 }
 0x1fa   : >> { %12292 = vmatmul.mubr.msk.bf16.gmra.mrb[20].mxu0 %vm585_vm5, %v14066_v21 }
 0x1fb   : >> { %12295 = vmatprep.mubr.msk.bf16.mxu0 %vm13742_vm4, %v13740_v4 }
 0x202   : >> { %12296 = vmatmul.mubr.msk.bf16.gmra.mrb[24].mxu0 %vm585_vm5, %v14078_v22 }
 0x203   : >> { %12301 = vmatprep.mubr.msk.bf16.mxu0 %vm13742_vm4, %v13740_v4 }
 0x20a   : >> { %12302 = vmatmul.mubr.msk.bf16.vlgmr.msra.gmra.mrb[16].mxu0 %vm585_vm5, %v14092_v24 }
 0x20b   : >> { %12305 = vmatprep.mubr.msk.bf16.mxu0 %vm13742_vm4, %v13740_v4  ;;  %12314 = vmatpush3.bf16.msra.mxu0 %v1877_v15 }
 0x212   : >> { %12306 = vmatmul.mubr.msk.bf16.gmra.mrb[20].mxu0 %vm585_vm5, %v14108_v28 }
 0x213   : >> { %12309 = vmatprep.mubr.msk.bf16.mxu0 %vm13742_vm4, %v13740_v4 }
 0x21a   : >> { %12310 = vmatmul.mubr.msk.bf16.gmra.mrb[24].mxu0 %vm585_vm5, %v14120_v29 }
 0x21b   : >> { %12315 = vmatprep.mubr.msk.bf16.mxu0 %vm13742_vm4, %v13740_v4 }
 0x222   : >> { %12316 = vmatmul.mubr.msk.bf16.vlgmr.msra.gmra.mrb[16].mxu0 %vm585_vm5, %v14131_v30 }
 0x223   : >> { %12319 = vmatprep.mubr.msk.bf16.mxu0 %vm13742_vm4, %v13740_v4 }
 0x22a   : >> { %12320 = vmatmul.mubr.msk.bf16.gmra.mrb[20].mxu0 %vm585_vm5, %v14146_v33 }
 0x22b   : >> { %12323 = vmatprep.mubr.msk.bf16.mxu0 %vm13742_vm4, %v13740_v4 }
 0x232   : >> { %12324 = vmatmul.mubr.msk.bf16.gmra.mrb[24].mxu0 %vm585_vm5, %v14158_v34 }
 0x233   : >> { %12337 = vmatprep.mubr.msk.f32.mxu0 %vm1174_vm6, %v9914_v7 }
 0x2f5   : >> { %v1913_v17 = vpop.f32.mrb[16].mxu0 }
 0x2f6   : >> { %v12317_v21 = vpop.f32.mrb[17].mxu0 }
 0x2f7   : >> { %v1916_v22 = vpop.f32.mrb[18].mxu0 }
 0x2f8   : >> { %v12612_v24 = vpack.c.bf16 %v1916_v22, %v1913_v17  ;;  %v12318_v28 = vpop.f32.mrb[19].mxu0 }
 0x2fa   : >> { %12613 = vmatprep.subr.bf16.mxu0 %v12612_v24 }
 0x2fb   : >> { %12615 = vmatpush3.bf16.msra.mxu0 %v12612_v24 }
 0x2fd   : >> { %v1921_v29 = vpop.f32.mrb[20].mxu0 }
 0x2fe   : >> { %v12321_v30 = vpop.f32.mrb[21].mxu0 }
 0x2ff   : >> { %v1924_v33 = vpop.f32.mrb[22].mxu0 }
 0x300   : >> { %v12616_v4 = vpack.c.bf16 %v1924_v33, %v1921_v29  ;;  %v12322_v58 = vpop.f32.mrb[23].mxu0 }
 0x302   : >> { %12617 = vmatprep.subr.bf16.mxu0 %v12616_v4 }
 0x303   : >> { %12619 = vmatpush3.bf16.msra.mxu0 %v12616_v4 }
 0x305   : >> { %v1929_v34 = vpop.f32.mrb[24].mxu0 }
 0x306   : >> { %v12325_v60 = vpop.f32.mrb[25].mxu0  ;;  %12335 = vmatprep.subr.msk.mxu0 %vm596_vm3, %v1929_v34 }
 0x307   : >> { %v1932_v61 = vpop.f32.mrb[26].mxu0  ;;  %12336 = vmatpush3.msk.msra.mxu0 %vm596_vm3, %v1929_v34 }
 0x308   : >> { %v12326_v62 = vpop.f32.mrb[27].mxu0  ;;  %12338 = vmatmul.mubr.msk.f32.vlgmr.msra.gmra.mrb[12].mxu0 %vm1174_vm6, %v9915_v59 }
 0x3db   : >> { %v12339_v63 = vpop.f32.mrb[12].mxu0 }
 0x3dc   : >> { %v2036_v0 = vadd.f32 %v12339_v63, %v13841_v1  ;;  %v2018_v2 = vpop.f32.mrb[13].mxu0 }
 0x3dd   : >> { %v2035_v3 = vadd.f32 %v13841_v1, %v2018_v2 }
 0x3de   : >> { %vm2038_vm7 = vcmp.ge.f32.partialorder %v2036_v0, 0.0  ;;  %v2040_v5 = vmul.f32 0.2, %v2036_v0 }
 0x3df   : >> { %vm2037_vm8 = vcmp.ge.f32.partialorder %v2035_v3, 0.0  ;;  %v2039_v6 = vmul.f32 0.2, %v2035_v3 }
 0x3e0   : >> { %v2042_v8 = vsel %vm2038_vm7, %v2036_v0, %v2040_v5 }
 0x3e1   : >> { %v11490_v9 = vpack.c.bf16 %v2042_v8, %v2042_v8  ;;  %v2041_v10 = vsel %vm2037_vm8, %v2035_v3, %v2039_v6 }
 0x3e2   : >> { %v11489_v12 = vpack.c.bf16 %v2041_v10, %v2041_v10 }
 0x3e3   : >> { %v2062_v14 = vshrl.u32 %v11490_v9, 16  ;;  %v2065_v19 = vshll.u32 %v11490_v9, 16 }
 0x3e4   : >> { %v2054_v16 = vshrl.u32 %v11489_v12, 16  ;;  %v2057_v25 = vshll.u32 %v11489_v12, 16 }
 0x3e5   : >> { %v2064_v18 = vrot.slane %v2062_v14, 7  ;;  %531 = sbr.rel (!%p529_p4) target bundleno = 48 (0x30), region = 222 }
 0x3e6   : >> { %v2056_v23 = vrot.slane %v2054_v16, 7 }
 0x3e7   : >> { %v2067_v26 = vor.u32 %v2065_v19, %v2064_v18  ;;  %v2069_v27 = vrot.slane %v2064_v18, 4 }
 0x3e8   : >> { %v2059_v32 = vor.u32 %v2057_v25, %v2056_v23  ;;  %v2060_v35 = vrot.slane %v2056_v23, 4 }
 0x3e9   : >> { %v2086_v36 = vsel %vm2084_vm12, %v2069_v27, %v9925_v20 }
 0x3ea   : >> { %9926 = vst [vmem:[%s9702_s15 + $0x14] sm:$0x1] %v2086_v36  ;;  %v2068_v37 = vsel %vm2052_vm13, %v2060_v35, %v2067_v26  ;;  %v2080_v38 = vsel %vm2078_vm14, %v2059_v32, %v9922_v31 }
 0x3eb   : >> { %9923 = vst [vmem:[%s9702_s15 + $0xc] sm:$0xf] %v2080_v38  ;;  %9924 = vst.msk [vmem:[%s9702_s15 + $0x10] sm:$0xf] %vm444_vm0, %v2068_v37 }
 0x3ec LB: >> { %v12971_v40 = vld [vmem:[%s16461_s4 + $0xa0] sm:$0xff]   ;;  %v12973_v41 = vld [vmem:[%s16461_s4 + $0xa8] sm:$0xff]   ;;  %s11491_s26 = smul.u32 24, %s13729_s19  ;;  %v12975_v43 = vld [vmem:[%s16461_s4 + $0xb0] sm:$0xff]   ;;  %vm2172_vm15 = vcmask 523264   ;;  %v13743_v2 = vmov 0.0|0.0   ;;  %s13729_s19 = sphi %s14370_s19, %s2094_s19  }
 0x3ed   : >> { %v12972_v1 = vld [vmem:[%s16461_s4 + $0x80] sm:$0xff]   ;;  %12388 = vmatprep.subr.bf16.mxu1 %v12971_v40  ;;  %v12974_v42 = vld [vmem:[%s16461_s4 + $0x88] sm:$0xff]   ;;  %v12976_v44 = vld [vmem:[%s16461_s4 + $0x90] sm:$0xff]   ;;  %vm13744_vm0 = vmmov 0   ;;  %v13745_v3 = vmov 0.0   ;;  %vm2842_vm1 = vcmask 146432  }
 0x3ee   : >> { %12340 = vmatprep.subr.bf16.mxu0 %v12972_v1  ;;  %12389 = vmatpush3.bf16.msra.mxu1 %v12971_v40  ;;  %v12977_v45 = vld [vmem:[%s16461_s4 + $0xb8] sm:$0xff]   ;;  %s14397_s20 = scalar_lea.vmem [#allocation2], %s11491_s26  ;;  %v12980_v48 = vld [vmem:[%s16461_s4 + $0x20] sm:$0xff]   ;;  %v12983_v51 = vld [vmem:[%s16461_s4 + $0x28] sm:$0xff]   ;;  %s10182_s26 = sshll.u32 %s13729_s19, 3  ;;  %vm3842_vm5 = vcmask 1043456  }
 0x3ef   : >> { %12341 = vmatpush3.bf16.msra.mxu0 %v12972_v1  ;;  %12390 = vmatprep.subr.bf16.mxu1 %v12973_v41  ;;  %v12978_v47 = vld [vmem:[%s16461_s4 + $0x98] sm:$0xff]   ;;  %v12981_v50 = vld [vmem:[%s16461_s4] sm:$0xff]   ;;  %v12984_v52 = vld [vmem:[%s16461_s4 + $0x8] sm:$0xff]   ;;  %s9719_s28 = scalar_lea.vmem [#allocation3], %s10182_s26  ;;  %s2094_s19 = sadd.s32 1, %s13729_s19  }
 0x3f0   : >> { %12342 = vmatprep.subr.bf16.mxu0 %v12974_v42  ;;  %v12985_v54 = vld [vmem:[%s16461_s4 + $0x30] sm:$0xff]   ;;  %v12987_v56 = vld [vmem:[%s16461_s4 + $0x38] sm:$0xff]   ;;  %v12990_v57 = vld [vmem:[%s16461_s4 + $0x120] sm:$0xff]   ;;  %p2091_p5 = scmp.ge.s32.totalorder %s2094_s19, 8  }
 0x3f1   : >> { %v12986_v55 = vld [vmem:[%s16461_s4 + $0x10] sm:$0xff]   ;;  %v12988_v11 = vld [vmem:[%s16461_s4 + $0x18] sm:$0xff]   ;;  %v12991_v13 = vld [vmem:[%s16461_s4 + $0x100] sm:$0xff]   ;;  %s14710_s29 = smov (%p2091_p5), 0  }
 0x3f2   : >> { %12391 = vmatpush3.bf16.msra.mxu1 %v12973_v41  ;;  %v14400_v46 = vld [vmem:[%s14397_s20 + $0xc] sm:$0xff]   ;;  %v14413_v49 = vld [vmem:[%s14397_s20 + $0x14] ss:$0 sps:$4 sm:$0x11]   ;;  %v14427_v53 = vld [vmem:[%s14397_s20] sm:$0xff]  }
 0x3f3   : >> { %12343 = vmatpush3.bf16.msra.mxu0 %v12974_v42  ;;  %12392 = vmatprep.subr.bf16.mxu1 %v12975_v43  ;;  %v14454_v15 = vld [vmem:[%s14397_s20 + $0x8] ss:$0 sps:$4 sm:$0x11]   ;;  %v14463_v21 = vld [vmem:[%s14397_s20 + $0x18] sm:$0xff]   ;;  %v12995_v22 = vld [vmem:[%s16461_s4 + $0x130] sm:$0xff]  }
 0x3f4   : >> { %12344 = vmatprep.subr.bf16.mxu0 %v12976_v44  ;;  %12396 = vmatprep.mubr.msk.bf16.mxu1 %vm2172_vm15, %v14400_v46  ;;  %v12993_v7 = vld [vmem:[%s16461_s4 + $0x128] sm:$0xff]   ;;  %v12996_v24 = vld [vmem:[%s16461_s4 + $0x110] sm:$0xff]   ;;  %v12997_v28 = vld [vmem:[%s16461_s4 + $0x138] sm:$0xff]  }
 0x3f5   : >> { %12348 = vmatprep.mubr.msk.bf16.mxu0 %vm2172_vm15, %v14400_v46  ;;  %v12994_v17 = vld [vmem:[%s16461_s4 + $0x108] sm:$0xff]   ;;  %v12998_v29 = vld [vmem:[%s16461_s4 + $0x118] sm:$0xff]   ;;  %v13000_v30 = vld [vmem:[%s16461_s4 + $0x1a0] sm:$0xff]  }
 0x3f6   : >> { %12393 = vmatpush3.bf16.msra.mxu1 %v12975_v43  ;;  %v13001_v33 = vld [vmem:[%s16461_s4 + $0x180] sm:$0xff]   ;;  %v13003_v58 = vld [vmem:[%s16461_s4 + $0x1a8] sm:$0xff]   ;;  %v13005_v60 = vld [vmem:[%s16461_s4 + $0x1b0] sm:$0xff]  }
 0x3f7   : >> { %12345 = vmatpush3.bf16.msra.mxu0 %v12976_v44  ;;  %12394 = vmatprep.subr.bf16.mxu1 %v12977_v45  ;;  %v14492_v4 = vld [vmem:[%s14397_s20 + $0x20] ss:$0 sps:$4 sm:$0x11]   ;;  %v13004_v34 = vld [vmem:[%s16461_s4 + $0x188] sm:$0xff]   ;;  %v13006_v61 = vld [vmem:[%s16461_s4 + $0x190] sm:$0xff]  }
 0x3f8   : >> { %12346 = vmatprep.subr.bf16.mxu0 %v12978_v47  ;;  %v14501_v59 = vld [vmem:[%s14397_s20 + $0x24] sm:$0xff]   ;;  %v13007_v62 = vld [vmem:[%s16461_s4 + $0x1b8] sm:$0xff]   ;;  %v14524_v0 = vld [vmem:[%s14397_s20 + $0x2c] ss:$0 sps:$4 sm:$0x11]  }
 0x3f9   : >> { %v13008_v63 = vld [vmem:[%s16461_s4 + $0x198] sm:$0xff]   ;;  %v10057_v20 = vld [vmem:[%s16463_s6 + $0x8] sm:$0xff]  ;;  %v13011_v23 = vld [vmem:[%s16461_s4 + $0xc0] sm:$0xff]  }
 0x3fa   : >> { %12395 = vmatpush3.bf16.msra.mxu1 %v12977_v45  ;;  %v2509_v25 = vld [vmem:[%s16463_s6] sm:$0xff]  ;;  %v13012_v26 = vld [vmem:[%s16461_s4 + $0xc8] sm:$0xff]   ;;  %v13013_v27 = vld [vmem:[%s16461_s4 + $0xd0] sm:$0xff]  }
 0x3fb   : >> { %12347 = vmatpush3.bf16.msra.mxu0 %v12978_v47  ;;  %12400 = vmatprep.subr.bf16.mxu1 %v12980_v48  ;;  %v13014_v31 = vld [vmem:[%s16461_s4 + $0xd8] sm:$0xff]   ;;  %v13015_v32 = vld [vmem:[%s16461_s4 + $0x40] sm:$0xff]   ;;  %v13016_v35 = vld [vmem:[%s16461_s4 + $0x48] sm:$0xff]  }
 0x3fc   : >> { %12352 = vmatprep.subr.bf16.mxu0 %v12981_v50  ;;  %v13017_v36 = vld [vmem:[%s16461_s4 + $0x50] sm:$0xff]   ;;  %v13018_v37 = vld [vmem:[%s16461_s4 + $0x58] sm:$0xff]   ;;  %v13019_v38 = vld [vmem:[%s16461_s4 + $0x140] sm:$0xff]  }
 0x3fd   : >> { %12397 = vmatmul.mubr.msk.bf16.vlgmr.msra.gmra.mrb[0].mxu1 %vm2172_vm15, %v14413_v49  ;;  %v13020_v40 = vld [vmem:[%s16461_s4 + $0x148] sm:$0xff]   ;;  %v13021_v1 = vld [vmem:[%s16461_s4 + $0x150] sm:$0xff]   ;;  %v13022_v41 = vld [vmem:[%s16461_s4 + $0x158] sm:$0xff]  }
 0x3fe   : >> { %12401 = vmatpush3.bf16.msra.mxu1 %v12980_v48  ;;  %12349 = vmatmul.mubr.msk.bf16.vlgmr.msra.gmra.mrb[0].mxu0 %vm2172_vm15, %v14413_v49  ;;  %v13023_v42 = vld [vmem:[%s16461_s4 + $0x1c0] sm:$0xff]   ;;  %v13024_v43 = vld [vmem:[%s16461_s4 + $0x1c8] sm:$0xff]   ;;  %v13025_v44 = vld [vmem:[%s16461_s4 + $0x1d0] sm:$0xff]  }
 0x3ff   : >> { %12353 = vmatpush3.bf16.msra.mxu0 %v12981_v50  ;;  %12402 = vmatprep.subr.bf16.mxu1 %v12983_v51  ;;  %v13026_v45 = vld [vmem:[%s16461_s4 + $0x1d8] sm:$0xff]   ;;  %vm3844_vm6 = vmand %vm3842_vm5, %vm2077_vm11 }
 0x400   : >> { %12354 = vmatprep.subr.bf16.mxu0 %v12984_v52  ;;  %12408 = vmatprep.mubr.msk.bf16.mxu1 %vm2172_vm15, %v14427_v53  ;;  %vm3850_vm7 = vmand %vm595_vm2, %vm2050_vm9 }
 0x401   : >> { %12360 = vmatprep.mubr.msk.bf16.mxu0 %vm2172_vm15, %v14427_v53 }
 0x402   : >> { %12403 = vmatpush3.bf16.msra.mxu1 %v12983_v51 }
 0x403   : >> { %12355 = vmatpush3.bf16.msra.mxu0 %v12984_v52  ;;  %12404 = vmatprep.subr.bf16.mxu1 %v12985_v54 }
 0x404   : >> { %12356 = vmatprep.subr.bf16.mxu0 %v12986_v55 }
 0x406   : >> { %12405 = vmatpush3.bf16.msra.mxu1 %v12985_v54 }
 0x407   : >> { %12357 = vmatpush3.bf16.msra.mxu0 %v12986_v55  ;;  %12406 = vmatprep.subr.bf16.mxu1 %v12987_v56 }
 0x408   : >> { %12358 = vmatprep.subr.bf16.mxu0 %v12988_v11 }
 0x40a   : >> { %12407 = vmatpush3.bf16.msra.mxu1 %v12987_v56 }
 0x40b   : >> { %12359 = vmatpush3.bf16.msra.mxu0 %v12988_v11  ;;  %12412 = vmatprep.subr.bf16.mxu1 %v12990_v57 }
 0x40c   : >> { %12364 = vmatprep.subr.bf16.mxu0 %v12991_v13 }
 0x40d   : >> { %12409 = vmatmul.mubr.msk.bf16.vlgmr.msra.gmra.mrb[0].mxu1 %vm2172_vm15, %v14454_v15 }
 0x40e   : >> { %12413 = vmatpush3.bf16.msra.mxu1 %v12990_v57  ;;  %12361 = vmatmul.mubr.msk.bf16.vlgmr.msra.gmra.mrb[0].mxu0 %vm2172_vm15, %v14454_v15 }
 0x40f   : >> { %12365 = vmatpush3.bf16.msra.mxu0 %v12991_v13  ;;  %12414 = vmatprep.subr.bf16.mxu1 %v12993_v7  ;;  %v13027_v13 = vld [vmem:[%s16461_s4 + $0xe0] sm:$0xff]  }
 0x410   : >> { %12366 = vmatprep.subr.bf16.mxu0 %v12994_v17  ;;  %12420 = vmatprep.mubr.msk.bf16.mxu1 %vm2172_vm15, %v14463_v21 }
 0x411   : >> { %12372 = vmatprep.mubr.msk.bf16.mxu0 %vm2172_vm15, %v14463_v21 }
 0x412   : >> { %12415 = vmatpush3.bf16.msra.mxu1 %v12993_v7  ;;  %v10118_v7 = vld [vmem:[%s16463_s6 + $0x10] sm:$0xff] }
 0x413   : >> { %12367 = vmatpush3.bf16.msra.mxu0 %v12994_v17  ;;  %12416 = vmatprep.subr.bf16.mxu1 %v12995_v22  ;;  %v13028_v17 = vld [vmem:[%s16461_s4 + $0xe8] sm:$0xff]  }
 0x414   : >> { %12368 = vmatprep.subr.bf16.mxu0 %v12996_v24 }
 0x416   : >> { %12417 = vmatpush3.bf16.msra.mxu1 %v12995_v22  ;;  %v13029_v22 = vld [vmem:[%s16461_s4 + $0xf0] sm:$0xff]  }
 0x417   : >> { %12369 = vmatpush3.bf16.msra.mxu0 %v12996_v24  ;;  %12418 = vmatprep.subr.bf16.mxu1 %v12997_v28  ;;  %v13030_v24 = vld [vmem:[%s16461_s4 + $0xf8] sm:$0xff]  }
 0x418   : >> { %12370 = vmatprep.subr.bf16.mxu0 %v12998_v29 }
 0x41a   : >> { %12419 = vmatpush3.bf16.msra.mxu1 %v12997_v28  ;;  %v13031_v28 = vld [vmem:[%s16461_s4 + $0x60] sm:$0xff]  }
 0x41b   : >> { %12371 = vmatpush3.bf16.msra.mxu0 %v12998_v29  ;;  %12424 = vmatprep.subr.bf16.mxu1 %v13000_v30  ;;  %v13033_v29 = vld [vmem:[%s16461_s4 + $0x70] sm:$0xff]  }
 0x41c   : >> { %12376 = vmatprep.subr.bf16.mxu0 %v13001_v33 }
 0x41d   : >> { %12421 = vmatmul.mubr.msk.bf16.vlgmr.msra.gmra.mrb[0].mxu1 %vm2172_vm15, %v14492_v4 }
 0x41e   : >> { %12425 = vmatpush3.bf16.msra.mxu1 %v13000_v30  ;;  %12373 = vmatmul.mubr.msk.bf16.vlgmr.msra.gmra.mrb[0].mxu0 %vm2172_vm15, %v14492_v4  ;;  %v13034_v30 = vld [vmem:[%s16461_s4 + $0x78] sm:$0xff]  }
 0x41f   : >> { %12377 = vmatpush3.bf16.msra.mxu0 %v13001_v33  ;;  %12426 = vmatprep.subr.bf16.mxu1 %v13003_v58  ;;  %v13037_v33 = vld [vmem:[%s16461_s4 + $0x170] sm:$0xff]  }
 0x420   : >> { %12378 = vmatprep.subr.bf16.mxu0 %v13004_v34  ;;  %12432 = vmatprep.mubr.msk.bf16.mxu1 %vm2172_vm15, %v14501_v59 }
 0x421   : >> { %12384 = vmatprep.mubr.msk.bf16.mxu0 %vm2172_vm15, %v14501_v59 }
 0x422   : >> { %12427 = vmatpush3.bf16.msra.mxu1 %v13003_v58  ;;  %v13038_v58 = vld [vmem:[%s16461_s4 + $0x178] sm:$0xff]  }
 0x423   : >> { %12379 = vmatpush3.bf16.msra.mxu0 %v13004_v34  ;;  %12428 = vmatprep.subr.bf16.mxu1 %v13005_v60  ;;  %v13041_v34 = vld [vmem:[%s16461_s4 + $0x1f0] sm:$0xff]  }
 0x424   : >> { %12380 = vmatprep.subr.bf16.mxu0 %v13006_v61 }
 0x426   : >> { %12429 = vmatpush3.bf16.msra.mxu1 %v13005_v60  ;;  %v13042_v60 = vld [vmem:[%s16461_s4 + $0x1f8] sm:$0xff]  }
 0x427   : >> { %12381 = vmatpush3.bf16.msra.mxu0 %v13006_v61  ;;  %12430 = vmatprep.subr.bf16.mxu1 %v13007_v62 }
 0x428   : >> { %12382 = vmatprep.subr.bf16.mxu0 %v13008_v63 }
 0x42a   : >> { %12431 = vmatpush3.bf16.msra.mxu1 %v13007_v62 }
 0x42b   : >> { %12383 = vmatpush3.bf16.msra.mxu0 %v13008_v63  ;;  %12623 = vmatprep.subr.bf16.mxu1 %v13743_v2 }
 0x42c   : >> { %12620 = vmatprep.subr.bf16.mxu0 %v13743_v2 }
 0x42d   : >> { %12433 = vmatmul.mubr.msk.bf16.vlgmr.msra.gmra.mrb[0].mxu1 %vm2172_vm15, %v14524_v0 }
 0x42e   : >> { %12385 = vmatmul.mubr.msk.bf16.vlgmr.msra.gmra.mrb[0].mxu0 %vm2172_vm15, %v14524_v0  ;;  %12451 = vmatprep.mubr.msk.f32.mxu1 %vm13744_vm0, %v13745_v3 }
 0x42f   : >> { %12442 = vmatprep.mubr.msk.f32.mxu0 %vm13744_vm0, %v13745_v3 }
 0x500   : >> { %v12434_v5 = vpop.f32.mrb[0].mxu1 }
 0x501   : >> { %v12386_v6 = vpop.f32.mrb[0].mxu0  ;;  %v2823_v8 = vpop.f32.mrb[1].mxu1 }
 0x502   : >> { %v2492_v9 = vpop.f32.mrb[1].mxu0  ;;  %v12435_v10 = vpop.f32.mrb[2].mxu1 }
 0x503   : >> { %v12387_v12 = vpop.f32.mrb[2].mxu0  ;;  %v2826_v14 = vpop.f32.mrb[3].mxu1 }
 0x504   : >> { %v12621_v16 = vpack.c.bf16 %v2826_v14, %v2823_v8  ;;  %v2495_v18 = vpop.f32.mrb[3].mxu0  ;;  %v10177_v8 = vld [vmem:[%s16463_s6 + $0x18] sm:$0xff] }
 0x505   : >> { %v12624_v19 = vpack.c.bf16 %v2495_v18, %v2492_v9 }
 0x506   : >> { %12622 = vmatpush3.bf16.msra.mxu0 %v12621_v16 }
 0x507   : >> { %12625 = vmatpush3.bf16.msra.mxu1 %v12624_v19  ;;  %12440 = vmatprep.subr.mxu0 %v13745_v3 }
 0x508   : >> { %12449 = vmatprep.subr.mxu1 %v13745_v3 }
 0x50a   : >> { %12441 = vmatpush3.msk.msra.mxu0 %vm596_vm3, %v12434_v5 }
 0x50b   : >> { %12443 = vmatmul.mubr.msk.f32.vlgmr.msra.gmra.mrb[4].mxu0 %vm2842_vm1, %v10057_v20  ;;  %12450 = vmatpush3.msk.msra.mxu1 %vm596_vm3, %v12386_v6 }
 0x50c   : >> { %12454 = vmatprep.subr.bf16.mxu0 %v13011_v23  ;;  %12452 = vmatmul.mubr.msk.f32.vlgmr.msra.gmra.mrb[4].mxu1 %vm2842_vm1, %v2509_v25  ;;  %v10185_v25 = vld [vmem:[%s9719_s28 + $0xc] sm:$0x1] }
 0x50d   : >> { %12455 = vmatpush3.bf16.msra.mxu0 %v13011_v23  ;;  %12462 = vmatprep.mubr.msk.bf16.mxu0 %vm2172_vm15, %v14400_v46  ;;  %v10183_v23 = vld [vmem:[%s9719_s28 + $0x8] sm:$0xf] }
 0x50e   : >> { %12456 = vmatprep.subr.bf16.mxu0 %v13012_v26  ;;  %12626 = vmatprep.subr.bf16.mxu1 %v13743_v2 }
 0x50f   : >> { %12508 = vmatprep.mubr.msk.f32.mxu1 %vm13744_vm0, %v13745_v3 }
 0x511   : >> { %12457 = vmatpush3.bf16.msra.mxu0 %v13012_v26 }
 0x512   : >> { %12458 = vmatprep.subr.bf16.mxu0 %v13013_v27 }
 0x515   : >> { %12459 = vmatpush3.bf16.msra.mxu0 %v13013_v27 }
 0x516   : >> { %12460 = vmatprep.subr.bf16.mxu0 %v13014_v31 }
 0x519   : >> { %12461 = vmatpush3.bf16.msra.mxu0 %v13014_v31 }
 0x51a   : >> { %12466 = vmatprep.subr.bf16.mxu0 %v13015_v32 }
 0x51c   : >> { %12463 = vmatmul.mubr.msk.bf16.vlgmr.msra.gmra.mrb[8].mxu0 %vm2172_vm15, %v14413_v49 }
 0x51d   : >> { %12467 = vmatpush3.bf16.msra.mxu0 %v13015_v32  ;;  %12474 = vmatprep.mubr.msk.bf16.mxu0 %vm2172_vm15, %v14427_v53 }
 0x51e   : >> { %12468 = vmatprep.subr.bf16.mxu0 %v13016_v35 }
 0x521   : >> { %12469 = vmatpush3.bf16.msra.mxu0 %v13016_v35  ;;  %v14708_v35 = vld [vmem:[%s16465_s8] sm:$0x3] (%p2091_p5) }
 0x522   : >> { %12470 = vmatprep.subr.bf16.mxu0 %v13017_v36 }
 0x525   : >> { %12471 = vmatpush3.bf16.msra.mxu0 %v13017_v36 }
 0x526   : >> { %12472 = vmatprep.subr.bf16.mxu0 %v13018_v37 }
 0x529   : >> { %12473 = vmatpush3.bf16.msra.mxu0 %v13018_v37 }
 0x52a   : >> { %12478 = vmatprep.subr.bf16.mxu0 %v13019_v38 }
 0x52c   : >> { %12475 = vmatmul.mubr.msk.bf16.vlgmr.msra.gmra.mrb[8].mxu0 %vm2172_vm15, %v14454_v15 }
 0x52d   : >> { %12479 = vmatpush3.bf16.msra.mxu0 %v13019_v38  ;;  %12486 = vmatprep.mubr.msk.bf16.mxu0 %vm2172_vm15, %v14463_v21 }
 0x52e   : >> { %12480 = vmatprep.subr.bf16.mxu0 %v13020_v40 }
 0x531   : >> { %12481 = vmatpush3.bf16.msra.mxu0 %v13020_v40 }
 0x532   : >> { %12482 = vmatprep.subr.bf16.mxu0 %v13021_v1 }
 0x535   : >> { %12483 = vmatpush3.bf16.msra.mxu0 %v13021_v1 }
 0x536   : >> { %12484 = vmatprep.subr.bf16.mxu0 %v13022_v41 }
 0x539   : >> { %12485 = vmatpush3.bf16.msra.mxu0 %v13022_v41 }
 0x53a   : >> { %12490 = vmatprep.subr.bf16.mxu0 %v13023_v42 }
 0x53c   : >> { %12487 = vmatmul.mubr.msk.bf16.vlgmr.msra.gmra.mrb[8].mxu0 %vm2172_vm15, %v14492_v4 }
 0x53d   : >> { %12491 = vmatpush3.bf16.msra.mxu0 %v13023_v42  ;;  %12498 = vmatprep.mubr.msk.bf16.mxu0 %vm2172_vm15, %v14501_v59 }
 0x53e   : >> { %12492 = vmatprep.subr.bf16.mxu0 %v13024_v43 }
 0x541   : >> { %12493 = vmatpush3.bf16.msra.mxu0 %v13024_v43 }
 0x542   : >> { %12494 = vmatprep.subr.bf16.mxu0 %v13025_v44 }
 0x545   : >> { %12495 = vmatpush3.bf16.msra.mxu0 %v13025_v44 }
 0x546   : >> { %12496 = vmatprep.subr.bf16.mxu0 %v13026_v45 }
 0x549   : >> { %12497 = vmatpush3.bf16.msra.mxu0 %v13026_v45 }
 0x54a   : >> { %12629 = vmatprep.subr.bf16.mxu0 %v13743_v2 }
 0x54c   : >> { %12499 = vmatmul.mubr.msk.bf16.vlgmr.msra.gmra.mrb[8].mxu0 %vm2172_vm15, %v14524_v0 }
 0x54d   : >> { %12565 = vmatprep.mubr.msk.f32.mxu0 %vm13744_vm0, %v13745_v3 }
 0x5de   : >> { %v2916_v47 = vpop.f32.mrb[4].mxu0 }
 0x5df   : >> { %v12444_v48 = vpop.f32.mrb[5].mxu0  ;;  %v2992_v50 = vpop.f32.mrb[4].mxu1 }
 0x5e0   : >> { %v14618_v51 = vadd.f32 %v2992_v50, %v2916_v47  ;;  %v12453_v52 = vpop.f32.mrb[5].mxu1 }
 0x61f   : >> { %v12500_v54 = vpop.f32.mrb[8].mxu0 }
 0x620   : >> { %v3309_v55 = vpop.f32.mrb[9].mxu0 }
 0x621   : >> { %v12501_v56 = vpop.f32.mrb[10].mxu0 }
 0x622   : >> { %v3312_v11 = vpop.f32.mrb[11].mxu0 }
 0x623   : >> { %v12627_v57 = vpack.c.bf16 %v3312_v11, %v3309_v55 }
 0x625   : >> { %12628 = vmatpush3.bf16.msra.mxu1 %v12627_v57 }
 0x626   : >> { %12506 = vmatprep.subr.mxu1 %v13745_v3 }
 0x629   : >> { %12507 = vmatpush3.msk.msra.mxu1 %vm596_vm3, %v12500_v54 }
 0x62a   : >> { %12509 = vmatmul.mubr.msk.f32.vlgmr.msra.gmra.mrb[6].mxu1 %vm2842_vm1, %v10118_v7  ;;  %12511 = vmatprep.subr.bf16.mxu1 %v13027_v13 }
 0x62b   : >> { %12512 = vmatpush3.bf16.msra.mxu1 %v13027_v13  ;;  %12519 = vmatprep.mubr.msk.bf16.mxu1 %vm2172_vm15, %v14400_v46  ;;  %v13032_v46 = vld [vmem:[%s16461_s4 + $0x68] sm:$0xff]  }
 0x62c   : >> { %12513 = vmatprep.subr.bf16.mxu1 %v13028_v17 }
 0x62f   : >> { %12514 = vmatpush3.bf16.msra.mxu1 %v13028_v17 }
 0x630   : >> { %12515 = vmatprep.subr.bf16.mxu1 %v13029_v22 }
 0x633   : >> { %12516 = vmatpush3.bf16.msra.mxu1 %v13029_v22 }
 0x634   : >> { %12517 = vmatprep.subr.bf16.mxu1 %v13030_v24 }
 0x637   : >> { %12518 = vmatpush3.bf16.msra.mxu1 %v13030_v24 }
 0x638   : >> { %12523 = vmatprep.subr.bf16.mxu1 %v13031_v28 }
 0x63a   : >> { %12520 = vmatmul.mubr.msk.bf16.vlgmr.msra.gmra.mrb[8].mxu1 %vm2172_vm15, %v14413_v49  ;;  %v13035_v49 = vld [vmem:[%s16461_s4 + $0x160] sm:$0xff]  }
 0x63b   : >> { %12524 = vmatpush3.bf16.msra.mxu1 %v13031_v28  ;;  %12531 = vmatprep.mubr.msk.bf16.mxu1 %vm2172_vm15, %v14427_v53  ;;  %v13036_v53 = vld [vmem:[%s16461_s4 + $0x168] sm:$0xff]  }
 0x63c   : >> { %12525 = vmatprep.subr.bf16.mxu1 %v13032_v46 }
 0x63f   : >> { %12526 = vmatpush3.bf16.msra.mxu1 %v13032_v46 }
 0x640   : >> { %12527 = vmatprep.subr.bf16.mxu1 %v13033_v29 }
 0x643   : >> { %12528 = vmatpush3.bf16.msra.mxu1 %v13033_v29 }
 0x644   : >> { %12529 = vmatprep.subr.bf16.mxu1 %v13034_v30 }
 0x647   : >> { %12530 = vmatpush3.bf16.msra.mxu1 %v13034_v30 }
 0x648   : >> { %12535 = vmatprep.subr.bf16.mxu1 %v13035_v49 }
 0x64a   : >> { %12532 = vmatmul.mubr.msk.bf16.vlgmr.msra.gmra.mrb[8].mxu1 %vm2172_vm15, %v14454_v15  ;;  %v13039_v15 = vld [vmem:[%s16461_s4 + $0x1e0] sm:$0xff]  }
 0x64b   : >> { %12536 = vmatpush3.bf16.msra.mxu1 %v13035_v49  ;;  %12543 = vmatprep.mubr.msk.bf16.mxu1 %vm2172_vm15, %v14463_v21  ;;  %v13040_v21 = vld [vmem:[%s16461_s4 + $0x1e8] sm:$0xff]  }
 0x64c   : >> { %12537 = vmatprep.subr.bf16.mxu1 %v13036_v53 }
 0x64f   : >> { %12538 = vmatpush3.bf16.msra.mxu1 %v13036_v53 }
 0x650   : >> { %12539 = vmatprep.subr.bf16.mxu1 %v13037_v33 }
 0x653   : >> { %12540 = vmatpush3.bf16.msra.mxu1 %v13037_v33 }
 0x654   : >> { %12541 = vmatprep.subr.bf16.mxu1 %v13038_v58 }
 0x657   : >> { %12542 = vmatpush3.bf16.msra.mxu1 %v13038_v58 }
 0x658   : >> { %12547 = vmatprep.subr.bf16.mxu1 %v13039_v15 }
 0x65a   : >> { %12544 = vmatmul.mubr.msk.bf16.vlgmr.msra.gmra.mrb[8].mxu1 %vm2172_vm15, %v14492_v4 }
 0x65b   : >> { %12548 = vmatpush3.bf16.msra.mxu1 %v13039_v15  ;;  %12555 = vmatprep.mubr.msk.bf16.mxu1 %vm2172_vm15, %v14501_v59 }
 0x65c   : >> { %12549 = vmatprep.subr.bf16.mxu1 %v13040_v21 }
 0x65f   : >> { %12550 = vmatpush3.bf16.msra.mxu1 %v13040_v21 }
 0x660   : >> { %12551 = vmatprep.subr.bf16.mxu1 %v13041_v34 }
 0x663   : >> { %12552 = vmatpush3.bf16.msra.mxu1 %v13041_v34 }
 0x664   : >> { %12553 = vmatprep.subr.bf16.mxu1 %v13042_v60 }
 0x667   : >> { %12554 = vmatpush3.bf16.msra.mxu1 %v13042_v60 }
 0x66a   : >> { %12556 = vmatmul.mubr.msk.bf16.vlgmr.msra.gmra.mrb[8].mxu1 %vm2172_vm15, %v14524_v0 }
 0x6fd   : >> { %v3400_v4 = vpop.f32.mrb[6].mxu1 }
 0x6fe   : >> { %v3404_v59 = vadd.f32 %v3400_v4, %v14618_v51  ;;  %v12510_v61 = vpop.f32.mrb[7].mxu1 }
 0x73d   : >> { %v12557_v62 = vpop.f32.mrb[8].mxu1 }
 0x73e   : >> { %v3718_v63 = vpop.f32.mrb[9].mxu1 }
 0x73f   : >> { %v12558_v2 = vpop.f32.mrb[10].mxu1 }
 0x740   : >> { %v3721_v5 = vpop.f32.mrb[11].mxu1 }
 0x741   : >> { %v12630_v6 = vpack.c.bf16 %v3721_v5, %v3718_v63 }
 0x743   : >> { %12631 = vmatpush3.bf16.msra.mxu0 %v12630_v6 }
 0x744   : >> { %12563 = vmatprep.subr.mxu0 %v13745_v3 }
 0x747   : >> { %12564 = vmatpush3.msk.msra.mxu0 %vm596_vm3, %v12557_v62 }
 0x748   : >> { %12566 = vmatmul.mubr.msk.f32.vlgmr.msra.gmra.mrb[6].mxu0 %vm2842_vm1, %v10177_v8 }
 0x81b   : >> { %v3809_v0 = vpop.f32.mrb[6].mxu0 }
 0x81c   : >> { %v3813_v9 = vadd.f32 %v3809_v0, %v3404_v59  ;;  %v12567_v10 = vpop.f32.mrb[7].mxu0 }
 0x81e   : >> { %v3820_v12 = vadd.f32 %v14368_v39, %v3813_v9 }
 0x820   : >> { %vm3821_vm4 = vcmp.ge.f32.partialorder %v3820_v12, 0.0  ;;  %v3822_v14 = vmul.f32 0.2, %v3820_v12 }
 0x822   : >> { %v3823_v16 = vsel %vm3821_vm4, %v3820_v12, %v3822_v14 }
 0x823   : >> { %v11492_v18 = vpack.c.bf16 %v3823_v16, %v3823_v16 }
 0x825   : >> { %v3830_v3 = vshrl.u32 %v11492_v18, 16  ;;  %v3833_v20 = vshll.u32 %v11492_v18, 16 }
 0x826   : > { %2093 = sbr.rel (!%p2091_p5) target bundleno = 1004 (0x3ec), region = 233 }
 0x827   : >> { %v3832_v19 = vrot.slane %v3830_v3, 7 }
 0x829   : >> { %v3835_v26 = vor.u32 %v3833_v20, %v3832_v19  ;;  %v3836_v27 = vrot.slane %v3832_v19, 4 }
 0x82b   : >> { %v3846_v31 = vsel %vm3844_vm6, %v3835_v26, %v10183_v23  ;;  %v3852_v32 = vsel %vm3850_vm7, %v3836_v27, %v10185_v25 }
 0x82c   : >> { %10184 = vst [vmem:[%s9719_s28 + $0x8] sm:$0xf] %v3846_v31  ;;  %10186 = vst [vmem:[%s9719_s28 + $0xc] sm:$0x1] %v3852_v32 }
 0x82d LB: >> { %v13043_v36 = vld [vmem:[%s16464_s7 + $0x204] ss:$8 sps:$4 sm:$0xff]   ;;  %v13746_v39 = vmov 0   ;;  %v13047_v38 = vld [vmem:[%s16464_s7 + $0x200] ss:$8 sps:$4 sm:$0xff]   ;;  %s11494_s17 = sshll.u32 %s13733_s29, 4  ;;  %s13733_s29 = sphi %s14710_s29, %s3860_s29  }
 0x82e   : >> { %v13045_v37 = vld [vmem:[%s16464_s7 + $0x284] ss:$8 sps:$4 sm:$0xff]   ;;  %4036 = vmatprep.mubr.bf16.mxu0 %v13746_v39  ;;  %4623 = vmatprep.mubr.bf16.mxu1 %v13746_v39  ;;  %v13048_v40 = vld [vmem:[%s16464_s7 + $0x280] ss:$8 sps:$4 sm:$0xff]   ;;  %v13049_v1 = vld [vmem:[%s16464_s7 + $0x214] ss:$8 sps:$4 sm:$0xff]  }
 0x82f   : >> { %4004 = vmatprep.subr.bf16.mxu0 %v13043_v36  ;;  %4591 = vmatprep.subr.bf16.mxu1 %v13045_v37  ;;  %v13051_v41 = vld [vmem:[%s16464_s7 + $0x294] ss:$8 sps:$4 sm:$0xff]   ;;  %v13053_v42 = vld [vmem:[%s16464_s7 + $0x210] ss:$8 sps:$4 sm:$0xff]   ;;  %v13055_v44 = vld [vmem:[%s16464_s7 + $0x224] ss:$8 sps:$4 sm:$0xff]  }
 0x830   : >> { %4005 = vmatpush1.bf16.msra.mxu0 %v13047_v38  ;;  %4592 = vmatpush1.bf16.msra.mxu1 %v13048_v40  ;;  %v13054_v43 = vld [vmem:[%s16464_s7 + $0x290] ss:$8 sps:$4 sm:$0xff]   ;;  %v13057_v45 = vld [vmem:[%s16464_s7 + $0x2a4] ss:$8 sps:$4 sm:$0xff]   ;;  %v13059_v47 = vld [vmem:[%s16464_s7 + $0x220] ss:$8 sps:$4 sm:$0xff]  }
 0x831   : >> { %4006 = vmatprep.subr.bf16.mxu0 %v13049_v1  ;;  %4593 = vmatprep.subr.bf16.mxu1 %v13051_v41  ;;  %v13060_v48 = vld [vmem:[%s16464_s7 + $0x2a0] ss:$8 sps:$4 sm:$0xff]   ;;  %v13061_v50 = vld [vmem:[%s16464_s7 + $0x234] ss:$8 sps:$4 sm:$0xff]   ;;  %v13065_v52 = vld [vmem:[%s16464_s7 + $0x230] ss:$8 sps:$4 sm:$0xff]  }
 0x832   : >> { %v13063_v51 = vld [vmem:[%s16464_s7 + $0x2b4] ss:$8 sps:$4 sm:$0xff]   ;;  %v13066_v54 = vld [vmem:[%s16464_s7 + $0x2b0] ss:$8 sps:$4 sm:$0xff]   ;;  %v13067_v55 = vld [vmem:[%s16464_s7 + $0x244] ss:$8 sps:$4 sm:$0xff]  }
 0x833   : >> { %v13069_v56 = vld [vmem:[%s16464_s7 + $0x2c4] ss:$8 sps:$4 sm:$0xff]   ;;  %v13071_v11 = vld [vmem:[%s16464_s7 + $0x240] ss:$8 sps:$4 sm:$0xff]   ;;  %v13073_v13 = vld [vmem:[%s16464_s7 + $0x254] ss:$8 sps:$4 sm:$0xff]  }
 0x834   : >> { %4007 = vmatpush1.bf16.msra.mxu0 %v13053_v42  ;;  %4594 = vmatpush1.bf16.msra.mxu1 %v13054_v43  ;;  %v13072_v57 = vld [vmem:[%s16464_s7 + $0x2c0] ss:$8 sps:$4 sm:$0xff]   ;;  %v13075_v7 = vld [vmem:[%s16464_s7 + $0x2d4] ss:$8 sps:$4 sm:$0xff]   ;;  %v13077_v17 = vld [vmem:[%s16464_s7 + $0x250] ss:$8 sps:$4 sm:$0xff]  }
 0x835   : >> { %4008 = vmatprep.subr.bf16.mxu0 %v13055_v44  ;;  %4595 = vmatprep.subr.bf16.mxu1 %v13057_v45  ;;  %v13078_v22 = vld [vmem:[%s16464_s7 + $0x2d0] ss:$8 sps:$4 sm:$0xff]   ;;  %v13079_v24 = vld [vmem:[%s16464_s7 + $0x264] ss:$8 sps:$4 sm:$0xff]   ;;  %v13083_v46 = vld [vmem:[%s16464_s7 + $0x260] ss:$8 sps:$4 sm:$0xff]  }
 0x836   : >> { %v13081_v28 = vld [vmem:[%s16464_s7 + $0x2e4] ss:$8 sps:$4 sm:$0xff]   ;;  %v13084_v29 = vld [vmem:[%s16464_s7 + $0x2e0] ss:$8 sps:$4 sm:$0xff]   ;;  %v13085_v30 = vld [vmem:[%s16464_s7 + $0x274] ss:$8 sps:$4 sm:$0xff]  }
 0x837   : >> { %s14805_s20 = scalar_lea.vmem [#allocation3], %s11494_s17  ;;  %v13087_v49 = vld [vmem:[%s16464_s7 + $0x2f4] ss:$8 sps:$4 sm:$0xff]   ;;  %v13089_v53 = vld [vmem:[%s16464_s7 + $0x270] ss:$8 sps:$4 sm:$0xff]   ;;  %vm13748_vm2 = vmmov 1  }
 0x838   : >> { %4009 = vmatpush1.bf16.msra.mxu0 %v13059_v47  ;;  %4596 = vmatpush1.bf16.msra.mxu1 %v13060_v48  ;;  %v13090_v33 = vld [vmem:[%s16464_s7 + $0x2f0] ss:$8 sps:$4 sm:$0xff]   ;;  %v13093_v58 = vld [vmem:[%s16464_s7 + $0x4] ss:$8 sps:$4 sm:$0xff]   ;;  %v13091_v21 = vld [vmem:[%s16464_s7] ss:$8 sps:$4 sm:$0xff]  }
 0x839   : >> { %4010 = vmatprep.subr.bf16.mxu0 %v13061_v50  ;;  %4597 = vmatprep.subr.bf16.mxu1 %v13063_v51  ;;  %v13096_v15 = vld [vmem:[%s16464_s7 + $0x84] ss:$8 sps:$4 sm:$0xff]   ;;  %v13094_v60 = vld [vmem:[%s16464_s7 + $0x80] ss:$8 sps:$4 sm:$0xff]   ;;  %v13100_v4 = vld [vmem:[%s16464_s7 + $0x14] ss:$8 sps:$4 sm:$0xff]  }
 0x83a   : >> { %v14826_v34 = vld [vmem:[%s14805_s20 + $0x8] sm:$0x1f]   ;;  %v13103_v59 = vld [vmem:[%s16464_s7 + $0x94] ss:$8 sps:$4 sm:$0xff]   ;;  %v13098_v61 = vld [vmem:[%s16464_s7 + $0x10] ss:$8 sps:$4 sm:$0xff]  }
 0x83b   : >> { %v13101_v62 = vld [vmem:[%s16464_s7 + $0x90] ss:$8 sps:$4 sm:$0xff]   ;;  %v13106_v63 = vld [vmem:[%s16464_s7 + $0x24] ss:$8 sps:$4 sm:$0xff]   ;;  %v13104_v5 = vld [vmem:[%s16464_s7 + $0x20] ss:$8 sps:$4 sm:$0xff]  }
 0x83c   : >> { %4011 = vmatpush1.bf16.msra.mxu0 %v13065_v52  ;;  %4598 = vmatpush1.bf16.msra.mxu1 %v13066_v54  ;;  %v13109_v2 = vld [vmem:[%s16464_s7 + $0xa4] ss:$8 sps:$4 sm:$0xff]   ;;  %v13107_v6 = vld [vmem:[%s16464_s7 + $0xa0] ss:$8 sps:$4 sm:$0xff]   ;;  %v13112_v8 = vld [vmem:[%s16464_s7 + $0x34] ss:$8 sps:$4 sm:$0xff]  }
 0x83d   : >> { %4012 = vmatprep.subr.bf16.mxu0 %v13067_v55  ;;  %4599 = vmatprep.subr.bf16.mxu1 %v13069_v56  ;;  %v13115_v0 = vld [vmem:[%s16464_s7 + $0xb4] ss:$8 sps:$4 sm:$0xff]   ;;  %v13110_v9 = vld [vmem:[%s16464_s7 + $0x30] ss:$8 sps:$4 sm:$0xff]   ;;  %v13118_v12 = vld [vmem:[%s16464_s7 + $0x44] ss:$8 sps:$4 sm:$0xff]  }
 0x83e   : >> { %v13113_v10 = vld [vmem:[%s16464_s7 + $0xb0] ss:$8 sps:$4 sm:$0xff]   ;;  %v13121_v14 = vld [vmem:[%s16464_s7 + $0xc4] ss:$8 sps:$4 sm:$0xff]   ;;  %v13116_v16 = vld [vmem:[%s16464_s7 + $0x40] ss:$8 sps:$4 sm:$0xff]  }
 0x83f   : >> { %v13119_v18 = vld [vmem:[%s16464_s7 + $0xc0] ss:$8 sps:$4 sm:$0xff]   ;;  %v13124_v3 = vld [vmem:[%s16464_s7 + $0x54] ss:$8 sps:$4 sm:$0xff]   ;;  %v13122_v20 = vld [vmem:[%s16464_s7 + $0x50] ss:$8 sps:$4 sm:$0xff]  }
 0x840   : >> { %4013 = vmatpush1.bf16.msra.mxu0 %v13071_v11  ;;  %4600 = vmatpush1.bf16.msra.mxu1 %v13072_v57  ;;  %v13127_v19 = vld [vmem:[%s16464_s7 + $0xd4] ss:$8 sps:$4 sm:$0xff]   ;;  %v13125_v23 = vld [vmem:[%s16464_s7 + $0xd0] ss:$8 sps:$4 sm:$0xff]   ;;  %v13130_v25 = vld [vmem:[%s16464_s7 + $0x64] ss:$8 sps:$4 sm:$0xff]  }
 0x841   : >> { %4014 = vmatprep.subr.bf16.mxu0 %v13073_v13  ;;  %4601 = vmatprep.subr.bf16.mxu1 %v13075_v7  ;;  %v13133_v26 = vld [vmem:[%s16464_s7 + $0xe4] ss:$8 sps:$4 sm:$0xff]   ;;  %v13128_v27 = vld [vmem:[%s16464_s7 + $0x60] ss:$8 sps:$4 sm:$0xff]   ;;  %v13136_v32 = vld [vmem:[%s16464_s7 + $0x74] ss:$8 sps:$4 sm:$0xff]  }
 0x842   : >> { %v13131_v31 = vld [vmem:[%s16464_s7 + $0xe0] ss:$8 sps:$4 sm:$0xff]   ;;  %v13139_v36 = vld [vmem:[%s16464_s7 + $0xf4] ss:$8 sps:$4 sm:$0xff]   ;;  %v13134_v37 = vld [vmem:[%s16464_s7 + $0x70] ss:$8 sps:$4 sm:$0xff]  }
 0x843   : >> { %v13137_v38 = vld [vmem:[%s16464_s7 + $0xf0] ss:$8 sps:$4 sm:$0xff]   ;;  %v13142_v40 = vld [vmem:[%s16464_s7 + $0x404] ss:$8 sps:$4 sm:$0xff]   ;;  %v13140_v42 = vld [vmem:[%s16464_s7 + $0x400] ss:$8 sps:$4 sm:$0xff]  }
 0x844   : >> { %4015 = vmatpush1.bf16.msra.mxu0 %v13077_v17  ;;  %4602 = vmatpush1.bf16.msra.mxu1 %v13078_v22  ;;  %v13145_v1 = vld [vmem:[%s16464_s7 + $0x484] ss:$8 sps:$4 sm:$0xff]   ;;  %v13143_v43 = vld [vmem:[%s16464_s7 + $0x480] ss:$8 sps:$4 sm:$0xff]   ;;  %v13149_v44 = vld [vmem:[%s16464_s7 + $0x414] ss:$8 sps:$4 sm:$0xff]  }
 0x845   : >> { %4016 = vmatprep.subr.bf16.mxu0 %v13079_v24  ;;  %4603 = vmatprep.subr.bf16.mxu1 %v13081_v28  ;;  %v14926_v41 = vld [vmem:[%s14805_s20] sm:$0x1f]   ;;  %v13152_v45 = vld [vmem:[%s16464_s7 + $0x494] ss:$8 sps:$4 sm:$0xff]   ;;  %v13147_v47 = vld [vmem:[%s16464_s7 + $0x410] ss:$8 sps:$4 sm:$0xff]  }
 0x846   : >> { %v13150_v48 = vld [vmem:[%s16464_s7 + $0x490] ss:$8 sps:$4 sm:$0xff]   ;;  %v13155_v50 = vld [vmem:[%s16464_s7 + $0x424] ss:$8 sps:$4 sm:$0xff]   ;;  %v13153_v52 = vld [vmem:[%s16464_s7 + $0x420] ss:$8 sps:$4 sm:$0xff]  }
 0x847   : >> { %v13158_v51 = vld [vmem:[%s16464_s7 + $0x4a4] ss:$8 sps:$4 sm:$0xff]   ;;  %v13156_v54 = vld [vmem:[%s16464_s7 + $0x4a0] ss:$8 sps:$4 sm:$0xff]   ;;  %v13161_v55 = vld [vmem:[%s16464_s7 + $0x434] ss:$8 sps:$4 sm:$0xff]  }
 0x848   : >> { %4017 = vmatpush1.bf16.msra.mxu0 %v13083_v46  ;;  %4604 = vmatpush1.bf16.msra.mxu1 %v13084_v29  ;;  %v13164_v56 = vld [vmem:[%s16464_s7 + $0x4b4] ss:$8 sps:$4 sm:$0xff]   ;;  %v13159_v11 = vld [vmem:[%s16464_s7 + $0x430] ss:$8 sps:$4 sm:$0xff]   ;;  %v13167_v13 = vld [vmem:[%s16464_s7 + $0x444] ss:$8 sps:$4 sm:$0xff]  }
 0x849   : >> { %4018 = vmatprep.subr.bf16.mxu0 %v13085_v30  ;;  %4605 = vmatprep.subr.bf16.mxu1 %v13087_v49  ;;  %v13162_v57 = vld [vmem:[%s16464_s7 + $0x4b0] ss:$8 sps:$4 sm:$0xff]   ;;  %v13170_v7 = vld [vmem:[%s16464_s7 + $0x4c4] ss:$8 sps:$4 sm:$0xff]   ;;  %v13165_v17 = vld [vmem:[%s16464_s7 + $0x440] ss:$8 sps:$4 sm:$0xff]  }
 0x84a   : >> { %v13168_v22 = vld [vmem:[%s16464_s7 + $0x4c0] ss:$8 sps:$4 sm:$0xff]   ;;  %v13173_v24 = vld [vmem:[%s16464_s7 + $0x454] ss:$8 sps:$4 sm:$0xff]   ;;  %v13171_v46 = vld [vmem:[%s16464_s7 + $0x450] ss:$8 sps:$4 sm:$0xff]  }
 0x84b   : >> { %v13176_v28 = vld [vmem:[%s16464_s7 + $0x4d4] ss:$8 sps:$4 sm:$0xff]   ;;  %v13174_v29 = vld [vmem:[%s16464_s7 + $0x4d0] ss:$8 sps:$4 sm:$0xff]   ;;  %v13179_v30 = vld [vmem:[%s16464_s7 + $0x464] ss:$8 sps:$4 sm:$0xff]  }
 0x84c   : >> { %4019 = vmatpush1.bf16.msra.mxu0 %v13089_v53  ;;  %4606 = vmatpush1.bf16.msra.mxu1 %v13090_v33  ;;  %v13182_v49 = vld [vmem:[%s16464_s7 + $0x4e4] ss:$8 sps:$4 sm:$0xff]   ;;  %v13177_v53 = vld [vmem:[%s16464_s7 + $0x460] ss:$8 sps:$4 sm:$0xff]   ;;  %vm15133_vm8 = vmpackc.low %vm596_vm3, %vm13748_vm2  ;;  %vm5047_vm9 = vcmask 80896   ;;  %vm6551_vm12 = vcmask 1042432  }
 0x84d   : >> { %4133 = vmatprep.subr.bf16.mxu0 %v13093_v58  ;;  %4714 = vmatprep.subr.bf16.mxu1 %v13096_v15  ;;  %v13180_v33 = vld [vmem:[%s16464_s7 + $0x4e0] ss:$8 sps:$4 sm:$0xff]   ;;  %v13185_v58 = vld [vmem:[%s16464_s7 + $0x474] ss:$8 sps:$4 sm:$0xff]   ;;  %vm6552_vm13 = vsmask.f32 2306 }
 0x84e   : >> { %v13188_v15 = vld [vmem:[%s16464_s7 + $0x4f4] ss:$8 sps:$4 sm:$0xff]   ;;  %s10718_s25 = sshll.u32 %s13733_s29, 3  ;;  %vm6554_vm14 = vcmask 1046532   ;;  %vm6555_vm15 = vsmask.f32 6418  ;;  %vm6553_vm0 = vmand %vm6551_vm12, %vm6552_vm13 }
 0x84f   : >> { %4037 = vmatmul.mubr.bf16.vlgmr.msra.gmra.mrb[0].mxu0 %v14826_v34  ;;  %4624 = vmatmul.mubr.bf16.vlgmr.msra.gmra.mrb[0].mxu1 %v14826_v34  ;;  %vm6556_vm1 = vmand %vm6554_vm14, %vm6555_vm15  ;;  %s9736_s26 = scalar_lea.vmem [#allocation4], %s10718_s25  ;;  %s3860_s29 = sadd.s32 1, %s13733_s29  }
 0x850   : >> { %4134 = vmatpush1.bf16.msra.mxu0 %v13091_v21  ;;  %4715 = vmatpush1.bf16.msra.mxu1 %v13094_v60  ;;  %v13183_v21 = vld [vmem:[%s16464_s7 + $0x470] ss:$8 sps:$4 sm:$0xff]   ;;  %vm6557_vm4 = vmor %vm6556_vm1, %vm6553_vm0  ;;  %p3857_p6 = scmp.ge.s32.totalorder %s3860_s29, 4  }
 0x851   : >> { %4135 = vmatprep.subr.bf16.mxu0 %v13100_v4  ;;  %4716 = vmatprep.subr.bf16.mxu1 %v13103_v59  ;;  %v13186_v60 = vld [vmem:[%s16464_s7 + $0x4f0] ss:$8 sps:$4 sm:$0xff]   ;;  %v13191_v4 = vld [vmem:[%s16464_s7 + $0x604] ss:$8 sps:$4 sm:$0xff]   ;;  %s15585_s28 = smov (%p3857_p6), 0  }
 0x852   : >> { %4165 = vmatprep.mubr.bf16.mxu0 %v13746_v39  ;;  %4746 = vmatprep.mubr.bf16.mxu1 %v13746_v39  ;;  %v13194_v59 = vld [vmem:[%s16464_s7 + $0x684] ss:$8 sps:$4 sm:$0xff]  }
 0x854   : >> { %4136 = vmatpush1.bf16.msra.mxu0 %v13098_v61  ;;  %4717 = vmatpush1.bf16.msra.mxu1 %v13101_v62  ;;  %v15029_v61 = vld [vmem:[%s14805_s20 + $0x10] sm:$0x1f]   ;;  %v13189_v62 = vld [vmem:[%s16464_s7 + $0x600] ss:$8 sps:$4 sm:$0xff]  }
 0x855   : >> { %4137 = vmatprep.subr.bf16.mxu0 %v13106_v63  ;;  %4718 = vmatprep.subr.bf16.mxu1 %v13109_v2  ;;  %v13192_v63 = vld [vmem:[%s16464_s7 + $0x680] ss:$8 sps:$4 sm:$0xff]   ;;  %v13198_v2 = vld [vmem:[%s16464_s7 + $0x614] ss:$8 sps:$4 sm:$0xff]  }
 0x858   : >> { %4138 = vmatpush1.bf16.msra.mxu0 %v13104_v5  ;;  %4719 = vmatpush1.bf16.msra.mxu1 %v13107_v6  ;;  %v13201_v5 = vld [vmem:[%s16464_s7 + $0x694] ss:$8 sps:$4 sm:$0xff]   ;;  %v13196_v6 = vld [vmem:[%s16464_s7 + $0x610] ss:$8 sps:$4 sm:$0xff]  }
 0x859   : >> { %4139 = vmatprep.subr.bf16.mxu0 %v13112_v8  ;;  %4720 = vmatprep.subr.bf16.mxu1 %v13115_v0  ;;  %v13199_v8 = vld [vmem:[%s16464_s7 + $0x690] ss:$8 sps:$4 sm:$0xff]   ;;  %v13204_v0 = vld [vmem:[%s16464_s7 + $0x624] ss:$8 sps:$4 sm:$0xff]  }
 0x85c   : >> { %4140 = vmatpush1.bf16.msra.mxu0 %v13110_v9  ;;  %4721 = vmatpush1.bf16.msra.mxu1 %v13113_v10  ;;  %v13207_v9 = vld [vmem:[%s16464_s7 + $0x6a4] ss:$8 sps:$4 sm:$0xff]   ;;  %v13202_v10 = vld [vmem:[%s16464_s7 + $0x620] ss:$8 sps:$4 sm:$0xff]  }
 0x85d   : >> { %4141 = vmatprep.subr.bf16.mxu0 %v13118_v12  ;;  %4722 = vmatprep.subr.bf16.mxu1 %v13121_v14  ;;  %v13205_v12 = vld [vmem:[%s16464_s7 + $0x6a0] ss:$8 sps:$4 sm:$0xff]   ;;  %v13210_v14 = vld [vmem:[%s16464_s7 + $0x634] ss:$8 sps:$4 sm:$0xff]  }
 0x860   : >> { %4142 = vmatpush1.bf16.msra.mxu0 %v13116_v16  ;;  %4723 = vmatpush1.bf16.msra.mxu1 %v13119_v18  ;;  %v13213_v16 = vld [vmem:[%s16464_s7 + $0x6b4] ss:$8 sps:$4 sm:$0xff]   ;;  %v13208_v18 = vld [vmem:[%s16464_s7 + $0x630] ss:$8 sps:$4 sm:$0xff]  }
 0x861   : >> { %4143 = vmatprep.subr.bf16.mxu0 %v13124_v3  ;;  %4724 = vmatprep.subr.bf16.mxu1 %v13127_v19  ;;  %v13211_v3 = vld [vmem:[%s16464_s7 + $0x6b0] ss:$8 sps:$4 sm:$0xff]   ;;  %v13216_v19 = vld [vmem:[%s16464_s7 + $0x644] ss:$8 sps:$4 sm:$0xff]  }
 0x864   : >> { %4144 = vmatpush1.bf16.msra.mxu0 %v13122_v20  ;;  %4725 = vmatpush1.bf16.msra.mxu1 %v13125_v23  ;;  %v13219_v20 = vld [vmem:[%s16464_s7 + $0x6c4] ss:$8 sps:$4 sm:$0xff]   ;;  %v13214_v23 = vld [vmem:[%s16464_s7 + $0x640] ss:$8 sps:$4 sm:$0xff]  }
 0x865   : >> { %4145 = vmatprep.subr.bf16.mxu0 %v13130_v25  ;;  %4726 = vmatprep.subr.bf16.mxu1 %v13133_v26  ;;  %v13217_v25 = vld [vmem:[%s16464_s7 + $0x6c0] ss:$8 sps:$4 sm:$0xff]   ;;  %v13222_v26 = vld [vmem:[%s16464_s7 + $0x654] ss:$8 sps:$4 sm:$0xff]  }
 0x868   : >> { %4146 = vmatpush1.bf16.msra.mxu0 %v13128_v27  ;;  %4727 = vmatpush1.bf16.msra.mxu1 %v13131_v31  ;;  %v13225_v27 = vld [vmem:[%s16464_s7 + $0x6d4] ss:$8 sps:$4 sm:$0xff]   ;;  %v13220_v31 = vld [vmem:[%s16464_s7 + $0x650] ss:$8 sps:$4 sm:$0xff]  }
 0x869   : >> { %4147 = vmatprep.subr.bf16.mxu0 %v13136_v32  ;;  %4728 = vmatprep.subr.bf16.mxu1 %v13139_v36  ;;  %v13223_v32 = vld [vmem:[%s16464_s7 + $0x6d0] ss:$8 sps:$4 sm:$0xff]   ;;  %v13228_v36 = vld [vmem:[%s16464_s7 + $0x664] ss:$8 sps:$4 sm:$0xff]  }
 0x86c   : >> { %4148 = vmatpush1.bf16.msra.mxu0 %v13134_v37  ;;  %4729 = vmatpush1.bf16.msra.mxu1 %v13137_v38  ;;  %v13231_v37 = vld [vmem:[%s16464_s7 + $0x6e4] ss:$8 sps:$4 sm:$0xff]   ;;  %v13226_v38 = vld [vmem:[%s16464_s7 + $0x660] ss:$8 sps:$4 sm:$0xff]  }
 0x86d   : >> { %4279 = vmatprep.subr.bf16.mxu0 %v13142_v40  ;;  %4854 = vmatprep.subr.bf16.mxu1 %v13145_v1  ;;  %v13229_v40 = vld [vmem:[%s16464_s7 + $0x6e0] ss:$8 sps:$4 sm:$0xff]   ;;  %v13234_v1 = vld [vmem:[%s16464_s7 + $0x674] ss:$8 sps:$4 sm:$0xff]  }
 0x86f   : >> { %4166 = vmatmul.mubr.bf16.vlgmr.msra.gmra.mrb[0].mxu0 %v14926_v41  ;;  %4747 = vmatmul.mubr.bf16.vlgmr.msra.gmra.mrb[0].mxu1 %v14926_v41 }
 0x870   : >> { %4280 = vmatpush1.bf16.msra.mxu0 %v13140_v42  ;;  %4855 = vmatpush1.bf16.msra.mxu1 %v13143_v43  ;;  %v13237_v42 = vld [vmem:[%s16464_s7 + $0x6f4] ss:$8 sps:$4 sm:$0xff]   ;;  %v13232_v43 = vld [vmem:[%s16464_s7 + $0x670] ss:$8 sps:$4 sm:$0xff]  }
 0x871   : >> { %4281 = vmatprep.subr.bf16.mxu0 %v13149_v44  ;;  %4856 = vmatprep.subr.bf16.mxu1 %v13152_v45  ;;  %v13235_v44 = vld [vmem:[%s16464_s7 + $0x6f0] ss:$8 sps:$4 sm:$0xff]  }
 0x872   : >> { %4311 = vmatprep.mubr.bf16.mxu0 %v13746_v39  ;;  %4886 = vmatprep.mubr.bf16.mxu1 %v13746_v39  ;;  %v15126_v45 = vld [vmem:[%s14805_s20 + $0x18] sm:$0x1f]  }
 0x874   : >> { %4282 = vmatpush1.bf16.msra.mxu0 %v13147_v47  ;;  %4857 = vmatpush1.bf16.msra.mxu1 %v13150_v48  ;;  %v13747_v47 = vmov 0.0  }
 0x875   : >> { %4283 = vmatprep.subr.bf16.mxu0 %v13155_v50  ;;  %4858 = vmatprep.subr.bf16.mxu1 %v13158_v51 }
 0x878   : >> { %4284 = vmatpush1.bf16.msra.mxu0 %v13153_v52  ;;  %4859 = vmatpush1.bf16.msra.mxu1 %v13156_v54 }
 0x879   : >> { %4285 = vmatprep.subr.bf16.mxu0 %v13161_v55  ;;  %4860 = vmatprep.subr.bf16.mxu1 %v13164_v56 }
 0x87c   : >> { %4286 = vmatpush1.bf16.msra.mxu0 %v13159_v11  ;;  %4861 = vmatpush1.bf16.msra.mxu1 %v13162_v57 }
 0x87d   : >> { %4287 = vmatprep.subr.bf16.mxu0 %v13167_v13  ;;  %4862 = vmatprep.subr.bf16.mxu1 %v13170_v7 }
 0x880   : >> { %4288 = vmatpush1.bf16.msra.mxu0 %v13165_v17  ;;  %4863 = vmatpush1.bf16.msra.mxu1 %v13168_v22 }
 0x881   : >> { %4289 = vmatprep.subr.bf16.mxu0 %v13173_v24  ;;  %4864 = vmatprep.subr.bf16.mxu1 %v13176_v28  ;;  %v10446_v24 = vld [vmem:[%s16466_s9 + $0x4] sm:$0xf] }
 0x882   : >> { %v13241_v28 = vld [vmem:[%s16464_s7 + $0x304] ss:$8 sps:$4 sm:$0xff]  }
 0x884   : >> { %4290 = vmatpush1.bf16.msra.mxu0 %v13171_v46  ;;  %4865 = vmatpush1.bf16.msra.mxu1 %v13174_v29  ;;  %v13239_v46 = vld [vmem:[%s16464_s7 + $0x300] ss:$8 sps:$4 sm:$0xff]  }
 0x885   : >> { %4291 = vmatprep.subr.bf16.mxu0 %v13179_v30  ;;  %4866 = vmatprep.subr.bf16.mxu1 %v13182_v49  ;;  %v4476_v29 = vld [vmem:[%s16466_s9] sm:$0xf]  ;;  %v13244_v30 = vld [vmem:[%s16464_s7 + $0x314] ss:$8 sps:$4 sm:$0xff]   ;;  %v13242_v49 = vld [vmem:[%s16464_s7 + $0x310] ss:$8 sps:$4 sm:$0xff]  }
 0x888   : >> { %4292 = vmatpush1.bf16.msra.mxu0 %v13177_v53  ;;  %4867 = vmatpush1.bf16.msra.mxu1 %v13180_v33  ;;  %v13247_v53 = vld [vmem:[%s16464_s7 + $0x324] ss:$8 sps:$4 sm:$0xff]   ;;  %v13245_v33 = vld [vmem:[%s16464_s7 + $0x320] ss:$8 sps:$4 sm:$0xff]  }
 0x889   : >> { %4293 = vmatprep.subr.bf16.mxu0 %v13185_v58  ;;  %4868 = vmatprep.subr.bf16.mxu1 %v13188_v15  ;;  %v13250_v58 = vld [vmem:[%s16464_s7 + $0x334] ss:$8 sps:$4 sm:$0xff]   ;;  %v13248_v15 = vld [vmem:[%s16464_s7 + $0x330] ss:$8 sps:$4 sm:$0xff]  }
 0x88c   : >> { %4294 = vmatpush1.bf16.msra.mxu0 %v13183_v21  ;;  %4869 = vmatpush1.bf16.msra.mxu1 %v13186_v60  ;;  %v13253_v21 = vld [vmem:[%s16464_s7 + $0x344] ss:$8 sps:$4 sm:$0xff]   ;;  %v13251_v60 = vld [vmem:[%s16464_s7 + $0x340] ss:$8 sps:$4 sm:$0xff]  }
 0x88d   : >> { %4429 = vmatprep.subr.bf16.mxu0 %v13191_v4  ;;  %4998 = vmatprep.subr.bf16.mxu1 %v13194_v59  ;;  %v13256_v4 = vld [vmem:[%s16464_s7 + $0x354] ss:$8 sps:$4 sm:$0xff]   ;;  %v13254_v59 = vld [vmem:[%s16464_s7 + $0x350] ss:$8 sps:$4 sm:$0xff]  }
 0x88f   : >> { %4312 = vmatmul.mubr.bf16.vlgmr.msra.gmra.mrb[0].mxu0 %v15029_v61  ;;  %4887 = vmatmul.mubr.bf16.vlgmr.msra.gmra.mrb[0].mxu1 %v15029_v61 }
 0x890   : >> { %4430 = vmatpush1.bf16.msra.mxu0 %v13189_v62  ;;  %4999 = vmatpush1.bf16.msra.mxu1 %v13192_v63  ;;  %v13259_v62 = vld [vmem:[%s16464_s7 + $0x364] ss:$8 sps:$4 sm:$0xff]   ;;  %v13257_v63 = vld [vmem:[%s16464_s7 + $0x360] ss:$8 sps:$4 sm:$0xff]  }
 0x891   : >> { %4431 = vmatprep.subr.bf16.mxu0 %v13198_v2  ;;  %5000 = vmatprep.subr.bf16.mxu1 %v13201_v5  ;;  %v13262_v2 = vld [vmem:[%s16464_s7 + $0x374] ss:$8 sps:$4 sm:$0xff]   ;;  %v13260_v5 = vld [vmem:[%s16464_s7 + $0x370] ss:$8 sps:$4 sm:$0xff]  }
 0x892   : >> { %4461 = vmatprep.mubr.bf16.mxu0 %v13746_v39  ;;  %5030 = vmatprep.mubr.bf16.mxu1 %v13746_v39 }
 0x894   : >> { %4432 = vmatpush1.bf16.msra.mxu0 %v13196_v6  ;;  %5001 = vmatpush1.bf16.msra.mxu1 %v13199_v8  ;;  %v13265_v6 = vld [vmem:[%s16464_s7 + $0x104] ss:$8 sps:$4 sm:$0xff]   ;;  %v13263_v8 = vld [vmem:[%s16464_s7 + $0x100] ss:$8 sps:$4 sm:$0xff]  }
 0x895   : >> { %4433 = vmatprep.subr.bf16.mxu0 %v13204_v0  ;;  %5002 = vmatprep.subr.bf16.mxu1 %v13207_v9  ;;  %v13268_v0 = vld [vmem:[%s16464_s7 + $0x114] ss:$8 sps:$4 sm:$0xff]   ;;  %v13266_v9 = vld [vmem:[%s16464_s7 + $0x110] ss:$8 sps:$4 sm:$0xff]  }
 0x898   : >> { %4434 = vmatpush1.bf16.msra.mxu0 %v13202_v10  ;;  %5003 = vmatpush1.bf16.msra.mxu1 %v13205_v12  ;;  %v13271_v10 = vld [vmem:[%s16464_s7 + $0x124] ss:$8 sps:$4 sm:$0xff]   ;;  %v13269_v12 = vld [vmem:[%s16464_s7 + $0x120] ss:$8 sps:$4 sm:$0xff]  }
 0x899   : >> { %4435 = vmatprep.subr.bf16.mxu0 %v13210_v14  ;;  %5004 = vmatprep.subr.bf16.mxu1 %v13213_v16  ;;  %v13272_v14 = vld [vmem:[%s16464_s7 + $0x130] ss:$8 sps:$4 sm:$0xff]   ;;  %v13277_v16 = vld [vmem:[%s16464_s7 + $0x144] ss:$8 sps:$4 sm:$0xff]  }
 0x89c   : >> { %4436 = vmatpush1.bf16.msra.mxu0 %v13208_v18  ;;  %5005 = vmatpush1.bf16.msra.mxu1 %v13211_v3  ;;  %v13275_v18 = vld [vmem:[%s16464_s7 + $0x140] ss:$8 sps:$4 sm:$0xff]   ;;  %v13280_v3 = vld [vmem:[%s16464_s7 + $0x154] ss:$8 sps:$4 sm:$0xff]  }
 0x89d   : >> { %4437 = vmatprep.subr.bf16.mxu0 %v13216_v19  ;;  %5006 = vmatprep.subr.bf16.mxu1 %v13219_v20  ;;  %v13278_v19 = vld [vmem:[%s16464_s7 + $0x150] ss:$8 sps:$4 sm:$0xff]   ;;  %v13283_v20 = vld [vmem:[%s16464_s7 + $0x164] ss:$8 sps:$4 sm:$0xff]  }
 0x8a0   : >> { %4438 = vmatpush1.bf16.msra.mxu0 %v13214_v23  ;;  %5007 = vmatpush1.bf16.msra.mxu1 %v13217_v25  ;;  %v13281_v23 = vld [vmem:[%s16464_s7 + $0x160] ss:$8 sps:$4 sm:$0xff]   ;;  %v13286_v25 = vld [vmem:[%s16464_s7 + $0x174] ss:$8 sps:$4 sm:$0xff]  }
 0x8a1   : >> { %4439 = vmatprep.subr.bf16.mxu0 %v13222_v26  ;;  %5008 = vmatprep.subr.bf16.mxu1 %v13225_v27  ;;  %v13284_v26 = vld [vmem:[%s16464_s7 + $0x170] ss:$8 sps:$4 sm:$0xff]   ;;  %v13289_v27 = vld [vmem:[%s16464_s7 + $0x504] ss:$8 sps:$4 sm:$0xff]  }
 0x8a4   : >> { %4440 = vmatpush1.bf16.msra.mxu0 %v13220_v31  ;;  %5009 = vmatpush1.bf16.msra.mxu1 %v13223_v32  ;;  %v13287_v31 = vld [vmem:[%s16464_s7 + $0x500] ss:$8 sps:$4 sm:$0xff]   ;;  %v13292_v32 = vld [vmem:[%s16464_s7 + $0x514] ss:$8 sps:$4 sm:$0xff]  }
 0x8a5   : >> { %4441 = vmatprep.subr.bf16.mxu0 %v13228_v36  ;;  %5010 = vmatprep.subr.bf16.mxu1 %v13231_v37  ;;  %v13290_v36 = vld [vmem:[%s16464_s7 + $0x510] ss:$8 sps:$4 sm:$0xff]   ;;  %v13295_v37 = vld [vmem:[%s16464_s7 + $0x524] ss:$8 sps:$4 sm:$0xff]  }
 0x8a8   : >> { %4442 = vmatpush1.bf16.msra.mxu0 %v13226_v38  ;;  %5011 = vmatpush1.bf16.msra.mxu1 %v13229_v40  ;;  %v13293_v38 = vld [vmem:[%s16464_s7 + $0x520] ss:$8 sps:$4 sm:$0xff]   ;;  %v13296_v40 = vld [vmem:[%s16464_s7 + $0x530] ss:$8 sps:$4 sm:$0xff]  }
 0x8a9   : >> { %4443 = vmatprep.subr.bf16.mxu0 %v13234_v1  ;;  %5012 = vmatprep.subr.bf16.mxu1 %v13237_v42  ;;  %v13301_v1 = vld [vmem:[%s16464_s7 + $0x544] ss:$8 sps:$4 sm:$0xff]   ;;  %v13299_v42 = vld [vmem:[%s16464_s7 + $0x540] ss:$8 sps:$4 sm:$0xff]  }
 0x8ac   : >> { %4444 = vmatpush1.bf16.msra.mxu0 %v13232_v43  ;;  %5013 = vmatpush1.bf16.msra.mxu1 %v13235_v44  ;;  %v13304_v43 = vld [vmem:[%s16464_s7 + $0x554] ss:$8 sps:$4 sm:$0xff]   ;;  %v13302_v44 = vld [vmem:[%s16464_s7 + $0x550] ss:$8 sps:$4 sm:$0xff]  }
 0x8af   : >> { %4462 = vmatmul.mubr.bf16.vlgmr.msra.gmra.mrb[0].mxu0 %v15126_v45  ;;  %5031 = vmatmul.mubr.bf16.vlgmr.msra.gmra.mrb[0].mxu1 %v15126_v45 }
 0x8b0   : >> { %5122 = vmatprep.mubr.f32.mxu1 %v13747_v47  ;;  %5852 = vmatprep.mubr.f32.mxu0 %v13747_v47 }
 0x982   : >> { %v4463_v48 = vpop.f32.mrb[0].mxu0  ;;  %v5032_v50 = vpop.f32.mrb[0].mxu1 }
 0x983   : >> { %v4465_v51 = vpop.f32.mrb[1].mxu0  ;;  %v5034_v52 = vpop.f32.mrb[1].mxu1 }
 0x984   : >> { %v4467_v54 = vpop.f32.mrb[2].mxu0  ;;  %v5036_v55 = vpop.f32.mrb[2].mxu1 }
 0x985   : >> { %v12641_v56 = vpack.c.bf16 %v4467_v54, %v4463_v48  ;;  %v12635_v11 = vpack.c.bf16 %v5036_v55, %v5032_v50  ;;  %v4469_v57 = vpop.f32.mrb[3].mxu0  ;;  %v5038_v13 = vpop.f32.mrb[3].mxu1  ;;  %v13307_v48 = vld [vmem:[%s16464_s7 + $0x564] ss:$8 sps:$4 sm:$0xff]   ;;  %v13305_v50 = vld [vmem:[%s16464_s7 + $0x560] ss:$8 sps:$4 sm:$0xff]  }
 0x986   : >> { %v12638_v17 = vpack.c.bf16 %v4469_v57, %v4465_v51  ;;  %v12632_v22 = vpack.c.bf16 %v5038_v13, %v5034_v52  ;;  %v13310_v51 = vld [vmem:[%s16464_s7 + $0x574] ss:$8 sps:$4 sm:$0xff]   ;;  %v13308_v52 = vld [vmem:[%s16464_s7 + $0x570] ss:$8 sps:$4 sm:$0xff]   ;;  %v13313_v54 = vld [vmem:[%s16464_s7 + $0x704] ss:$8 sps:$4 sm:$0xff]  }
 0x987   : >> { %v13311_v55 = vld [vmem:[%s16464_s7 + $0x700] ss:$8 sps:$4 sm:$0xff]   ;;  %v13319_v57 = vld [vmem:[%s16464_s7 + $0x724] ss:$8 sps:$4 sm:$0xff]  }
 0x988   : >> { %12634 = vmatprep.subr.msk.bf16.mxu1 %vm15133_vm8, %v12632_v22  ;;  %v13317_v13 = vld [vmem:[%s16464_s7 + $0x720] ss:$8 sps:$4 sm:$0xff]   ;;  %v13320_v22 = vld [vmem:[%s16464_s7 + $0x730] ss:$8 sps:$4 sm:$0xff]  }
 0x989   : >> { %12637 = vmatpush1.bf16.msk.msra.mxu1 %vm15133_vm8, %v12635_v11  ;;  %v13314_v11 = vld [vmem:[%s16464_s7 + $0x710] ss:$8 sps:$4 sm:$0xff]  }
 0x98a   : >> { %12640 = vmatprep.subr.msk.bf16.mxu1 %vm15133_vm8, %v12638_v17  ;;  %v13322_v17 = vld [vmem:[%s16464_s7 + $0x734] ss:$8 sps:$4 sm:$0xff]  }
 0x98c   : >> { %10449 = vmatmul.mubr.msk.f32.vlgmr.msra.gmra.mrb[4].mxu1 %vm5047_vm9, %v10446_v24  ;;  %v13325_v24 = vld [vmem:[%s16464_s7 + $0x744] ss:$8 sps:$4 sm:$0xff]  }
 0x98d   : >> { %12643 = vmatpush1.bf16.msk.msra.mxu1 %vm15133_vm8, %v12641_v56  ;;  %5202 = vmatprep.mubr.f32.mxu1 %v13747_v47  ;;  %v13316_v56 = vld [vmem:[%s16464_s7 + $0x714] ss:$8 sps:$4 sm:$0xff]  }
 0x98e   : >> { %5323 = vmatprep.subr.bf16.mxu1 %v13241_v28  ;;  %v13323_v28 = vld [vmem:[%s16464_s7 + $0x740] ss:$8 sps:$4 sm:$0xff]  }
 0x994   : >> { %10452 = vmatmul.mubr.msk.f32.vlgmr.msra.gmra.mrb[4].mxu1 %vm5047_vm9, %v4476_v29  ;;  %v13326_v29 = vld [vmem:[%s16464_s7 + $0x750] ss:$8 sps:$4 sm:$0xff]  }
 0x995   : >> { %5324 = vmatpush1.bf16.msra.mxu1 %v13239_v46  ;;  %5355 = vmatprep.mubr.bf16.mxu1 %v13746_v39  ;;  %v13328_v46 = vld [vmem:[%s16464_s7 + $0x754] ss:$8 sps:$4 sm:$0xff]  }
 0x996   : >> { %5325 = vmatprep.subr.bf16.mxu1 %v13244_v30  ;;  %v13331_v30 = vld [vmem:[%s16464_s7 + $0x764] ss:$8 sps:$4 sm:$0xff]  }
 0x999   : >> { %5326 = vmatpush1.bf16.msra.mxu1 %v13242_v49  ;;  %v13329_v49 = vld [vmem:[%s16464_s7 + $0x760] ss:$8 sps:$4 sm:$0xff]  }
 0x99a   : >> { %5327 = vmatprep.subr.bf16.mxu1 %v13247_v53  ;;  %v13334_v53 = vld [vmem:[%s16464_s7 + $0x774] ss:$8 sps:$4 sm:$0xff]  }
 0x99d   : >> { %5328 = vmatpush1.bf16.msra.mxu1 %v13245_v33  ;;  %v13332_v33 = vld [vmem:[%s16464_s7 + $0x770] ss:$8 sps:$4 sm:$0xff]  }
 0x99e   : >> { %5329 = vmatprep.subr.bf16.mxu1 %v13250_v58 }
 0x9a1   : >> { %5330 = vmatpush1.bf16.msra.mxu1 %v13248_v15 }
 0x9a2   : >> { %5331 = vmatprep.subr.bf16.mxu1 %v13253_v21 }
 0x9a5   : >> { %5332 = vmatpush1.bf16.msra.mxu1 %v13251_v60 }
 0x9a6   : >> { %5333 = vmatprep.subr.bf16.mxu1 %v13256_v4 }
 0x9a9   : >> { %5334 = vmatpush1.bf16.msra.mxu1 %v13254_v59 }
 0x9aa   : >> { %5335 = vmatprep.subr.bf16.mxu1 %v13259_v62 }
 0x9ad   : >> { %5336 = vmatpush1.bf16.msra.mxu1 %v13257_v63 }
 0x9ae   : >> { %5337 = vmatprep.subr.bf16.mxu1 %v13262_v2  ;;  %v13337_v2 = vld [vmem:[%s16464_s7 + $0x384] ss:$8 sps:$4 sm:$0xff]  }
 0x9b1   : >> { %5338 = vmatpush1.bf16.msra.mxu1 %v13260_v5  ;;  %v13335_v5 = vld [vmem:[%s16464_s7 + $0x380] ss:$8 sps:$4 sm:$0xff]  }
 0x9b2   : >> { %5446 = vmatprep.subr.bf16.mxu1 %v13265_v6  ;;  %v10581_v6 = vld [vmem:[%s16466_s9 + $0x8] sm:$0xf] }
 0x9b4   : >> { %5356 = vmatmul.mubr.bf16.vlgmr.msra.gmra.mrb[8].mxu1 %v14826_v34  ;;  %v13274_v34 = vld [vmem:[%s16464_s7 + $0x134] ss:$8 sps:$4 sm:$0xff]  }
 0x9b5   : >> { %5447 = vmatpush1.bf16.msra.mxu1 %v13263_v8  ;;  %5478 = vmatprep.mubr.bf16.mxu1 %v13746_v39  ;;  %v13340_v8 = vld [vmem:[%s16464_s7 + $0x394] ss:$8 sps:$4 sm:$0xff]  }
 0x9b6   : >> { %5448 = vmatprep.subr.bf16.mxu1 %v13268_v0  ;;  %v13338_v0 = vld [vmem:[%s16464_s7 + $0x390] ss:$8 sps:$4 sm:$0xff]  }
 0x9b9   : >> { %5449 = vmatpush1.bf16.msra.mxu1 %v13266_v9  ;;  %v13343_v9 = vld [vmem:[%s16464_s7 + $0x3a4] ss:$8 sps:$4 sm:$0xff]  }
 0x9ba   : >> { %5450 = vmatprep.subr.bf16.mxu1 %v13271_v10  ;;  %v13341_v10 = vld [vmem:[%s16464_s7 + $0x3a0] ss:$8 sps:$4 sm:$0xff]  }
 0x9bd   : >> { %5451 = vmatpush1.bf16.msra.mxu1 %v13269_v12  ;;  %v13346_v12 = vld [vmem:[%s16464_s7 + $0x3b4] ss:$8 sps:$4 sm:$0xff]  }
 0x9be   : >> { %5452 = vmatprep.subr.bf16.mxu1 %v13274_v34  ;;  %v13344_v34 = vld [vmem:[%s16464_s7 + $0x3b0] ss:$8 sps:$4 sm:$0xff]  }
 0x9c1   : >> { %5453 = vmatpush1.bf16.msra.mxu1 %v13272_v14  ;;  %v13349_v14 = vld [vmem:[%s16464_s7 + $0x3c4] ss:$8 sps:$4 sm:$0xff]  }
 0x9c2   : >> { %5454 = vmatprep.subr.bf16.mxu1 %v13277_v16  ;;  %v13347_v16 = vld [vmem:[%s16464_s7 + $0x3c0] ss:$8 sps:$4 sm:$0xff]  }
 0x9c5   : >> { %5455 = vmatpush1.bf16.msra.mxu1 %v13275_v18  ;;  %v13352_v18 = vld [vmem:[%s16464_s7 + $0x3d4] ss:$8 sps:$4 sm:$0xff]  }
 0x9c6   : >> { %5456 = vmatprep.subr.bf16.mxu1 %v13280_v3  ;;  %v13350_v3 = vld [vmem:[%s16464_s7 + $0x3d0] ss:$8 sps:$4 sm:$0xff]  }
 0x9c9   : >> { %5457 = vmatpush1.bf16.msra.mxu1 %v13278_v19  ;;  %v13355_v19 = vld [vmem:[%s16464_s7 + $0x3e4] ss:$8 sps:$4 sm:$0xff]  }
 0x9ca   : >> { %5458 = vmatprep.subr.bf16.mxu1 %v13283_v20  ;;  %v13353_v20 = vld [vmem:[%s16464_s7 + $0x3e0] ss:$8 sps:$4 sm:$0xff]  }
 0x9cd   : >> { %5459 = vmatpush1.bf16.msra.mxu1 %v13281_v23  ;;  %v13358_v23 = vld [vmem:[%s16464_s7 + $0x3f4] ss:$8 sps:$4 sm:$0xff]  }
 0x9ce   : >> { %5460 = vmatprep.subr.bf16.mxu1 %v13286_v25  ;;  %v13356_v25 = vld [vmem:[%s16464_s7 + $0x3f0] ss:$8 sps:$4 sm:$0xff]  }
 0x9d1   : >> { %5461 = vmatpush1.bf16.msra.mxu1 %v13284_v26  ;;  %v13361_v26 = vld [vmem:[%s16464_s7 + $0x184] ss:$8 sps:$4 sm:$0xff]  }
 0x9d2   : >> { %5586 = vmatprep.subr.bf16.mxu1 %v13289_v27  ;;  %v13359_v27 = vld [vmem:[%s16464_s7 + $0x180] ss:$8 sps:$4 sm:$0xff]  }
 0x9d4   : >> { %5479 = vmatmul.mubr.bf16.vlgmr.msra.gmra.mrb[8].mxu1 %v14926_v41  ;;  %v13298_v41 = vld [vmem:[%s16464_s7 + $0x534] ss:$8 sps:$4 sm:$0xff]  }
 0x9d5   : >> { %5587 = vmatpush1.bf16.msra.mxu1 %v13287_v31  ;;  %5618 = vmatprep.mubr.bf16.mxu1 %v13746_v39  ;;  %v13364_v31 = vld [vmem:[%s16464_s7 + $0x194] ss:$8 sps:$4 sm:$0xff]  }
 0x9d6   : >> { %5588 = vmatprep.subr.bf16.mxu1 %v13292_v32  ;;  %v13431_v32 = vld [vmem:[%s14805_s20 + $0x8] sm:$0x1f]  }
 0x9d9   : >> { %5589 = vmatpush1.bf16.msra.mxu1 %v13290_v36  ;;  %v13362_v36 = vld [vmem:[%s16464_s7 + $0x190] ss:$8 sps:$4 sm:$0xff]  }
 0x9da   : >> { %5590 = vmatprep.subr.bf16.mxu1 %v13295_v37  ;;  %v13367_v37 = vld [vmem:[%s16464_s7 + $0x1a4] ss:$8 sps:$4 sm:$0xff]  }
 0x9dd   : >> { %5591 = vmatpush1.bf16.msra.mxu1 %v13293_v38  ;;  %v13365_v38 = vld [vmem:[%s16464_s7 + $0x1a0] ss:$8 sps:$4 sm:$0xff]  }
 0x9de   : >> { %5592 = vmatprep.subr.bf16.mxu1 %v13298_v41  ;;  %v13370_v41 = vld [vmem:[%s16464_s7 + $0x1b4] ss:$8 sps:$4 sm:$0xff]  }
 0x9e1   : >> { %5593 = vmatpush1.bf16.msra.mxu1 %v13296_v40  ;;  %v13368_v40 = vld [vmem:[%s16464_s7 + $0x1b0] ss:$8 sps:$4 sm:$0xff]  }
 0x9e2   : >> { %5594 = vmatprep.subr.bf16.mxu1 %v13301_v1  ;;  %v13373_v1 = vld [vmem:[%s16464_s7 + $0x1c4] ss:$8 sps:$4 sm:$0xff]  }
 0x9e5   : >> { %5595 = vmatpush1.bf16.msra.mxu1 %v13299_v42  ;;  %v13371_v42 = vld [vmem:[%s16464_s7 + $0x1c0] ss:$8 sps:$4 sm:$0xff]  }
 0x9e6   : >> { %5596 = vmatprep.subr.bf16.mxu1 %v13304_v43  ;;  %v13376_v43 = vld [vmem:[%s16464_s7 + $0x1d4] ss:$8 sps:$4 sm:$0xff]  }
 0x9e9   : >> { %5597 = vmatpush1.bf16.msra.mxu1 %v13302_v44  ;;  %v13374_v44 = vld [vmem:[%s16464_s7 + $0x1d0] ss:$8 sps:$4 sm:$0xff]  }
 0x9ea   : >> { %5598 = vmatprep.subr.bf16.mxu1 %v13307_v48  ;;  %v13379_v48 = vld [vmem:[%s16464_s7 + $0x1e4] ss:$8 sps:$4 sm:$0xff]  }
 0x9ed   : >> { %5599 = vmatpush1.bf16.msra.mxu1 %v13305_v50  ;;  %v13377_v50 = vld [vmem:[%s16464_s7 + $0x1e0] ss:$8 sps:$4 sm:$0xff]  }
 0x9ee   : >> { %5600 = vmatprep.subr.bf16.mxu1 %v13310_v51  ;;  %v13382_v51 = vld [vmem:[%s16464_s7 + $0x1f4] ss:$8 sps:$4 sm:$0xff]  }
 0x9f1   : >> { %5601 = vmatpush1.bf16.msra.mxu1 %v13308_v52  ;;  %v13380_v52 = vld [vmem:[%s16464_s7 + $0x1f0] ss:$8 sps:$4 sm:$0xff]  }
 0x9f2   : >> { %5730 = vmatprep.subr.bf16.mxu1 %v13313_v54  ;;  %v13385_v54 = vld [vmem:[%s16464_s7 + $0x584] ss:$8 sps:$4 sm:$0xff]  }
 0x9f4   : >> { %5619 = vmatmul.mubr.bf16.vlgmr.msra.gmra.mrb[8].mxu1 %v15029_v61 }
 0x9f5   : >> { %5731 = vmatpush1.bf16.msra.mxu1 %v13311_v55  ;;  %5762 = vmatprep.mubr.bf16.mxu1 %v13746_v39  ;;  %v13383_v55 = vld [vmem:[%s16464_s7 + $0x580] ss:$8 sps:$4 sm:$0xff]  }
 0x9f6   : >> { %5732 = vmatprep.subr.bf16.mxu1 %v13316_v56  ;;  %v13388_v56 = vld [vmem:[%s16464_s7 + $0x594] ss:$8 sps:$4 sm:$0xff]  }
 0x9f9   : >> { %5733 = vmatpush1.bf16.msra.mxu1 %v13314_v11  ;;  %v13432_v11 = vld [vmem:[%s14805_s20] sm:$0x1f]  }
 0x9fa   : >> { %5734 = vmatprep.subr.bf16.mxu1 %v13319_v57  ;;  %v13386_v57 = vld [vmem:[%s16464_s7 + $0x590] ss:$8 sps:$4 sm:$0xff]  }
 0x9fd   : >> { %5735 = vmatpush1.bf16.msra.mxu1 %v13317_v13  ;;  %v13391_v13 = vld [vmem:[%s16464_s7 + $0x5a4] ss:$8 sps:$4 sm:$0xff]  }
 0x9fe   : >> { %5736 = vmatprep.subr.bf16.mxu1 %v13322_v17  ;;  %v13389_v17 = vld [vmem:[%s16464_s7 + $0x5a0] ss:$8 sps:$4 sm:$0xff]  }
 0xa01   : >> { %5737 = vmatpush1.bf16.msra.mxu1 %v13320_v22  ;;  %v13394_v22 = vld [vmem:[%s16464_s7 + $0x5b4] ss:$8 sps:$4 sm:$0xff]  }
 0xa02   : >> { %5738 = vmatprep.subr.bf16.mxu1 %v13325_v24  ;;  %v13392_v24 = vld [vmem:[%s16464_s7 + $0x5b0] ss:$8 sps:$4 sm:$0xff]  }
 0xa05   : >> { %5739 = vmatpush1.bf16.msra.mxu1 %v13323_v28  ;;  %v13397_v28 = vld [vmem:[%s16464_s7 + $0x5c4] ss:$8 sps:$4 sm:$0xff]  }
 0xa06   : >> { %5740 = vmatprep.subr.bf16.mxu1 %v13328_v46  ;;  %v13395_v46 = vld [vmem:[%s16464_s7 + $0x5c0] ss:$8 sps:$4 sm:$0xff]  }
 0xa09   : >> { %5741 = vmatpush1.bf16.msra.mxu1 %v13326_v29  ;;  %v13400_v29 = vld [vmem:[%s16464_s7 + $0x5d4] ss:$8 sps:$4 sm:$0xff]  }
 0xa0a   : >> { %5742 = vmatprep.subr.bf16.mxu1 %v13331_v30  ;;  %v13398_v30 = vld [vmem:[%s16464_s7 + $0x5d0] ss:$8 sps:$4 sm:$0xff]  }
 0xa0d   : >> { %5743 = vmatpush1.bf16.msra.mxu1 %v13329_v49  ;;  %v13403_v49 = vld [vmem:[%s16464_s7 + $0x5e4] ss:$8 sps:$4 sm:$0xff]  }
 0xa0e   : >> { %5744 = vmatprep.subr.bf16.mxu1 %v13334_v53  ;;  %v13401_v53 = vld [vmem:[%s16464_s7 + $0x5e0] ss:$8 sps:$4 sm:$0xff]  }
 0xa11   : >> { %5745 = vmatpush1.bf16.msra.mxu1 %v13332_v33  ;;  %v13406_v33 = vld [vmem:[%s16464_s7 + $0x5f4] ss:$8 sps:$4 sm:$0xff]  }
 0xa14   : >> { %5763 = vmatmul.mubr.bf16.vlgmr.msra.gmra.mrb[8].mxu1 %v15126_v45 }
 0xa67   : >> { %v15354_v58 = vpop.f32.mrb[4].mxu1 }
 0xa68   : >> { %v15356_v15 = vpop.f32.mrb[5].mxu1 }
 0xae7   : >> { %v5764_v21 = vpop.f32.mrb[8].mxu1 }
 0xae8   : >> { %v5766_v60 = vpop.f32.mrb[9].mxu1 }
 0xae9   : >> { %v5768_v4 = vpop.f32.mrb[10].mxu1 }
 0xaea   : >> { %v12647_v59 = vpack.c.bf16 %v5768_v4, %v5764_v21  ;;  %v5770_v62 = vpop.f32.mrb[11].mxu1  ;;  %v13404_v21 = vld [vmem:[%s16464_s7 + $0x5f0] ss:$8 sps:$4 sm:$0xff]   ;;  %v13407_v4 = vld [vmem:[%s16464_s7 + $0x780] ss:$8 sps:$4 sm:$0xff]  }
 0xaeb   : >> { %v12644_v63 = vpack.c.bf16 %v5770_v62, %v5766_v60  ;;  %v13409_v60 = vld [vmem:[%s16464_s7 + $0x784] ss:$8 sps:$4 sm:$0xff]   ;;  %v13410_v62 = vld [vmem:[%s16464_s7 + $0x790] ss:$8 sps:$4 sm:$0xff]  }
 0xaed   : >> { %12646 = vmatprep.subr.msk.bf16.mxu0 %vm15133_vm8, %v12644_v63  ;;  %v13415_v63 = vld [vmem:[%s16464_s7 + $0x7a4] ss:$8 sps:$4 sm:$0xff]  }
 0xaee   : >> { %12649 = vmatpush1.bf16.msk.msra.mxu0 %vm15133_vm8, %v12647_v59  ;;  %v13412_v59 = vld [vmem:[%s16464_s7 + $0x794] ss:$8 sps:$4 sm:$0xff]  }
 0xaef   : >> { %5975 = vmatprep.subr.bf16.mxu0 %v13337_v2  ;;  %v13413_v2 = vld [vmem:[%s16464_s7 + $0x7a0] ss:$8 sps:$4 sm:$0xff]  }
 0xaf1   : >> { %10584 = vmatmul.mubr.msk.f32.vlgmr.msra.gmra.mrb[4].mxu0 %vm5047_vm9, %v10581_v6  ;;  %v13419_v6 = vld [vmem:[%s16464_s7 + $0x7c0] ss:$8 sps:$4 sm:$0xff]  }
 0xaf2   : >> { %5976 = vmatpush1.bf16.msra.mxu0 %v13335_v5  ;;  %6007 = vmatprep.mubr.bf16.mxu0 %v13746_v39  ;;  %v13421_v5 = vld [vmem:[%s16464_s7 + $0x7c4] ss:$8 sps:$4 sm:$0xff]  }
 0xaf3   : >> { %5977 = vmatprep.subr.bf16.mxu0 %v13340_v8  ;;  %v13424_v8 = vld [vmem:[%s16464_s7 + $0x7d4] ss:$8 sps:$4 sm:$0xff]  }
 0xaf6   : >> { %5978 = vmatpush1.bf16.msra.mxu0 %v13338_v0  ;;  %v13422_v0 = vld [vmem:[%s16464_s7 + $0x7d0] ss:$8 sps:$4 sm:$0xff]  }
 0xaf7   : >> { %5979 = vmatprep.subr.bf16.mxu0 %v13343_v9  ;;  %v13427_v9 = vld [vmem:[%s16464_s7 + $0x7e4] ss:$8 sps:$4 sm:$0xff]  }
 0xafa   : >> { %5980 = vmatpush1.bf16.msra.mxu0 %v13341_v10  ;;  %v13425_v10 = vld [vmem:[%s16464_s7 + $0x7e0] ss:$8 sps:$4 sm:$0xff]  }
 0xafb   : >> { %5981 = vmatprep.subr.bf16.mxu0 %v13346_v12  ;;  %v13430_v12 = vld [vmem:[%s16464_s7 + $0x7f4] ss:$8 sps:$4 sm:$0xff]  }
 0xafe   : >> { %5982 = vmatpush1.bf16.msra.mxu0 %v13344_v34  ;;  %v13428_v34 = vld [vmem:[%s16464_s7 + $0x7f0] ss:$8 sps:$4 sm:$0xff]  }
 0xaff   : >> { %5983 = vmatprep.subr.bf16.mxu0 %v13349_v14 }
 0xb02   : >> { %5984 = vmatpush1.bf16.msra.mxu0 %v13347_v16 }
 0xb03   : >> { %5985 = vmatprep.subr.bf16.mxu0 %v13352_v18 }
 0xb06   : >> { %5986 = vmatpush1.bf16.msra.mxu0 %v13350_v3 }
 0xb07   : >> { %5987 = vmatprep.subr.bf16.mxu0 %v13355_v19 }
 0xb0a   : >> { %5988 = vmatpush1.bf16.msra.mxu0 %v13353_v20 }
 0xb0b   : >> { %5989 = vmatprep.subr.bf16.mxu0 %v13358_v23  ;;  %v10713_v23 = vld [vmem:[%s16466_s9 + $0xc] sm:$0xf] }
 0xb0e   : >> { %5990 = vmatpush1.bf16.msra.mxu0 %v13356_v25 }
 0xb0f   : >> { %6098 = vmatprep.subr.bf16.mxu0 %v13361_v26 }
 0xb11   : >> { %6008 = vmatmul.mubr.bf16.vlgmr.msra.gmra.mrb[8].mxu0 %v13431_v32 }
 0xb12   : >> { %6099 = vmatpush1.bf16.msra.mxu0 %v13359_v27  ;;  %6130 = vmatprep.mubr.bf16.mxu0 %v13746_v39 }
 0xb13   : >> { %6100 = vmatprep.subr.bf16.mxu0 %v13364_v31 }
 0xb16   : >> { %6101 = vmatpush1.bf16.msra.mxu0 %v13362_v36 }
 0xb17   : >> { %6102 = vmatprep.subr.bf16.mxu0 %v13367_v37 }
 0xb1a   : >> { %6103 = vmatpush1.bf16.msra.mxu0 %v13365_v38 }
 0xb1b   : >> { %6104 = vmatprep.subr.bf16.mxu0 %v13370_v41 }
 0xb1e   : >> { %6105 = vmatpush1.bf16.msra.mxu0 %v13368_v40 }
 0xb1f   : >> { %6106 = vmatprep.subr.bf16.mxu0 %v13373_v1 }
 0xb22   : >> { %6107 = vmatpush1.bf16.msra.mxu0 %v13371_v42 }
 0xb23   : >> { %6108 = vmatprep.subr.bf16.mxu0 %v13376_v43 }
 0xb26   : >> { %6109 = vmatpush1.bf16.msra.mxu0 %v13374_v44 }
 0xb27   : >> { %6110 = vmatprep.subr.bf16.mxu0 %v13379_v48 }
 0xb2a   : >> { %6111 = vmatpush1.bf16.msra.mxu0 %v13377_v50 }
 0xb2b   : >> { %6112 = vmatprep.subr.bf16.mxu0 %v13382_v51 }
 0xb2e   : >> { %6113 = vmatpush1.bf16.msra.mxu0 %v13380_v52 }
 0xb2f   : >> { %6238 = vmatprep.subr.bf16.mxu0 %v13385_v54  ;;  %v15583_v54 = vld [vmem:[#allocation5] ss:$0 sm:$0xff] (%p3857_p6) }
 0xb31   : >> { %6131 = vmatmul.mubr.bf16.vlgmr.msra.gmra.mrb[8].mxu0 %v13432_v11 }
 0xb32   : >> { %6239 = vmatpush1.bf16.msra.mxu0 %v13383_v55  ;;  %6270 = vmatprep.mubr.bf16.mxu0 %v13746_v39 }
 0xb33   : >> { %6240 = vmatprep.subr.bf16.mxu0 %v13388_v56 }
 0xb36   : >> { %6241 = vmatpush1.bf16.msra.mxu0 %v13386_v57 }
 0xb37   : >> { %6242 = vmatprep.subr.bf16.mxu0 %v13391_v13 }
 0xb3a   : >> { %6243 = vmatpush1.bf16.msra.mxu0 %v13389_v17 }
 0xb3b   : >> { %6244 = vmatprep.subr.bf16.mxu0 %v13394_v22 }
 0xb3e   : >> { %6245 = vmatpush1.bf16.msra.mxu0 %v13392_v24 }
 0xb3f   : >> { %6246 = vmatprep.subr.bf16.mxu0 %v13397_v28 }
 0xb42   : >> { %6247 = vmatpush1.bf16.msra.mxu0 %v13395_v46 }
 0xb43   : >> { %6248 = vmatprep.subr.bf16.mxu0 %v13400_v29 }
 0xb46   : >> { %6249 = vmatpush1.bf16.msra.mxu0 %v13398_v30 }
 0xb47   : >> { %6250 = vmatprep.subr.bf16.mxu0 %v13403_v49 }
 0xb4a   : >> { %6251 = vmatpush1.bf16.msra.mxu0 %v13401_v53 }
 0xb4b   : >> { %6252 = vmatprep.subr.bf16.mxu0 %v13406_v33 }
 0xb4e   : >> { %6253 = vmatpush1.bf16.msra.mxu0 %v13404_v21 }
 0xb4f   : >> { %6382 = vmatprep.subr.bf16.mxu0 %v13409_v60 }
 0xb51   : >> { %6271 = vmatmul.mubr.bf16.vlgmr.msra.gmra.mrb[8].mxu0 %v15029_v61  ;;  %v13418_v61 = vld [vmem:[%s16464_s7 + $0x7b4] ss:$8 sps:$4 sm:$0xff]  }
 0xb52   : >> { %6383 = vmatpush1.bf16.msra.mxu0 %v13407_v4  ;;  %6414 = vmatprep.mubr.bf16.mxu0 %v13746_v39  ;;  %v13416_v39 = vld [vmem:[%s16464_s7 + $0x7b0] ss:$8 sps:$4 sm:$0xff]  }
 0xb53   : >> { %6384 = vmatprep.subr.bf16.mxu0 %v13412_v59 }
 0xb56   : >> { %6385 = vmatpush1.bf16.msra.mxu0 %v13410_v62 }
 0xb57   : >> { %6386 = vmatprep.subr.bf16.mxu0 %v13415_v63 }
 0xb5a   : >> { %6387 = vmatpush1.bf16.msra.mxu0 %v13413_v2 }
 0xb5b   : >> { %6388 = vmatprep.subr.bf16.mxu0 %v13418_v61 }
 0xb5e   : >> { %6389 = vmatpush1.bf16.msra.mxu0 %v13416_v39 }
 0xb5f   : >> { %6390 = vmatprep.subr.bf16.mxu0 %v13421_v5 }
 0xb62   : >> { %6391 = vmatpush1.bf16.msra.mxu0 %v13419_v6 }
 0xb63   : >> { %6392 = vmatprep.subr.bf16.mxu0 %v13424_v8 }
 0xb66   : >> { %6393 = vmatpush1.bf16.msra.mxu0 %v13422_v0 }
 0xb67   : >> { %6394 = vmatprep.subr.bf16.mxu0 %v13427_v9 }
 0xb6a   : >> { %6395 = vmatpush1.bf16.msra.mxu0 %v13425_v10 }
 0xb6b   : >> { %6396 = vmatprep.subr.bf16.mxu0 %v13430_v12 }
 0xb6e   : >> { %6397 = vmatpush1.bf16.msra.mxu0 %v13428_v34 }
 0xb71   : >> { %6415 = vmatmul.mubr.bf16.vlgmr.msra.gmra.mrb[8].mxu0 %v15126_v45  ;;  %v6514_v45 = vlaneseq }
 0xb72   : >> { %6504 = vmatprep.mubr.f32.mxu0 %v13747_v47 }
 0xb73   : >> { %v6515_v47 = vshrl.u32 %v6514_v45, 7 }
 0xb75   : >> { %v6516_v25 = vsub.s32 0, %v6515_v47  ;;  %v6520_v26 = vsub.s32 1, %v6515_v47 }
 0xb77   : >> { %v6517_v27 = vrot.slane %v14708_v35, %v6516_v25  ;;  %v6521_v32 = vrot.slane %v14708_v35, %v6520_v26 }
 0xc44   : >> { %v6416_v14 = vpop.f32.mrb[8].mxu0 }
 0xc45   : >> { %v6418_v16 = vpop.f32.mrb[9].mxu0 }
 0xc46   : >> { %v6420_v18 = vpop.f32.mrb[10].mxu0 }
 0xc47   : >> { %v12653_v3 = vpack.c.bf16 %v6420_v18, %v6416_v14  ;;  %v6422_v19 = vpop.f32.mrb[11].mxu0 }
 0xc48   : >> { %v12650_v20 = vpack.c.bf16 %v6422_v19, %v6418_v16 }
 0xc4a   : >> { %12652 = vmatprep.subr.msk.bf16.mxu0 %vm15133_vm8, %v12650_v20 }
 0xc4b   : >> { %12655 = vmatpush1.bf16.msk.msra.mxu0 %vm15133_vm8, %v12653_v3 }
 0xc4e   : >> { %10716 = vmatmul.mubr.msk.f32.vlgmr.msra.gmra.mrb[4].mxu0 %vm5047_vm9, %v10713_v23 }
 0xd21   : >> { %v6506_v31 = vpop.f32.mrb[4].mxu0 }
 0xd22   : >> { %v12851_v36 = vadd.f32 %v6506_v31, %v15354_v58  ;;  %v6508_v7 = vpop.f32.mrb[5].mxu0 }
 0xd23   : >> { %v12852_v37 = vadd.f32 %v6508_v7, %v15356_v15  ;;  %v10719_v15 = vld [vmem:[%s9736_s26 + $0x8] sm:$0x77] }
 0xd24   : >> { %v6524_v38 = vadd.f32 %v12851_v36, %v6517_v27 }
 0xd25   : >> { %v6525_v41 = vadd.f32 %v12852_v37, %v6521_v32 }
 0xd26   : >> { %vm6526_vm10 = vcmp.ge.f32.partialorder %v6524_v38, 0.0  ;;  %v6528_v40 = vmul.f32 0.2, %v6524_v38 }
 0xd27   : >> { %vm6527_vm11 = vcmp.ge.f32.partialorder %v6525_v41, 0.0  ;;  %v6529_v1 = vmul.f32 0.2, %v6525_v41 }
 0xd28   : >> { %v6530_v42 = vsel %vm6526_vm10, %v6524_v38, %v6528_v40 }
 0xd29   : >> { %v6531_v43 = vsel %vm6527_vm11, %v6525_v41, %v6529_v1 }
 0xd2a   : >> { %v11498_v44 = vpack.c.bf16 %v6531_v43, %v6530_v42 }
 0xd2c   : >> { %v6541_v48 = vshrl.u32 %v11498_v44, 16  ;;  %v6544_v50 = vshll.u32 %v11498_v44, 16 }
 0xd2d   : > { %3859 = sbr.rel (!%p3857_p6) target bundleno = 2093 (0x82d), region = 244 }
 0xd2e   : >> { %v6543_v58 = vrot.slane %v6541_v48, 7 }
 0xd30   : >> { %v6546_v51 = vor.u32 %v6544_v50, %v6543_v58 }
 0xd32   : >> { %v6559_v52 = vsel %vm6557_vm4, %v6546_v51, %v10719_v15 }
 0xd33   : >> { %10720 = vst [vmem:[%s9736_s26 + $0x8] sm:$0x77] %v6559_v52 }
 0xd34 LB: >> { %v13433_v55 = vld [vmem:[%s16467_s10 + $0x240] sm:$0xff]   ;;  %v13437_v57 = vld [vmem:[%s16467_s10 + $0x248] sm:$0xff]   ;;  %v13441_v24 = vld [vmem:[%s16467_s10 + $0x250] sm:$0xff]   ;;  %s11499_s24 = sshll.u32 %s13737_s28, 3  ;;  %vm13750_vm3 = vmmov 0   ;;  %vm7977_vm5 = vcmask 1045504   ;;  %s13737_s28 = sphi %s15585_s28, %s6567_s28  }
 0xd35   : >> { %v13434_v56 = vld [vmem:[%s16467_s10 + $0x40] sm:$0xff]   ;;  %11704 = vmatprep.subr.bf16.mxu0 %v13433_v55  ;;  %v13438_v13 = vld [vmem:[%s16467_s10 + $0x48] sm:$0xff]   ;;  %v13442_v28 = vld [vmem:[%s16467_s10 + $0x50] sm:$0xff]   ;;  %s15687_s15 = scalar_lea.vmem [#allocation4], %s11499_s24  ;;  %vm7973_vm6 = vcmask 48128   ;;  %s11485_s30 = sshll.u32 %s13737_s28, 2 }
 0xd36   : >> { %v13435_v35 = vld [vmem:[%s16467_s10 + $0x200] sm:$0xff]   ;;  %11726 = vmatprep.subr.bf16.mxu1 %v13434_v56  ;;  %v13439_v17 = vld [vmem:[%s16467_s10 + $0x208] sm:$0xff]   ;;  %v13443_v46 = vld [vmem:[%s16467_s10 + $0x210] sm:$0xff]   ;;  %s9653_s14 = scalar_lea.vmem %s13989_s21, %s11485_s30  ;;  %vm9654_vm7 = vcmask 2048   ;;  %s6567_s28 = sadd.s32 1, %s13737_s28  }
 0xd37   : >> { %v13436_v11 = vld [vmem:[%s16467_s10] sm:$0xff]   ;;  %11705 = vmatpush3.bf16.msra.mxu0 %v13435_v35  ;;  %v13440_v22 = vld [vmem:[%s16467_s10 + $0x8] sm:$0xff]   ;;  %v13444_v29 = vld [vmem:[%s16467_s10 + $0x10] sm:$0xff]   ;;  %p6564_p7 = scmp.ge.s32.totalorder %s6567_s28, 3  }
 0xd38   : >> { %11727 = vmatpush3.bf16.msra.mxu1 %v13436_v11  ;;  %11706 = vmatprep.subr.bf16.mxu0 %v13437_v57  ;;  %v13445_v30 = vld [vmem:[%s16467_s10 + $0x258] sm:$0xff]   ;;  %v13449_v21 = vld [vmem:[%s16467_s10 + $0x260] sm:$0xff]   ;;  %v13453_v62 = vld [vmem:[%s16467_s10 + $0x268] sm:$0xff]  }
 0xd39   : >> { %11728 = vmatprep.subr.bf16.mxu1 %v13438_v13  ;;  %v13446_v49 = vld [vmem:[%s16467_s10 + $0x58] sm:$0xff]   ;;  %v13450_v60 = vld [vmem:[%s16467_s10 + $0x60] sm:$0xff]   ;;  %v13454_v63 = vld [vmem:[%s16467_s10 + $0x68] sm:$0xff]  }
 0xd3a   : >> { %v13447_v53 = vld [vmem:[%s16467_s10 + $0x218] sm:$0xff]   ;;  %v13451_v4 = vld [vmem:[%s16467_s10 + $0x220] sm:$0xff]   ;;  %v13455_v2 = vld [vmem:[%s16467_s10 + $0x228] sm:$0xff]  }
 0xd3b   : >> { %11707 = vmatpush3.bf16.msra.mxu0 %v13439_v17  ;;  %v13448_v33 = vld [vmem:[%s16467_s10 + $0x18] sm:$0xff]   ;;  %v13452_v59 = vld [vmem:[%s16467_s10 + $0x20] sm:$0xff]   ;;  %v13456_v61 = vld [vmem:[%s16467_s10 + $0x28] sm:$0xff]  }
 0xd3c   : >> { %11729 = vmatpush3.bf16.msra.mxu1 %v13440_v22  ;;  %11708 = vmatprep.subr.bf16.mxu0 %v13441_v24  ;;  %v13457_v39 = vld [vmem:[%s16467_s10 + $0x270] sm:$0xff]   ;;  %v13461_v0 = vld [vmem:[%s16467_s10 + $0x278] sm:$0xff]   ;;  %v10724_v34 = vld [vmem:[%s15687_s15 + $0x8] sm:$0x77] }
 0xd3d   : >> { %11730 = vmatprep.subr.bf16.mxu1 %v13442_v28  ;;  %v13458_v5 = vld [vmem:[%s16467_s10 + $0x70] sm:$0xff]   ;;  %v13462_v9 = vld [vmem:[%s16467_s10 + $0x78] sm:$0xff]   ;;  %v6571_v14 = vld [vmem:[%s15687_s15] sm:$0x77]  ;;  %v15691_v16 = vcombine.high %v10724_v34, %v10724_v34  ;;  %v15695_v3 = vcombine.low %v10724_v34, %v10724_v34 }
 0xd3e   : >> { %v13459_v6 = vld [vmem:[%s16467_s10 + $0x230] sm:$0xff]   ;;  %v13463_v10 = vld [vmem:[%s16467_s10 + $0x238] sm:$0xff]   ;;  %v15693_v18 = vcombine.high %v6571_v14, %v6571_v14  ;;  %v15697_v19 = vcombine.low %v6571_v14, %v6571_v14  ;;  %v13469_v20 = vld [vmem:[%s16467_s10 + $0x440] sm:$0xff]  }
 0xd3f   : >> { %11709 = vmatpush3.bf16.msra.mxu0 %v13443_v46  ;;  %v13460_v8 = vld [vmem:[%s16467_s10 + $0x30] sm:$0xff]   ;;  %v13464_v12 = vld [vmem:[%s16467_s10 + $0x38] sm:$0xff]   ;;  %v13470_v23 = vld [vmem:[%s16467_s10 + $0x640] sm:$0xff]   ;;  %6787 = vmatprep.mubr.bf16.mxu0 %v15691_v16 }
 0xd40   : >> { %11731 = vmatpush3.bf16.msra.mxu1 %v13444_v29  ;;  %11710 = vmatprep.subr.bf16.mxu0 %v13445_v30  ;;  %v13471_v45 = vld [vmem:[%s16467_s10 + $0x400] sm:$0xff]   ;;  %v13473_v25 = vld [vmem:[%s16467_s10 + $0x448] sm:$0xff]   ;;  %v13477_v32 = vld [vmem:[%s16467_s10 + $0x450] sm:$0xff]  }
 0xd41   : >> { %11732 = vmatprep.subr.bf16.mxu1 %v13446_v49  ;;  %6930 = vmatprep.mubr.bf16.mxu1 %v15693_v18  ;;  %v13472_v47 = vld [vmem:[%s16467_s10 + $0x600] sm:$0xff]   ;;  %v13474_v26 = vld [vmem:[%s16467_s10 + $0x648] sm:$0xff]   ;;  %v13478_v36 = vld [vmem:[%s16467_s10 + $0x650] sm:$0xff]  }
 0xd42   : >> { %v13475_v27 = vld [vmem:[%s16467_s10 + $0x408] sm:$0xff]   ;;  %v13479_v7 = vld [vmem:[%s16467_s10 + $0x410] sm:$0xff]   ;;  %v13481_v38 = vld [vmem:[%s16467_s10 + $0x458] sm:$0xff]  }
 0xd43   : >> { %11711 = vmatpush3.bf16.msra.mxu0 %v13447_v53  ;;  %v13476_v31 = vld [vmem:[%s16467_s10 + $0x608] sm:$0xff]   ;;  %v13480_v37 = vld [vmem:[%s16467_s10 + $0x610] sm:$0xff]   ;;  %v13482_v41 = vld [vmem:[%s16467_s10 + $0x658] sm:$0xff]  }
 0xd44   : >> { %11733 = vmatpush3.bf16.msra.mxu1 %v13448_v33  ;;  %11712 = vmatprep.subr.bf16.mxu0 %v13449_v21  ;;  %v13483_v40 = vld [vmem:[%s16467_s10 + $0x418] sm:$0xff]   ;;  %v13485_v42 = vld [vmem:[%s16467_s10 + $0x460] sm:$0xff]   ;;  %v13489_v58 = vld [vmem:[%s16467_s10 + $0x468] sm:$0xff]  }
 0xd45   : >> { %11734 = vmatprep.subr.bf16.mxu1 %v13450_v60  ;;  %v13484_v1 = vld [vmem:[%s16467_s10 + $0x618] sm:$0xff]   ;;  %v13486_v43 = vld [vmem:[%s16467_s10 + $0x660] sm:$0xff]   ;;  %v13490_v50 = vld [vmem:[%s16467_s10 + $0x668] sm:$0xff]  }
 0xd46   : >> { %v13487_v44 = vld [vmem:[%s16467_s10 + $0x420] sm:$0xff]   ;;  %v13491_v15 = vld [vmem:[%s16467_s10 + $0x428] sm:$0xff]   ;;  %v13493_v52 = vld [vmem:[%s16467_s10 + $0x470] sm:$0xff]  }
 0xd47   : >> { %11713 = vmatpush3.bf16.msra.mxu0 %v13451_v4  ;;  %v13488_v48 = vld [vmem:[%s16467_s10 + $0x620] sm:$0xff]   ;;  %v13492_v51 = vld [vmem:[%s16467_s10 + $0x628] sm:$0xff]   ;;  %v13494_v55 = vld [vmem:[%s16467_s10 + $0x670] sm:$0xff]  }
 0xd48   : >> { %11735 = vmatpush3.bf16.msra.mxu1 %v13452_v59  ;;  %11714 = vmatprep.subr.bf16.mxu0 %v13453_v62  ;;  %v13495_v56 = vld [vmem:[%s16467_s10 + $0x430] sm:$0xff]   ;;  %v13497_v11 = vld [vmem:[%s16467_s10 + $0x478] sm:$0xff]   ;;  %v13505_v49 = vld [vmem:[%s16467_s10 + $0x2c0] sm:$0xff]  }
 0xd49   : >> { %11736 = vmatprep.subr.bf16.mxu1 %v13454_v63  ;;  %v13496_v35 = vld [vmem:[%s16467_s10 + $0x630] sm:$0xff]   ;;  %v13498_v57 = vld [vmem:[%s16467_s10 + $0x678] sm:$0xff]   ;;  %v13506_v53 = vld [vmem:[%s16467_s10 + $0xc0] sm:$0xff]  }
 0xd4a   : >> { %v13499_v13 = vld [vmem:[%s16467_s10 + $0x438] sm:$0xff]   ;;  %v10726_v22 = vld [vmem:[%s15687_s15 + $0x10] sm:$0x77]  ;;  %v13507_v33 = vld [vmem:[%s16467_s10 + $0x280] sm:$0xff]  }
 0xd4b   : >> { %11715 = vmatpush3.bf16.msra.mxu0 %v13455_v2  ;;  %v13500_v17 = vld [vmem:[%s16467_s10 + $0x638] sm:$0xff]   ;;  %v15800_v24 = vcombine.high %v10726_v22, %v10726_v22  ;;  %v15803_v46 = vcombine.low %v10726_v22, %v10726_v22  ;;  %v13508_v21 = vld [vmem:[%s16467_s10 + $0x80] sm:$0xff]   ;;  %v13509_v60 = vld [vmem:[%s16467_s10 + $0x2c8] sm:$0xff]  }
 0xd4c   : >> { %11737 = vmatpush3.bf16.msra.mxu1 %v13456_v61  ;;  %11716 = vmatprep.subr.bf16.mxu0 %v13457_v39  ;;  %v10728_v28 = vld [vmem:[%s15687_s15 + $0x18] sm:$0x77]  ;;  %v13510_v4 = vld [vmem:[%s16467_s10 + $0xc8] sm:$0xff]   ;;  %v13513_v63 = vld [vmem:[%s16467_s10 + $0x2d0] sm:$0xff]  }
 0xd4d   : >> { %11738 = vmatprep.subr.bf16.mxu1 %v13458_v5  ;;  %v15805_v29 = vcombine.high %v10728_v28, %v10728_v28  ;;  %v15807_v30 = vcombine.low %v10728_v28, %v10728_v28  ;;  %v13511_v59 = vld [vmem:[%s16467_s10 + $0x288] sm:$0xff]   ;;  %v13514_v2 = vld [vmem:[%s16467_s10 + $0xd0] sm:$0xff]   ;;  %v13517_v5 = vld [vmem:[%s16467_s10 + $0x2d8] sm:$0xff]  }
 0xd4e   : >> { %v13512_v62 = vld [vmem:[%s16467_s10 + $0x88] sm:$0xff]   ;;  %v13515_v61 = vld [vmem:[%s16467_s10 + $0x290] sm:$0xff]   ;;  %v13524_v34 = vld [vmem:[%s16467_s10 + $0xa0] sm:$0xff]  }
 0xd4f   : >> { %11717 = vmatpush3.bf16.msra.mxu0 %v13459_v6  ;;  %v13516_v39 = vld [vmem:[%s16467_s10 + $0x90] sm:$0xff]   ;;  %v13518_v6 = vld [vmem:[%s16467_s10 + $0xd8] sm:$0xff]   ;;  %v13525_v14 = vld [vmem:[%s16467_s10 + $0x2e8] sm:$0xff]  }
 0xd50   : >> { %11739 = vmatpush3.bf16.msra.mxu1 %v13460_v8  ;;  %11718 = vmatprep.subr.bf16.mxu0 %v13461_v0  ;;  %v13519_v8 = vld [vmem:[%s16467_s10 + $0x298] sm:$0xff]   ;;  %v13558_v22 = vld [vmem:[%s16467_s10 + $0x6e8] sm:$0xff]  }
 0xd51   : >> { %11740 = vmatprep.subr.bf16.mxu1 %v13462_v9  ;;  %v13520_v0 = vld [vmem:[%s16467_s10 + $0x98] sm:$0xff]   ;;  %v13521_v9 = vld [vmem:[%s16467_s10 + $0x2e0] sm:$0xff]   ;;  %v13559_v28 = vld [vmem:[%s16467_s10 + $0x4a8] sm:$0xff]  }
 0xd53   : >> { %11719 = vmatpush3.bf16.msra.mxu0 %v13463_v10  ;;  %v13522_v10 = vld [vmem:[%s16467_s10 + $0xe0] sm:$0xff]  }
 0xd54   : >> { %11741 = vmatpush3.bf16.msra.mxu1 %v13464_v12  ;;  %11748 = vmatprep.subr.bf16.mxu0 %v13469_v20  ;;  %v13523_v12 = vld [vmem:[%s16467_s10 + $0x2a0] sm:$0xff]   ;;  %v13526_v20 = vld [vmem:[%s16467_s10 + $0xe8] sm:$0xff]  }
 0xd55   : >> { %11770 = vmatprep.subr.bf16.mxu1 %v13470_v23  ;;  %v13527_v23 = vld [vmem:[%s16467_s10 + $0x2a8] sm:$0xff]  }
 0xd56   : >> { %6788 = vmatmul.mubr.bf16.vlgmr.msra.gmra.mrb[0].mxu0 %v15695_v3 }
 0xd57   : >> { %6931 = vmatmul.mubr.bf16.vlgmr.msra.gmra.mrb[0].mxu1 %v15697_v19  ;;  %11749 = vmatpush3.bf16.msra.mxu0 %v13471_v45  ;;  %v13528_v45 = vld [vmem:[%s16467_s10 + $0xa8] sm:$0xff]  }
 0xd58   : >> { %11771 = vmatpush3.bf16.msra.mxu1 %v13472_v47  ;;  %11750 = vmatprep.subr.bf16.mxu0 %v13473_v25  ;;  %v13529_v47 = vld [vmem:[%s16467_s10 + $0x2f0] sm:$0xff]  }
 0xd59   : >> { %11772 = vmatprep.subr.bf16.mxu1 %v13474_v26  ;;  %7106 = vmatprep.mubr.bf16.mxu0 %v15800_v24  ;;  %v13530_v25 = vld [vmem:[%s16467_s10 + $0xf0] sm:$0xff]  }
 0xd5a   : >> { %7283 = vmatprep.mubr.bf16.mxu1 %v15805_v29  ;;  %v13531_v26 = vld [vmem:[%s16467_s10 + $0x2b0] sm:$0xff]  }
 0xd5b   : >> { %11751 = vmatpush3.bf16.msra.mxu0 %v13475_v27  ;;  %v13532_v27 = vld [vmem:[%s16467_s10 + $0xb0] sm:$0xff]  }
 0xd5c   : >> { %11773 = vmatpush3.bf16.msra.mxu1 %v13476_v31  ;;  %11752 = vmatprep.subr.bf16.mxu0 %v13477_v32  ;;  %v13533_v31 = vld [vmem:[%s16467_s10 + $0x2f8] sm:$0xff]  }
 0xd5d   : >> { %11774 = vmatprep.subr.bf16.mxu1 %v13478_v36  ;;  %v13534_v32 = vld [vmem:[%s16467_s10 + $0xf8] sm:$0xff]  }
 0xd5e   : >> { %v13535_v36 = vld [vmem:[%s16467_s10 + $0x2b8] sm:$0xff]  }
 0xd5f   : >> { %11753 = vmatpush3.bf16.msra.mxu0 %v13479_v7  ;;  %v13536_v7 = vld [vmem:[%s16467_s10 + $0xb8] sm:$0xff]  }
 0xd60   : >> { %11775 = vmatpush3.bf16.msra.mxu1 %v13480_v37  ;;  %11754 = vmatprep.subr.bf16.mxu0 %v13481_v38  ;;  %v13537_v37 = vld [vmem:[%s16467_s10 + $0x4c0] sm:$0xff]  }
 0xd61   : >> { %11776 = vmatprep.subr.bf16.mxu1 %v13482_v41  ;;  %v13538_v38 = vld [vmem:[%s16467_s10 + $0x6c0] sm:$0xff]  }
 0xd62   : >> { %v13539_v41 = vld [vmem:[%s16467_s10 + $0x480] sm:$0xff]  }
 0xd63   : >> { %11755 = vmatpush3.bf16.msra.mxu0 %v13483_v40  ;;  %v13540_v40 = vld [vmem:[%s16467_s10 + $0x680] sm:$0xff]  }
 0xd64   : >> { %11777 = vmatpush3.bf16.msra.mxu1 %v13484_v1  ;;  %11756 = vmatprep.subr.bf16.mxu0 %v13485_v42  ;;  %v13541_v1 = vld [vmem:[%s16467_s10 + $0x4c8] sm:$0xff]  }
 0xd65   : >> { %11778 = vmatprep.subr.bf16.mxu1 %v13486_v43  ;;  %v13542_v42 = vld [vmem:[%s16467_s10 + $0x6c8] sm:$0xff]  }
 0xd66   : >> { %v13543_v43 = vld [vmem:[%s16467_s10 + $0x488] sm:$0xff]  }
 0xd67   : >> { %11757 = vmatpush3.bf16.msra.mxu0 %v13487_v44  ;;  %v13544_v44 = vld [vmem:[%s16467_s10 + $0x688] sm:$0xff]  }
 0xd68   : >> { %11779 = vmatpush3.bf16.msra.mxu1 %v13488_v48  ;;  %11758 = vmatprep.subr.bf16.mxu0 %v13489_v58  ;;  %v13545_v48 = vld [vmem:[%s16467_s10 + $0x4d0] sm:$0xff]  }
 0xd69   : >> { %11780 = vmatprep.subr.bf16.mxu1 %v13490_v50  ;;  %v13546_v58 = vld [vmem:[%s16467_s10 + $0x6d0] sm:$0xff]  }
 0xd6a   : >> { %v13547_v50 = vld [vmem:[%s16467_s10 + $0x490] sm:$0xff]  }
 0xd6b   : >> { %11759 = vmatpush3.bf16.msra.mxu0 %v13491_v15  ;;  %v13548_v15 = vld [vmem:[%s16467_s10 + $0x690] sm:$0xff]  }
 0xd6c   : >> { %11781 = vmatpush3.bf16.msra.mxu1 %v13492_v51  ;;  %11760 = vmatprep.subr.bf16.mxu0 %v13493_v52  ;;  %v13549_v51 = vld [vmem:[%s16467_s10 + $0x4d8] sm:$0xff]  }
 0xd6d   : >> { %11782 = vmatprep.subr.bf16.mxu1 %v13494_v55  ;;  %v13550_v52 = vld [vmem:[%s16467_s10 + $0x6d8] sm:$0xff]  }
 0xd6e   : >> { %v13551_v55 = vld [vmem:[%s16467_s10 + $0x498] sm:$0xff]  }
 0xd6f   : >> { %11761 = vmatpush3.bf16.msra.mxu0 %v13495_v56  ;;  %v13552_v56 = vld [vmem:[%s16467_s10 + $0x698] sm:$0xff]  }
 0xd70   : >> { %11783 = vmatpush3.bf16.msra.mxu1 %v13496_v35  ;;  %11762 = vmatprep.subr.bf16.mxu0 %v13497_v11  ;;  %v13553_v35 = vld [vmem:[%s16467_s10 + $0x4e0] sm:$0xff]  }
 0xd71   : >> { %11784 = vmatprep.subr.bf16.mxu1 %v13498_v57  ;;  %v13554_v11 = vld [vmem:[%s16467_s10 + $0x6e0] sm:$0xff]  }
 0xd72   : >> { %v13555_v57 = vld [vmem:[%s16467_s10 + $0x4a0] sm:$0xff]  }
 0xd73   : >> { %11763 = vmatpush3.bf16.msra.mxu0 %v13499_v13  ;;  %v13556_v13 = vld [vmem:[%s16467_s10 + $0x6a0] sm:$0xff]  }
 0xd74   : >> { %11785 = vmatpush3.bf16.msra.mxu1 %v13500_v17  ;;  %11792 = vmatprep.subr.bf16.mxu0 %v13505_v49  ;;  %v13557_v17 = vld [vmem:[%s16467_s10 + $0x4e8] sm:$0xff]  }
 0xd75   : >> { %11814 = vmatprep.subr.bf16.mxu1 %v13506_v53  ;;  %v13560_v49 = vld [vmem:[%s16467_s10 + $0x6a8] sm:$0xff]   ;;  %v13561_v53 = vld [vmem:[%s16467_s10 + $0x4f0] sm:$0xff]  }
 0xd76   : >> { %7107 = vmatmul.mubr.bf16.vlgmr.msra.gmra.mrb[4].mxu0 %v15803_v46 }
 0xd77   : >> { %7284 = vmatmul.mubr.bf16.vlgmr.msra.gmra.mrb[4].mxu1 %v15807_v30  ;;  %11793 = vmatpush3.bf16.msra.mxu0 %v13507_v33  ;;  %v13562_v33 = vld [vmem:[%s16467_s10 + $0x6f0] sm:$0xff]  }
 0xd78   : >> { %11815 = vmatpush3.bf16.msra.mxu1 %v13508_v21  ;;  %7487 = vmatprep.mubr.bf16.mxu0 %v15691_v16  ;;  %v13563_v21 = vld [vmem:[%s16467_s10 + $0x4b0] sm:$0xff]  }
 0xd79   : >> { %11794 = vmatprep.subr.bf16.mxu0 %v13509_v60  ;;  %7623 = vmatprep.mubr.bf16.mxu1 %v15693_v18  ;;  %v13564_v60 = vld [vmem:[%s16467_s10 + $0x6b0] sm:$0xff]  }
 0xd7a   : >> { %11816 = vmatprep.subr.bf16.mxu1 %v13510_v4  ;;  %v13565_v4 = vld [vmem:[%s16467_s10 + $0x4f8] sm:$0xff]  }
 0xd7b   : >> { %11795 = vmatpush3.bf16.msra.mxu0 %v13511_v59  ;;  %v13566_v59 = vld [vmem:[%s16467_s10 + $0x6f8] sm:$0xff]  }
 0xd7c   : >> { %11817 = vmatpush3.bf16.msra.mxu1 %v13512_v62  ;;  %11796 = vmatprep.subr.bf16.mxu0 %v13513_v63  ;;  %v13567_v62 = vld [vmem:[%s16467_s10 + $0x4b8] sm:$0xff]  }
 0xd7d   : >> { %11818 = vmatprep.subr.bf16.mxu1 %v13514_v2  ;;  %v13568_v63 = vld [vmem:[%s16467_s10 + $0x6b8] sm:$0xff]   ;;  %v13749_v2 = vmov 0.0  }
 0xd7f   : >> { %11797 = vmatpush3.bf16.msra.mxu0 %v13515_v61 }
 0xd80   : >> { %11819 = vmatpush3.bf16.msra.mxu1 %v13516_v39  ;;  %11798 = vmatprep.subr.bf16.mxu0 %v13517_v5 }
 0xd81   : >> { %11820 = vmatprep.subr.bf16.mxu1 %v13518_v6 }
 0xd83   : >> { %11799 = vmatpush3.bf16.msra.mxu0 %v13519_v8 }
 0xd84   : >> { %11821 = vmatpush3.bf16.msra.mxu1 %v13520_v0  ;;  %11800 = vmatprep.subr.bf16.mxu0 %v13521_v9 }
 0xd85   : >> { %11822 = vmatprep.subr.bf16.mxu1 %v13522_v10 }
 0xd87   : >> { %11801 = vmatpush3.bf16.msra.mxu0 %v13523_v12 }
 0xd88   : >> { %11823 = vmatpush3.bf16.msra.mxu1 %v13524_v34  ;;  %11802 = vmatprep.subr.bf16.mxu0 %v13525_v14 }
 0xd89   : >> { %11824 = vmatprep.subr.bf16.mxu1 %v13526_v20 }
 0xd8b   : >> { %11803 = vmatpush3.bf16.msra.mxu0 %v13527_v23 }
 0xd8c   : >> { %11825 = vmatpush3.bf16.msra.mxu1 %v13528_v45  ;;  %11804 = vmatprep.subr.bf16.mxu0 %v13529_v47 }
 0xd8d   : >> { %11826 = vmatprep.subr.bf16.mxu1 %v13530_v25 }
 0xd8f   : >> { %11805 = vmatpush3.bf16.msra.mxu0 %v13531_v26 }
 0xd90   : >> { %11827 = vmatpush3.bf16.msra.mxu1 %v13532_v27  ;;  %11806 = vmatprep.subr.bf16.mxu0 %v13533_v31 }
 0xd91   : >> { %11828 = vmatprep.subr.bf16.mxu1 %v13534_v32 }
 0xd93   : >> { %11807 = vmatpush3.bf16.msra.mxu0 %v13535_v36 }
 0xd94   : >> { %11829 = vmatpush3.bf16.msra.mxu1 %v13536_v7  ;;  %11836 = vmatprep.subr.bf16.mxu0 %v13537_v37  ;;  %v13569_v37 = vld [vmem:[%s16467_s10 + $0x140] sm:$0xff]  }
 0xd95   : >> { %11858 = vmatprep.subr.bf16.mxu1 %v13538_v38 }
 0xd96   : >> { %7488 = vmatmul.mubr.bf16.vlgmr.msra.gmra.mrb[8].mxu0 %v15695_v3 }
 0xd97   : >> { %7624 = vmatmul.mubr.bf16.vlgmr.msra.gmra.mrb[8].mxu1 %v15697_v19  ;;  %11837 = vmatpush3.bf16.msra.mxu0 %v13539_v41  ;;  %v7292_v41 = vld [vmem:[%s16469_s12] sm:$0x7] }
 0xd98   : >> { %11859 = vmatpush3.bf16.msra.mxu1 %v13540_v40  ;;  %7792 = vmatprep.mubr.bf16.mxu0 %v15800_v24  ;;  %v13571_v40 = vld [vmem:[%s16467_s10 + $0x100] sm:$0xff]  }
 0xd99   : >> { %11838 = vmatprep.subr.bf16.mxu0 %v13541_v1  ;;  %7962 = vmatprep.mubr.bf16.mxu1 %v15805_v29  ;;  %v13573_v1 = vld [vmem:[%s16467_s10 + $0x148] sm:$0xff]  }
 0xd9a   : >> { %11860 = vmatprep.subr.bf16.mxu1 %v13542_v42  ;;  %v13575_v42 = vld [vmem:[%s16467_s10 + $0x108] sm:$0xff]  }
 0xd9b   : >> { %11839 = vmatpush3.bf16.msra.mxu0 %v13543_v43  ;;  %v13577_v43 = vld [vmem:[%s16467_s10 + $0x150] sm:$0xff]  }
 0xd9c   : >> { %11861 = vmatpush3.bf16.msra.mxu1 %v13544_v44  ;;  %11840 = vmatprep.subr.bf16.mxu0 %v13545_v48  ;;  %v13579_v44 = vld [vmem:[%s16467_s10 + $0x110] sm:$0xff]   ;;  %v13581_v48 = vld [vmem:[%s16467_s10 + $0x158] sm:$0xff]  }
 0xd9d   : >> { %11862 = vmatprep.subr.bf16.mxu1 %v13546_v58  ;;  %v13583_v58 = vld [vmem:[%s16467_s10 + $0x118] sm:$0xff]  }
 0xd9f   : >> { %11841 = vmatpush3.bf16.msra.mxu0 %v13547_v50  ;;  %v13585_v50 = vld [vmem:[%s16467_s10 + $0x160] sm:$0xff]  }
 0xda0   : >> { %11863 = vmatpush3.bf16.msra.mxu1 %v13548_v15  ;;  %11842 = vmatprep.subr.bf16.mxu0 %v13549_v51  ;;  %v13587_v15 = vld [vmem:[%s16467_s10 + $0x120] sm:$0xff]   ;;  %v13589_v51 = vld [vmem:[%s16467_s10 + $0x168] sm:$0xff]  }
 0xda1   : >> { %11864 = vmatprep.subr.bf16.mxu1 %v13550_v52  ;;  %v13591_v52 = vld [vmem:[%s16467_s10 + $0x128] sm:$0xff]  }
 0xda3   : >> { %11843 = vmatpush3.bf16.msra.mxu0 %v13551_v55  ;;  %v13593_v55 = vld [vmem:[%s16467_s10 + $0x170] sm:$0xff]  }
 0xda4   : >> { %11865 = vmatpush3.bf16.msra.mxu1 %v13552_v56  ;;  %11844 = vmatprep.subr.bf16.mxu0 %v13553_v35  ;;  %v13595_v56 = vld [vmem:[%s16467_s10 + $0x130] sm:$0xff]   ;;  %v13597_v35 = vld [vmem:[%s16467_s10 + $0x178] sm:$0xff]  }
 0xda5   : >> { %11866 = vmatprep.subr.bf16.mxu1 %v13554_v11 }
 0xda7   : >> { %11845 = vmatpush3.bf16.msra.mxu0 %v13555_v57 }
 0xda8   : >> { %11867 = vmatpush3.bf16.msra.mxu1 %v13556_v13  ;;  %11846 = vmatprep.subr.bf16.mxu0 %v13557_v17 }
 0xda9   : >> { %11868 = vmatprep.subr.bf16.mxu1 %v13558_v22 }
 0xdab   : >> { %11847 = vmatpush3.bf16.msra.mxu0 %v13559_v28 }
 0xdac   : >> { %11869 = vmatpush3.bf16.msra.mxu1 %v13560_v49  ;;  %11848 = vmatprep.subr.bf16.mxu0 %v13561_v53  ;;  %v13599_v49 = vld [vmem:[%s16467_s10 + $0x138] sm:$0xff]  }
 0xdad   : >> { %11870 = vmatprep.subr.bf16.mxu1 %v13562_v33 }
 0xdaf   : >> { %11849 = vmatpush3.bf16.msra.mxu0 %v13563_v21 }
 0xdb0   : >> { %11871 = vmatpush3.bf16.msra.mxu1 %v13564_v60  ;;  %11850 = vmatprep.subr.bf16.mxu0 %v13565_v4  ;;  %v13601_v60 = vld [vmem:[%s16467_s10 + $0x740] sm:$0xff]  }
 0xdb1   : >> { %11872 = vmatprep.subr.bf16.mxu1 %v13566_v59 }
 0xdb3   : >> { %11851 = vmatpush3.bf16.msra.mxu0 %v13567_v62  ;;  %v13603_v62 = vld [vmem:[%s16467_s10 + $0x700] sm:$0xff]  }
 0xdb4   : >> { %11873 = vmatpush3.bf16.msra.mxu1 %v13568_v63  ;;  %12568 = vmatprep.subr.mxu0 %v13749_v2  ;;  %v13605_v63 = vld [vmem:[%s16467_s10 + $0x748] sm:$0xff]  }
 0xdb5   : >> { %12573 = vmatprep.subr.mxu1 %v13749_v2 }
 0xdb6   : >> { %7793 = vmatmul.mubr.bf16.vlgmr.msra.gmra.mrb[12].mxu0 %v15803_v46 }
 0xdb7   : >> { %7963 = vmatmul.mubr.bf16.vlgmr.msra.gmra.mrb[12].mxu1 %v15807_v30  ;;  %12570 = vmatprep.mubr.msk.f32.mxu0 %vm13750_vm3, %v13749_v2 }
 0xdb8   : >> { %12575 = vmatprep.mubr.msk.f32.mxu1 %vm13750_vm3, %v13749_v2 }
 0xe29   : >> { %v11720_v61 = vpop.f32.mrb[0].mxu0 }
 0xe2a   : >> { %v11742_v39 = vpop.f32.mrb[0].mxu1  ;;  %v11721_v5 = vpop.f32.mrb[1].mxu0 }
 0xe2b   : >> { %v11743_v6 = vpop.f32.mrb[1].mxu1  ;;  %v11722_v8 = vadd.f32 %v11721_v5, %v11720_v61  ;;  %v11723_v9 = vpop.f32.mrb[2].mxu0  ;;  %v13607_v61 = vld [vmem:[%s16467_s10 + $0x708] sm:$0xff]   ;;  %v13611_v5 = vld [vmem:[%s16467_s10 + $0x710] sm:$0xff]  }
 0xe2c   : >> { %v11744_v0 = vadd.f32 %v11743_v6, %v11742_v39  ;;  %v11745_v10 = vpop.f32.mrb[2].mxu1  ;;  %v11724_v12 = vpop.f32.mrb[3].mxu0  ;;  %v13609_v39 = vld [vmem:[%s16467_s10 + $0x750] sm:$0xff]   ;;  %v13613_v6 = vld [vmem:[%s16467_s10 + $0x758] sm:$0xff]   ;;  %v13619_v9 = vld [vmem:[%s16467_s10 + $0x720] sm:$0xff]  }
 0xe2d   : >> { %v11746_v34 = vpop.f32.mrb[3].mxu1  ;;  %v13621_v10 = vld [vmem:[%s16467_s10 + $0x768] sm:$0xff]  }
 0xe2e   : >> { %v6933_v14 = vadd.f32 %v11744_v0, %v11722_v8  ;;  %v13615_v8 = vld [vmem:[%s16467_s10 + $0x718] sm:$0xff]   ;;  %v13617_v0 = vld [vmem:[%s16467_s10 + $0x760] sm:$0xff]   ;;  %v13623_v12 = vld [vmem:[%s16467_s10 + $0x728] sm:$0xff]  }
 0xe2f   : >> { %v13625_v34 = vld [vmem:[%s16467_s10 + $0x770] sm:$0xff]  }
 0xe49   : >> { %v11764_v20 = vpop.f32.mrb[4].mxu0 }
 0xe4a   : >> { %v11786_v23 = vpop.f32.mrb[4].mxu1  ;;  %v11765_v45 = vpop.f32.mrb[5].mxu0 }
 0xe4b   : >> { %v11787_v47 = vpop.f32.mrb[5].mxu1  ;;  %v11766_v25 = vadd.f32 %v11765_v45, %v11764_v20  ;;  %v11767_v27 = vpop.f32.mrb[6].mxu0  ;;  %v13629_v20 = vld [vmem:[%s16467_s10 + $0x778] sm:$0xff]  }
 0xe4c   : >> { %v11788_v26 = vadd.f32 %v11787_v47, %v11786_v23  ;;  %v11789_v31 = vpop.f32.mrb[6].mxu1  ;;  %v11768_v32 = vpop.f32.mrb[7].mxu0 }
 0xe4d   : >> { %v11790_v36 = vpop.f32.mrb[7].mxu1  ;;  %v7114_v7 = vadd.f32 %v11766_v25, %v6933_v14  ;;  %v13627_v14 = vld [vmem:[%s16467_s10 + $0x730] sm:$0xff]   ;;  %v13631_v31 = vld [vmem:[%s16467_s10 + $0x738] sm:$0xff]  }
 0xe4f   : >> { %v7291_v38 = vadd.f32 %v11788_v26, %v7114_v7 }
 0xe51   : >> { %12574 = vmatpush3.msk.msra.mxu1 %vm7977_vm5, %v7291_v38 }
 0xe52   : >> { %11906 = vmatprep.subr.bf16.mxu1 %v13569_v37  ;;  %12576 = vmatmul.mubr.msk.f32.vlgmr.msra.gmra.mrb[16].mxu1 %vm7973_vm6, %v7292_v41  ;;  %v13570_v41 = vld [vmem:[%s16467_s10 + $0x340] sm:$0xff]  }
 0xe53   : >> { %11907 = vmatpush3.bf16.msra.mxu1 %v13571_v40  ;;  %8457 = vmatprep.mubr.bf16.mxu1 %v15693_v18 }
 0xe54   : >> { %11908 = vmatprep.subr.bf16.mxu1 %v13573_v1  ;;  %v11089_v1 = vld [vmem:[%s16469_s12 + $0x4] sm:$0x7] }
 0xe57   : >> { %11909 = vmatpush3.bf16.msra.mxu1 %v13575_v42  ;;  %v13572_v42 = vld [vmem:[%s16467_s10 + $0x300] sm:$0xff]  }
 0xe58   : >> { %11910 = vmatprep.subr.bf16.mxu1 %v13577_v43  ;;  %v13574_v43 = vld [vmem:[%s16467_s10 + $0x348] sm:$0xff]  }
 0xe5b   : >> { %11911 = vmatpush3.bf16.msra.mxu1 %v13579_v44  ;;  %v13576_v44 = vld [vmem:[%s16467_s10 + $0x308] sm:$0xff]  }
 0xe5c   : >> { %11912 = vmatprep.subr.bf16.mxu1 %v13581_v48  ;;  %v13578_v48 = vld [vmem:[%s16467_s10 + $0x350] sm:$0xff]  }
 0xe5f   : >> { %11913 = vmatpush3.bf16.msra.mxu1 %v13583_v58  ;;  %v13580_v58 = vld [vmem:[%s16467_s10 + $0x310] sm:$0xff]  }
 0xe60   : >> { %11914 = vmatprep.subr.bf16.mxu1 %v13585_v50  ;;  %v13582_v50 = vld [vmem:[%s16467_s10 + $0x358] sm:$0xff]  }
 0xe63   : >> { %11915 = vmatpush3.bf16.msra.mxu1 %v13587_v15  ;;  %v13584_v15 = vld [vmem:[%s16467_s10 + $0x318] sm:$0xff]  }
 0xe64   : >> { %11916 = vmatprep.subr.bf16.mxu1 %v13589_v51  ;;  %v13588_v51 = vld [vmem:[%s16467_s10 + $0x320] sm:$0xff]  }
 0xe67   : >> { %11917 = vmatpush3.bf16.msra.mxu1 %v13591_v52  ;;  %v13590_v52 = vld [vmem:[%s16467_s10 + $0x368] sm:$0xff]  }
 0xe68   : >> { %11918 = vmatprep.subr.bf16.mxu1 %v13593_v55  ;;  %v13592_v55 = vld [vmem:[%s16467_s10 + $0x328] sm:$0xff]  }
 0xe69   : >> { %v11808_v11 = vpop.f32.mrb[8].mxu0 }
 0xe6a   : >> { %v11830_v57 = vpop.f32.mrb[8].mxu1  ;;  %v11809_v13 = vpop.f32.mrb[9].mxu0 }
 0xe6b   : >> { %v11810_v17 = vadd.f32 %v11809_v13, %v11808_v11  ;;  %v11831_v22 = vpop.f32.mrb[9].mxu1  ;;  %v11811_v28 = vpop.f32.mrb[10].mxu0  ;;  %11919 = vmatpush3.bf16.msra.mxu1 %v13595_v56  ;;  %v13594_v56 = vld [vmem:[%s16467_s10 + $0x370] sm:$0xff]   ;;  %v13598_v11 = vld [vmem:[%s16467_s10 + $0x378] sm:$0xff]   ;;  %v13602_v13 = vld [vmem:[%s16467_s10 + $0x540] sm:$0xff]  }
 0xe6c   : >> { %v11832_v53 = vadd.f32 %v11831_v22, %v11830_v57  ;;  %v11833_v33 = vpop.f32.mrb[10].mxu1  ;;  %v11812_v21 = vpop.f32.mrb[11].mxu0  ;;  %11920 = vmatprep.subr.bf16.mxu1 %v13597_v35  ;;  %v13596_v35 = vld [vmem:[%s16467_s10 + $0x330] sm:$0xff]   ;;  %v13600_v57 = vld [vmem:[%s16467_s10 + $0x338] sm:$0xff]   ;;  %v13606_v22 = vld [vmem:[%s16467_s10 + $0x548] sm:$0xff]  }
 0xe6d   : >> { %v11834_v4 = vpop.f32.mrb[11].mxu1  ;;  %v13608_v28 = vld [vmem:[%s16467_s10 + $0x508] sm:$0xff]   ;;  %v13614_v33 = vld [vmem:[%s16467_s10 + $0x558] sm:$0xff]  }
 0xe6e   : >> { %v7626_v59 = vadd.f32 %v11832_v53, %v11810_v17  ;;  %v13604_v17 = vld [vmem:[%s16467_s10 + $0x500] sm:$0xff]   ;;  %v13612_v53 = vld [vmem:[%s16467_s10 + $0x510] sm:$0xff]   ;;  %v13616_v21 = vld [vmem:[%s16467_s10 + $0x518] sm:$0xff]  }
 0xe6f   : >> { %11921 = vmatpush3.bf16.msra.mxu1 %v13599_v49  ;;  %v13610_v49 = vld [vmem:[%s16467_s10 + $0x550] sm:$0xff]   ;;  %v13620_v4 = vld [vmem:[%s16467_s10 + $0x520] sm:$0xff]  }
 0xe70   : >> { %11950 = vmatprep.subr.bf16.mxu1 %v13601_v60  ;;  %v13618_v60 = vld [vmem:[%s16467_s10 + $0x560] sm:$0xff]  }
 0xe72   : >> { %8458 = vmatmul.mubr.bf16.vlgmr.msra.gmra.mrb[20].mxu1 %v15697_v19 }
 0xe73   : >> { %11951 = vmatpush3.bf16.msra.mxu1 %v13603_v62  ;;  %8796 = vmatprep.mubr.bf16.mxu1 %v15805_v29  ;;  %v13624_v62 = vld [vmem:[%s16467_s10 + $0x528] sm:$0xff]  }
 0xe74   : >> { %11952 = vmatprep.subr.bf16.mxu1 %v13605_v63  ;;  %v13626_v63 = vld [vmem:[%s16467_s10 + $0x570] sm:$0xff]  }
 0xe77   : >> { %11953 = vmatpush3.bf16.msra.mxu1 %v13607_v61  ;;  %v13628_v61 = vld [vmem:[%s16467_s10 + $0x530] sm:$0xff]  }
 0xe78   : >> { %11954 = vmatprep.subr.bf16.mxu1 %v13609_v39  ;;  %v13630_v39 = vld [vmem:[%s16467_s10 + $0x578] sm:$0xff]  }
 0xe7b   : >> { %11955 = vmatpush3.bf16.msra.mxu1 %v13611_v5  ;;  %v13632_v5 = vld [vmem:[%s16467_s10 + $0x538] sm:$0xff]  }
 0xe7c   : >> { %11956 = vmatprep.subr.bf16.mxu1 %v13613_v6  ;;  %v13633_v6 = vld [vmem:[%s16467_s10 + $0x3c0] sm:$0xff]  }
 0xe7f   : >> { %11957 = vmatpush3.bf16.msra.mxu1 %v13615_v8  ;;  %v13634_v8 = vld [vmem:[%s16467_s10 + $0x380] sm:$0xff]  }
 0xe80   : >> { %11958 = vmatprep.subr.bf16.mxu1 %v13617_v0  ;;  %v13635_v0 = vld [vmem:[%s16467_s10 + $0x3c8] sm:$0xff]  }
 0xe83   : >> { %11959 = vmatpush3.bf16.msra.mxu1 %v13619_v9  ;;  %v13636_v9 = vld [vmem:[%s16467_s10 + $0x388] sm:$0xff]  }
 0xe84   : >> { %11960 = vmatprep.subr.bf16.mxu1 %v13621_v10  ;;  %v13637_v10 = vld [vmem:[%s16467_s10 + $0x3d0] sm:$0xff]  }
 0xe87   : >> { %11961 = vmatpush3.bf16.msra.mxu1 %v13623_v12  ;;  %v13638_v12 = vld [vmem:[%s16467_s10 + $0x390] sm:$0xff]  }
 0xe88   : >> { %11962 = vmatprep.subr.bf16.mxu1 %v13625_v34  ;;  %v13639_v34 = vld [vmem:[%s16467_s10 + $0x3d8] sm:$0xff]  }
 0xe89   : >> { %v11852_v23 = vpop.f32.mrb[12].mxu0 }
 0xe8a   : >> { %v11874_v45 = vpop.f32.mrb[12].mxu1  ;;  %v11853_v47 = vpop.f32.mrb[13].mxu0 }
 0xe8b   : >> { %v11854_v25 = vadd.f32 %v11853_v47, %v11852_v23  ;;  %v11875_v26 = vpop.f32.mrb[13].mxu1  ;;  %v11855_v27 = vpop.f32.mrb[14].mxu0  ;;  %11963 = vmatpush3.bf16.msra.mxu1 %v13627_v14  ;;  %v13640_v14 = vld [vmem:[%s16467_s10 + $0x398] sm:$0xff]   ;;  %v13642_v23 = vld [vmem:[%s16467_s10 + $0x3a0] sm:$0xff]   ;;  %v13644_v47 = vld [vmem:[%s16467_s10 + $0x3a8] sm:$0xff]  }
 0xe8c   : >> { %v11876_v32 = vadd.f32 %v11875_v26, %v11874_v45  ;;  %v11877_v36 = vpop.f32.mrb[14].mxu1  ;;  %v11856_v7 = vpop.f32.mrb[15].mxu0  ;;  %11964 = vmatprep.subr.bf16.mxu1 %v13629_v20  ;;  %v13641_v20 = vld [vmem:[%s16467_s10 + $0x3e0] sm:$0xff]   ;;  %v13643_v45 = vld [vmem:[%s16467_s10 + $0x3e8] sm:$0xff]   ;;  %v13645_v27 = vld [vmem:[%s16467_s10 + $0x3f0] sm:$0xff]  }
 0xe8d   : >> { %v7800_v37 = vadd.f32 %v11854_v25, %v7626_v59  ;;  %v11878_v38 = vpop.f32.mrb[15].mxu1  ;;  %v13622_v59 = vld [vmem:[%s16467_s10 + $0x568] sm:$0xff]   ;;  %v13648_v36 = vld [vmem:[%s16467_s10 + $0x3b8] sm:$0xff]   ;;  %v13651_v7 = vld [vmem:[%s16467_s10 + $0x5c0] sm:$0xff]  }
 0xe8e   : >> { %v13655_v38 = vld [vmem:[%s16467_s10 + $0x5c8] sm:$0xff]  }
 0xe8f   : >> { %v7970_v40 = vadd.f32 %v11876_v32, %v7800_v37  ;;  %11965 = vmatpush3.bf16.msra.mxu1 %v13631_v31  ;;  %v13646_v31 = vld [vmem:[%s16467_s10 + $0x3b0] sm:$0xff]   ;;  %v13647_v32 = vld [vmem:[%s16467_s10 + $0x3f8] sm:$0xff]   ;;  %v13652_v37 = vld [vmem:[%s16467_s10 + $0x580] sm:$0xff]  }
 0xe90   : >> { %11974 = vmatprep.subr.bf16.mxu1 %v13633_v6  ;;  %v13649_v6 = vld [vmem:[%s16467_s10 + $0x1c0] sm:$0xff]  }
 0xe91   : >> { %12569 = vmatpush3.msk.msra.mxu0 %vm7977_vm5, %v7970_v40  ;;  %v13659_v40 = vld [vmem:[%s16467_s10 + $0x5d0] sm:$0xff]  }
 0xe92   : >> { %12571 = vmatmul.mubr.msk.f32.vlgmr.msra.gmra.mrb[16].mxu0 %vm7973_vm6, %v11089_v1  ;;  %11884 = vmatprep.subr.bf16.mxu0 %v13570_v41  ;;  %v13656_v41 = vld [vmem:[%s16467_s10 + $0x588] sm:$0xff]   ;;  %v13664_v1 = vld [vmem:[%s16467_s10 + $0x598] sm:$0xff]  }
 0xe93   : >> { %11885 = vmatpush3.bf16.msra.mxu0 %v13572_v42  ;;  %8321 = vmatprep.mubr.bf16.mxu0 %v15691_v16  ;;  %v13667_v42 = vld [vmem:[%s16467_s10 + $0x5e0] sm:$0xff]  }
 0xe94   : >> { %11886 = vmatprep.subr.bf16.mxu0 %v13574_v43  ;;  %8797 = vmatmul.mubr.bf16.vlgmr.msra.gmra.mrb[24].mxu1 %v15807_v30  ;;  %v13668_v43 = vld [vmem:[%s16467_s10 + $0x5a0] sm:$0xff]  }
 0xe95   : >> { %9078 = vmatprep.mubr.bf16.mxu1 %v15691_v16  ;;  %v13586_v16 = vld [vmem:[%s16467_s10 + $0x360] sm:$0xff]   ;;  %11975 = vmatpush3.bf16.msra.mxu1 %v13634_v8 }
 0xe96   : >> { %11976 = vmatprep.subr.bf16.mxu1 %v13635_v0  ;;  %v11286_v0 = vld [vmem:[%s16469_s12 + $0x8] sm:$0x7] }
 0xe97   : >> { %11887 = vmatpush3.bf16.msra.mxu0 %v13576_v44  ;;  %v13671_v44 = vld [vmem:[%s16467_s10 + $0x5e8] sm:$0xff]  }
 0xe98   : >> { %11888 = vmatprep.subr.bf16.mxu0 %v13578_v48  ;;  %v13672_v48 = vld [vmem:[%s16467_s10 + $0x5a8] sm:$0xff]  }
 0xe99   : >> { %11977 = vmatpush3.bf16.msra.mxu1 %v13636_v9  ;;  %v13650_v9 = vld [vmem:[%s16467_s10 + $0x180] sm:$0xff]  }
 0xe9a   : >> { %11978 = vmatprep.subr.bf16.mxu1 %v13637_v10  ;;  %v13653_v10 = vld [vmem:[%s16467_s10 + $0x1c8] sm:$0xff]  }
 0xe9b   : >> { %11889 = vmatpush3.bf16.msra.mxu0 %v13580_v58 }
 0xe9c   : >> { %11890 = vmatprep.subr.bf16.mxu0 %v13582_v50 }
 0xe9d   : >> { %11979 = vmatpush3.bf16.msra.mxu1 %v13638_v12  ;;  %v13654_v12 = vld [vmem:[%s16467_s10 + $0x188] sm:$0xff]  }
 0xe9e   : >> { %11980 = vmatprep.subr.bf16.mxu1 %v13639_v34  ;;  %v13657_v34 = vld [vmem:[%s16467_s10 + $0x1d0] sm:$0xff]  }
 0xe9f   : >> { %11891 = vmatpush3.bf16.msra.mxu0 %v13584_v15 }
 0xea0   : >> { %11892 = vmatprep.subr.bf16.mxu0 %v13586_v16 }
 0xea1   : >> { %11981 = vmatpush3.bf16.msra.mxu1 %v13640_v14  ;;  %v13658_v14 = vld [vmem:[%s16467_s10 + $0x190] sm:$0xff]  }
 0xea2   : >> { %11982 = vmatprep.subr.bf16.mxu1 %v13641_v20  ;;  %v13661_v20 = vld [vmem:[%s16467_s10 + $0x1d8] sm:$0xff]  }
 0xea3   : >> { %11893 = vmatpush3.bf16.msra.mxu0 %v13588_v51  ;;  %v13675_v51 = vld [vmem:[%s16467_s10 + $0x5f0] sm:$0xff]  }
 0xea4   : >> { %11894 = vmatprep.subr.bf16.mxu0 %v13590_v52  ;;  %v13676_v52 = vld [vmem:[%s16467_s10 + $0x5b0] sm:$0xff]  }
 0xea5   : >> { %11983 = vmatpush3.bf16.msra.mxu1 %v13642_v23  ;;  %v13665_v23 = vld [vmem:[%s16467_s10 + $0x1e0] sm:$0xff]  }
 0xea6   : >> { %11984 = vmatprep.subr.bf16.mxu1 %v13643_v45  ;;  %v13666_v45 = vld [vmem:[%s16467_s10 + $0x1a0] sm:$0xff]  }
 0xea7   : >> { %11895 = vmatpush3.bf16.msra.mxu0 %v13592_v55 }
 0xea8   : >> { %11896 = vmatprep.subr.bf16.mxu0 %v13594_v56  ;;  %v13679_v56 = vld [vmem:[%s16467_s10 + $0x5f8] sm:$0xff]  }
 0xea9   : >> { %11985 = vmatpush3.bf16.msra.mxu1 %v13644_v47  ;;  %v13669_v47 = vld [vmem:[%s16467_s10 + $0x1e8] sm:$0xff]  }
 0xeaa   : >> { %11986 = vmatprep.subr.bf16.mxu1 %v13645_v27  ;;  %v13674_v27 = vld [vmem:[%s16467_s10 + $0x1b0] sm:$0xff]  }
 0xeab   : >> { %11897 = vmatpush3.bf16.msra.mxu0 %v13596_v35  ;;  %v13680_v35 = vld [vmem:[%s16467_s10 + $0x5b8] sm:$0xff]  }
 0xeac   : >> { %11898 = vmatprep.subr.bf16.mxu0 %v13598_v11 }
 0xead   : >> { %11987 = vmatpush3.bf16.msra.mxu1 %v13646_v31  ;;  %v13677_v31 = vld [vmem:[%s16467_s10 + $0x1f8] sm:$0xff]  }
 0xeae   : >> { %11988 = vmatprep.subr.bf16.mxu1 %v13647_v32  ;;  %v13678_v32 = vld [vmem:[%s16467_s10 + $0x1b8] sm:$0xff]  }
 0xeaf   : >> { %11899 = vmatpush3.bf16.msra.mxu0 %v13600_v57 }
 0xeb0   : >> { %11928 = vmatprep.subr.bf16.mxu0 %v13602_v13 }
 0xeb1   : >> { %11989 = vmatpush3.bf16.msra.mxu1 %v13648_v36  ;;  %v13681_v36 = vld [vmem:[%s16467_s10 + $0x7c0] sm:$0xff]  }
 0xeb2   : >> { %8322 = vmatmul.mubr.bf16.vlgmr.msra.gmra.mrb[20].mxu0 %v15695_v3  ;;  %12018 = vmatprep.subr.bf16.mxu1 %v13651_v7  ;;  %v13682_v7 = vld [vmem:[%s16467_s10 + $0x780] sm:$0xff]  }
 0xeb3   : >> { %11929 = vmatpush3.bf16.msra.mxu0 %v13604_v17  ;;  %8626 = vmatprep.mubr.bf16.mxu0 %v15800_v24 }
 0xeb4   : >> { %11930 = vmatprep.subr.bf16.mxu0 %v13606_v22  ;;  %9079 = vmatmul.mubr.bf16.vlgmr.msra.gmra.mrb[28].mxu1 %v15695_v3  ;;  %v13660_v3 = vld [vmem:[%s16467_s10 + $0x590] sm:$0xff]  }
 0xeb5   : >> { %12019 = vmatpush3.bf16.msra.mxu1 %v13652_v37  ;;  %9383 = vmatprep.mubr.bf16.mxu1 %v15800_v24  ;;  %v13663_v24 = vld [vmem:[%s16467_s10 + $0x5d8] sm:$0xff]   ;;  %v13683_v37 = vld [vmem:[%s16467_s10 + $0x7c8] sm:$0xff]  }
 0xeb6   : >> { %12020 = vmatprep.subr.bf16.mxu1 %v13655_v38  ;;  %v13684_v38 = vld [vmem:[%s16467_s10 + $0x788] sm:$0xff]  }
 0xeb7   : >> { %11931 = vmatpush3.bf16.msra.mxu0 %v13608_v28 }
 0xeb8   : >> { %11932 = vmatprep.subr.bf16.mxu0 %v13610_v49 }
 0xeb9   : >> { %12021 = vmatpush3.bf16.msra.mxu1 %v13656_v41  ;;  %v13685_v41 = vld [vmem:[%s16467_s10 + $0x7d0] sm:$0xff]  }
 0xeba   : >> { %12022 = vmatprep.subr.bf16.mxu1 %v13659_v40  ;;  %v13686_v40 = vld [vmem:[%s16467_s10 + $0x790] sm:$0xff]  }
 0xebb   : >> { %11933 = vmatpush3.bf16.msra.mxu0 %v13612_v53 }
 0xebc   : >> { %11934 = vmatprep.subr.bf16.mxu0 %v13614_v33 }
 0xebd   : >> { %12023 = vmatpush3.bf16.msra.mxu1 %v13660_v3  ;;  %v13689_v3 = vld [vmem:[%s16467_s10 + $0x7e0] sm:$0xff]  }
 0xebe   : >> { %12024 = vmatprep.subr.bf16.mxu1 %v13663_v24  ;;  %v13690_v24 = vld [vmem:[%s16467_s10 + $0x7a0] sm:$0xff]  }
 0xebf   : >> { %11935 = vmatpush3.bf16.msra.mxu0 %v13616_v21 }
 0xec0   : >> { %11936 = vmatprep.subr.bf16.mxu0 %v13618_v60 }
 0xec1   : >> { %12025 = vmatpush3.bf16.msra.mxu1 %v13664_v1  ;;  %v13691_v1 = vld [vmem:[%s16467_s10 + $0x7e8] sm:$0xff]  }
 0xec2   : >> { %12026 = vmatprep.subr.bf16.mxu1 %v13667_v42  ;;  %v13692_v42 = vld [vmem:[%s16467_s10 + $0x7a8] sm:$0xff]  }
 0xec3   : >> { %11937 = vmatpush3.bf16.msra.mxu0 %v13620_v4 }
 0xec4   : >> { %11938 = vmatprep.subr.bf16.mxu0 %v13622_v59 }
 0xec5   : >> { %12027 = vmatpush3.bf16.msra.mxu1 %v13668_v43  ;;  %v13693_v43 = vld [vmem:[%s16467_s10 + $0x7f0] sm:$0xff]  }
 0xec6   : >> { %12028 = vmatprep.subr.bf16.mxu1 %v13671_v44  ;;  %v13694_v44 = vld [vmem:[%s16467_s10 + $0x7b0] sm:$0xff]  }
 0xec7   : >> { %11939 = vmatpush3.bf16.msra.mxu0 %v13624_v62 }
 0xec8   : >> { %11940 = vmatprep.subr.bf16.mxu0 %v13626_v63 }
 0xec9   : >> { %12029 = vmatpush3.bf16.msra.mxu1 %v13672_v48  ;;  %v13695_v48 = vld [vmem:[%s16467_s10 + $0x7f8] sm:$0xff]  }
 0xeca   : >> { %12030 = vmatprep.subr.bf16.mxu1 %v13675_v51 }
 0xecb   : >> { %11941 = vmatpush3.bf16.msra.mxu0 %v13628_v61 }
 0xecc   : >> { %11942 = vmatprep.subr.bf16.mxu0 %v13630_v39 }
 0xecd   : >> { %12031 = vmatpush3.bf16.msra.mxu1 %v13676_v52 }
 0xece   : >> { %12032 = vmatprep.subr.bf16.mxu1 %v13679_v56 }
 0xecf   : >> { %11943 = vmatpush3.bf16.msra.mxu0 %v13632_v5 }
 0xed0   : >> { %12578 = vmatprep.subr.mxu0 %v13749_v2 }
 0xed1   : >> { %12033 = vmatpush3.bf16.msra.mxu1 %v13680_v35 }
 0xed2   : >> { %8627 = vmatmul.mubr.bf16.vlgmr.msra.gmra.mrb[24].mxu0 %v15803_v46  ;;  %12583 = vmatprep.subr.mxu1 %v13749_v2 }
 0xed3   : >> { %12580 = vmatprep.mubr.msk.f32.mxu0 %vm13750_vm3, %v13749_v2 }
 0xed4   : >> { %9384 = vmatmul.mubr.bf16.vlgmr.msra.gmra.mrb[32].mxu1 %v15803_v46 }
 0xed5   : >> { %12585 = vmatprep.mubr.msk.f32.mxu1 %vm13750_vm3, %v13749_v2 }
 0xf25   : >> { %v8123_v25 = vpop.f32.mrb[16].mxu1 }
 0xf26   : >> { %v12577_v26 = vpop.f32.mrb[17].mxu1 }
 0xf27   : >> { %v13673_v26 = vld [vmem:[%s16467_s10 + $0x1f0] sm:$0xff]  }
 0xf45   : >> { %v11922_v58 = vpop.f32.mrb[20].mxu1 }
 0xf46   : >> { %v11923_v50 = vpop.f32.mrb[21].mxu1 }
 0xf47   : >> { %v11924_v15 = vadd.f32 %v11923_v50, %v11922_v58  ;;  %v11925_v16 = vpop.f32.mrb[22].mxu1  ;;  %v13696_v58 = vld [vmem:[%s16467_s10 + $0x7b8] sm:$0xff]  }
 0xf48   : >> { %v11926_v55 = vpop.f32.mrb[23].mxu1 }
 0xf65   : >> { %v8047_v11 = vpop.f32.mrb[16].mxu0 }
 0xf66   : >> { %v12572_v57 = vpop.f32.mrb[17].mxu0  ;;  %v16335_v13 = vadd.f32 %v8123_v25, %v8047_v11  ;;  %v13670_v25 = vld [vmem:[%s16467_s10 + $0x1a8] sm:$0xff]  }
 0xf67   : >> { %v11966_v17 = vpop.f32.mrb[24].mxu1 }
 0xf68   : >> { %v11967_v22 = vpop.f32.mrb[25].mxu1 }
 0xf69   : >> { %v11968_v28 = vadd.f32 %v11967_v22, %v11966_v17  ;;  %v11969_v49 = vpop.f32.mrb[26].mxu1 }
 0xf6a   : >> { %v11970_v53 = vpop.f32.mrb[27].mxu1 }
 0xf85   : >> { %v11900_v33 = vpop.f32.mrb[20].mxu0 }
 0xf86   : >> { %v11901_v21 = vpop.f32.mrb[21].mxu0 }
 0xf87   : >> { %v11902_v60 = vadd.f32 %v11901_v21, %v11900_v33  ;;  %v11903_v4 = vpop.f32.mrb[22].mxu0  ;;  %v11990_v50 = vpop.f32.mrb[28].mxu1 }
 0xf88   : >> { %v11904_v59 = vpop.f32.mrb[23].mxu0 }
 0xf89   : >> { %v8460_v62 = vadd.f32 %v11924_v15, %v11902_v60  ;;  %v11991_v15 = vpop.f32.mrb[29].mxu1 }
 0xf8a   : >> { %v11992_v16 = vadd.f32 %v11991_v15, %v11990_v50  ;;  %v11993_v51 = vpop.f32.mrb[30].mxu1 }
 0xf8b   : >> { %v11994_v52 = vpop.f32.mrb[31].mxu1 }
 0xfa5   : >> { %v11944_v63 = vpop.f32.mrb[24].mxu0 }
 0xfa6   : >> { %v11945_v46 = vpop.f32.mrb[25].mxu0 }
 0xfa7   : >> { %v11946_v61 = vadd.f32 %v11945_v46, %v11944_v63  ;;  %v11947_v39 = vpop.f32.mrb[26].mxu0  ;;  %v12034_v55 = vpop.f32.mrb[32].mxu1 }
 0xfa8   : >> { %v11948_v2 = vpop.f32.mrb[27].mxu0  ;;  %v12035_v56 = vpop.f32.mrb[33].mxu1 }
 0xfa9   : >> { %v8634_v5 = vadd.f32 %v11946_v61, %v8460_v62  ;;  %v12036_v35 = vadd.f32 %v12035_v56, %v12034_v55  ;;  %v12037_v11 = vpop.f32.mrb[34].mxu1 }
 0xfaa   : >> { %v12038_v57 = vpop.f32.mrb[35].mxu1 }
 0xfab   : >> { %v8804_v8 = vadd.f32 %v11968_v28, %v8634_v5 }
 0xfad   : >> { %12579 = vmatpush3.msk.msra.mxu0 %vm7977_vm5, %v8804_v8 }
 0xfae   : >> { %12581 = vmatmul.mubr.msk.f32.vlgmr.msra.gmra.mrb[18].mxu0 %vm7973_vm6, %v11286_v0  ;;  %11996 = vmatprep.subr.bf16.mxu0 %v13649_v6 }
 0xfaf   : >> { %11997 = vmatpush3.bf16.msra.mxu0 %v13650_v9  ;;  %9214 = vmatprep.mubr.bf16.mxu0 %v15693_v18  ;;  %v13662_v18 = vld [vmem:[%s16467_s10 + $0x198] sm:$0xff]  }
 0xfb0   : >> { %11998 = vmatprep.subr.bf16.mxu0 %v13653_v10 }
 0xfb3   : >> { %11999 = vmatpush3.bf16.msra.mxu0 %v13654_v12 }
 0xfb4   : >> { %12000 = vmatprep.subr.bf16.mxu0 %v13657_v34 }
 0xfb7   : >> { %12001 = vmatpush3.bf16.msra.mxu0 %v13658_v14 }
 0xfb8   : >> { %12002 = vmatprep.subr.bf16.mxu0 %v13661_v20 }
 0xfbb   : >> { %12003 = vmatpush3.bf16.msra.mxu0 %v13662_v18 }
 0xfbc   : >> { %12004 = vmatprep.subr.bf16.mxu0 %v13665_v23 }
 0xfbf   : >> { %12005 = vmatpush3.bf16.msra.mxu0 %v13666_v45 }
 0xfc0   : >> { %12006 = vmatprep.subr.bf16.mxu0 %v13669_v47 }
 0xfc3   : >> { %12007 = vmatpush3.bf16.msra.mxu0 %v13670_v25 }
 0xfc4   : >> { %12008 = vmatprep.subr.bf16.mxu0 %v13673_v26 }
 0xfc7   : >> { %12009 = vmatpush3.bf16.msra.mxu0 %v13674_v27 }
 0xfc8   : >> { %12010 = vmatprep.subr.bf16.mxu0 %v13677_v31 }
 0xfcb   : >> { %12011 = vmatpush3.bf16.msra.mxu0 %v13678_v32 }
 0xfcc   : >> { %12040 = vmatprep.subr.bf16.mxu0 %v13681_v36 }
 0xfce   : >> { %9215 = vmatmul.mubr.bf16.vlgmr.msra.gmra.mrb[28].mxu0 %v15697_v19  ;;  %v13687_v19 = vld [vmem:[%s16467_s10 + $0x7d8] sm:$0xff]  }
 0xfcf   : >> { %12041 = vmatpush3.bf16.msra.mxu0 %v13682_v7  ;;  %9553 = vmatprep.mubr.bf16.mxu0 %v15805_v29  ;;  %v13688_v29 = vld [vmem:[%s16467_s10 + $0x798] sm:$0xff]  }
 0xfd0   : >> { %12042 = vmatprep.subr.bf16.mxu0 %v13683_v37 }
 0xfd3   : >> { %12043 = vmatpush3.bf16.msra.mxu0 %v13684_v38 }
 0xfd4   : >> { %12044 = vmatprep.subr.bf16.mxu0 %v13685_v41 }
 0xfd7   : >> { %12045 = vmatpush3.bf16.msra.mxu0 %v13686_v40 }
 0xfd8   : >> { %12046 = vmatprep.subr.bf16.mxu0 %v13687_v19 }
 0xfdb   : >> { %12047 = vmatpush3.bf16.msra.mxu0 %v13688_v29 }
 0xfdc   : >> { %12048 = vmatprep.subr.bf16.mxu0 %v13689_v3 }
 0xfdf   : >> { %12049 = vmatpush3.bf16.msra.mxu0 %v13690_v24 }
 0xfe0   : >> { %12050 = vmatprep.subr.bf16.mxu0 %v13691_v1 }
 0xfe3   : >> { %12051 = vmatpush3.bf16.msra.mxu0 %v13692_v42 }
 0xfe4   : >> { %12052 = vmatprep.subr.bf16.mxu0 %v13693_v43 }
 0xfe7   : >> { %12053 = vmatpush3.bf16.msra.mxu0 %v13694_v44 }
 0xfe8   : >> { %12054 = vmatprep.subr.bf16.mxu0 %v13695_v48 }
 0xfeb   : >> { %12055 = vmatpush3.bf16.msra.mxu0 %v13696_v58 }
 0xfee   : >> { %9554 = vmatmul.mubr.bf16.vlgmr.msra.gmra.mrb[32].mxu0 %v15807_v30 }
0x1081   : >> { %v8879_v17 = vpop.f32.mrb[18].mxu0 }
0x1082   : >> { %v8883_v22 = vadd.f32 %v8879_v17, %v16335_v13  ;;  %v12582_v28 = vpop.f32.mrb[19].mxu0  ;;  %v11481_v13 = vld [vmem:[%s16469_s12 + $0xc] sm:$0x7] }
0x10a1   : >> { %v12012_v49 = vpop.f32.mrb[28].mxu0 }
0x10a2   : >> { %v12013_v53 = vpop.f32.mrb[29].mxu0 }
0x10a3   : >> { %v12014_v33 = vadd.f32 %v12013_v53, %v12012_v49  ;;  %v12015_v21 = vpop.f32.mrb[30].mxu0 }
0x10a4   : >> { %v12016_v60 = vpop.f32.mrb[31].mxu0 }
0x10a5   : >> { %v9217_v30 = vadd.f32 %v12014_v33, %v11992_v16 }
0x10a7   : >> { %v9391_v4 = vadd.f32 %v12036_v35, %v9217_v30 }
0x10c1   : >> { %v12056_v59 = vpop.f32.mrb[32].mxu0 }
0x10c2   : >> { %v12057_v62 = vpop.f32.mrb[33].mxu0 }
0x10c3   : >> { %v12058_v63 = vadd.f32 %v12057_v62, %v12056_v59  ;;  %v12059_v46 = vpop.f32.mrb[34].mxu0 }
0x10c4   : >> { %v12060_v61 = vpop.f32.mrb[35].mxu0 }
0x10c5   : >> { %v9561_v39 = vadd.f32 %v12058_v63, %v9391_v4 }
0x10c7   : >> { %12584 = vmatpush3.msk.msra.mxu1 %vm7977_vm5, %v9561_v39 }
0x10c8   : >> { %12586 = vmatmul.mubr.msk.f32.vlgmr.msra.gmra.mrb[18].mxu1 %vm7973_vm6, %v11481_v13 }
0x119b   : >> { %v9636_v2 = vpop.f32.mrb[18].mxu1 }
0x119c   : >> { %v9640_v5 = vadd.f32 %v9636_v2, %v8883_v22  ;;  %v12587_v6 = vpop.f32.mrb[19].mxu1 }
0x119e   : >> { %v9647_v8 = vadd.f32 %v15583_v54, %v9640_v5 }
0x11a0   : >> { %v9648_v0 = vmul.f32 0.5, %v9647_v8 }
0x11a2   : >> { %13697 = vtanh.f32 %v9648_v0 }
0x11ab   : > { %6566 = sbr.rel (!%p6564_p7) target bundleno = 3380 (0xd34), region = 255 }
0x11ac   : >> { %v13698_v9 = vpop.eup %13697 }
0x11ad   : >> { %v9650_v10 = vadd.f32 1.0, %v13698_v9 }
0x11af   : >> { %v9651_v12 = vmul.f32 0.5, %v9650_v10 }
0x11b1   : >> { %9655 = vst.msk [vmem:[%s9653_s14] sm:$0x7] %vm9654_vm7, %v9651_v12 }
0x11b2 PF: > { %s25_s27 = sadd.s32 1, %s13721_s27  }
0x11b3   : > { %p22_p8 = scmp.ge.s32.totalorder %s25_s27, 4  }
0x11b5   :  { %24 = sbr.rel (!%p22_p8) target bundleno = 3 (0x3), region = 266 }

</bundles_post_ra>
